<compile_context>
chip_gen: v5e
topology: v5e:2x2
jax: 0.10.0
libtpu: 0.0.40
codegen_flags: <defaults>
</compile_context>

<pallas_src>
import jax
import jax.numpy as jnp
from jax.experimental import pallas as pl
from jax.experimental.pallas import tpu as pltpu


def _round_up(n, m):
    return ((n + m - 1) // m) * m


def rnn_kernel(x_ref, w_ref, b_ref, wc_ref, bc_ref, out_ref):
    # x_ref : (T, Bp, Dp)        bf16  time-major input
    # w_ref : (Dp + Hp, 4 * Hp)  bf16  fused [W_ih^T ; W_hh^T], gate-tile layout
    # b_ref : (1, 4 * Hp)        f32   b_ih + b_hh, gate-tile layout
    # wc_ref: (Hp, Op)           f32   classifier weight (transposed, padded)
    # bc_ref: (1, Op)            f32   classifier bias (-1e30 on padded lanes)
    # out   : (Bp, Op)           f32   softmax probabilities
    T, Bp, _ = x_ref.shape
    Hp = wc_ref.shape[0]

    w = w_ref[...]          # hoisted: loaded once, reused every time step
    b = b_ref[...]

    h0 = jnp.zeros((Bp, Hp), jnp.float32)
    c0 = jnp.zeros((Bp, Hp), jnp.float32)

    def step(t, carry):
        h, c = carry
        x_t = x_ref[t]                                           # (Bp, Dp) bf16
        xh = jnp.concatenate([x_t, h.astype(jnp.bfloat16)], axis=1)
        # One fused MXU call per step; f32 accumulation.
        gates = jnp.dot(xh, w, preferred_element_type=jnp.float32) + b
        # Each gate occupies a whole 128-lane tile -> slicing is a free view.
        i_g = jax.nn.sigmoid(gates[:, 0 * Hp:1 * Hp])
        f_g = jax.nn.sigmoid(gates[:, 1 * Hp:2 * Hp])
        g_g = jnp.tanh(gates[:, 2 * Hp:3 * Hp])
        o_g = jax.nn.sigmoid(gates[:, 3 * Hp:4 * Hp])
        # Padded H lanes see zero weights/bias -> g=0, so c/h stay exactly 0 there.
        c_new = f_g * c + i_g * g_g
        h_new = o_g * jnp.tanh(c_new)
        return h_new, c_new

    h_last, _ = jax.lax.fori_loop(0, T, step, (h0, c0), unroll=True)

    # Classifier + numerically stable softmax. Padded output lanes carry a
    # -1e30 bias so exp() == 0 and they don't pollute the denominator.
    logits = (jnp.dot(h_last, wc_ref[...], preferred_element_type=jnp.float32)
              + bc_ref[...])
    m = jnp.max(logits, axis=1, keepdims=True)
    e = jnp.exp(logits - m)
    s = jnp.sum(e, axis=1, keepdims=True)
    out_ref[...] = e * pl.reciprocal(s, approx=True)


def rnn_forward(x, w_ih, w_hh, b_ih, b_hh, w_cls, b_cls):
    """x: (B, T, D) float32. Returns softmax(Linear(LSTM(x)[:, -1, :])) -> (B, O)."""
    B, T, D = x.shape
    H = w_hh.shape[1]          # w_hh: (4H, H)
    O = w_cls.shape[0]         # w_cls: (O, H)

    Bp = _round_up(max(B, 8), 8)     # full sublanes
    Dp = _round_up(D, 128)           # full lanes
    Hp = _round_up(H, 128)
    Op = _round_up(O, 128)           # lane-dense output -> unmasked stores

    # Time-major, padded, bf16 input.
    x_tbd = jnp.transpose(x, (1, 0, 2))                                # (T, B, D)
    x_pad = jnp.zeros((T, Bp, Dp), jnp.float32).at[:, :B, :D].set(x_tbd)
    x_pad = x_pad.astype(jnp.bfloat16)

    # Fused gate weight [W_ih^T ; W_hh^T]; gate k occupies lanes [k*Hp, k*Hp+H).
    wih_t = jnp.transpose(w_ih)                                        # (D, 4H)
    whh_t = jnp.transpose(w_hh)                                        # (H, 4H)
    b = b_ih + b_hh                                                    # (4H,)
    w_x = jnp.zeros((Dp, 4 * Hp), jnp.float32)
    w_h = jnp.zeros((Hp, 4 * Hp), jnp.float32)
    b_pad = jnp.zeros((1, 4 * Hp), jnp.float32)
    for k in range(4):
        w_x = w_x.at[:D, k * Hp:k * Hp + H].set(wih_t[:, k * H:(k + 1) * H])
        w_h = w_h.at[:H, k * Hp:k * Hp + H].set(whh_t[:, k * H:(k + 1) * H])
        b_pad = b_pad.at[0, k * Hp:k * Hp + H].set(b[k * H:(k + 1) * H])
    w_fused = jnp.concatenate([w_x, w_h], axis=0).astype(jnp.bfloat16)  # (Dp+Hp, 4Hp)

    # Classifier (f32; single epilogue matmul). Padded classes get -1e30 bias.
    wc_pad = jnp.zeros((Hp, Op), jnp.float32).at[:H, :O].set(jnp.transpose(w_cls))
    bc_pad = jnp.full((1, Op), -1e30, jnp.float32).at[0, :O].set(b_cls)

    vmem = pltpu.MemorySpace.VMEM
    out_pad = pl.pallas_call(
        rnn_kernel,
        out_shape=jax.ShapeDtypeStruct((Bp, Op), jnp.float32),
        in_specs=[pl.BlockSpec(memory_space=vmem) for _ in range(5)],
        out_specs=pl.BlockSpec(memory_space=vmem),
        # NOTE: for large H / very long T, chunk T over a grid and raise
        # pltpu.CompilerParams(vmem_limit_bytes=...); unnecessary at these sizes.
    )(x_pad, w_fused, b_pad, wc_pad, bc_pad)

    return out_pad[:B, :O]


def _reference(x, w_ih, w_hh, b_ih, b_hh, w_cls, b_cls):
    """Pure-JAX f32 reference matching PyTorch nn.LSTM semantics (gate order i,f,g,o)."""
    B, T, D = x.shape
    H = w_hh.shape[1]

    def step(carry, x_t):
        h, c = carry
        gates = x_t @ w_ih.T + b_ih + h @ w_hh.T + b_hh
        i = jax.nn.sigmoid(gates[:, 0 * H:1 * H])
        f = jax.nn.sigmoid(gates[:, 1 * H:2 * H])
        g = jnp.tanh(gates[:, 2 * H:3 * H])
        o = jax.nn.sigmoid(gates[:, 3 * H:4 * H])
        c = f * c + i * g
        h = o * jnp.tanh(c)
        return (h, c), None

    h0 = jnp.zeros((B, H), jnp.float32)
    c0 = jnp.zeros((B, H), jnp.float32)
    (h_last, _), _ = jax.lax.scan(step, (h0, c0), jnp.transpose(x, (1, 0, 2)))
    logits = h_last @ w_cls.T + b_cls
    return jax.nn.softmax(logits, axis=1)


if __name__ == "__main__":
    B, T, D, H, O = 2, 8, 4, 32, 8

    key = jax.random.PRNGKey(0)
    ks = jax.random.split(key, 8)
    scale = 1.0 / jnp.sqrt(H)

    x = jax.random.normal(ks[0], (B, T, D), jnp.float32)
    w_ih = jax.random.uniform(ks[1], (4 * H, D), jnp.float32, -scale, scale)
    w_hh = jax.random.uniform(ks[2], (4 * H, H), jnp.float32, -scale, scale)
    b_ih = jax.random.uniform(ks[3], (4 * H,), jnp.float32, -scale, scale)
    b_hh = jax.random.uniform(ks[4], (4 * H,), jnp.float32, -scale, scale)
    w_cls = jax.random.uniform(ks[5], (O, H), jnp.float32, -scale, scale)
    b_cls = jax.random.uniform(ks[6], (O,), jnp.float32, -scale, scale)

    out = rnn_forward(x, w_ih, w_hh, b_ih, b_hh, w_cls, b_cls)
    out = jax.block_until_ready(out)

    ref = _reference(x, w_ih, w_hh, b_ih, b_hh, w_cls, b_cls)
    assert out.shape == (B, O)
    # bf16 gate matmuls + approx reciprocal -> loosened tolerance vs the f32 reference.
    assert jnp.allclose(out, ref, atol=2e-2, rtol=2e-2), (out, ref)
    assert jnp.allclose(jnp.sum(out, axis=1), jnp.ones((B,)), atol=1e-2)

    print("KERNEL_OK")
</pallas_src>

<mosaic_0001>
module attributes {stable_mosaic.version = 11 : i64} {
  func.func @rnn_kernel(%arg0: memref<8x8x128xbf16, #tpu.memory_space<vmem>>, %arg1: memref<256x512xbf16, #tpu.memory_space<vmem>>, %arg2: memref<1x512xf32, #tpu.memory_space<vmem>>, %arg3: memref<128x128xf32, #tpu.memory_space<vmem>>, %arg4: memref<1x128xf32, #tpu.memory_space<vmem>>, %arg5: memref<8x128xf32, #tpu.memory_space<vmem>>) attributes {dimension_semantics = [], scalar_prefetch = 0 : i64, scratch_operands = 0 : i64, tpu.core_type = #tpu.core_type<tc>} {
    %c0 = arith.constant 0 : index
    %c0_0 = arith.constant 0 : index
    %0 = vector.load %arg1[%c0, %c0_0] : memref<256x512xbf16, #tpu.memory_space<vmem>>, vector<256x512xbf16>
    %c0_1 = arith.constant 0 : index
    %c0_2 = arith.constant 0 : index
    %1 = vector.load %arg2[%c0_1, %c0_2] : memref<1x512xf32, #tpu.memory_space<vmem>>, vector<1x512xf32>
    %cst = arith.constant 0.000000e+00 : f32
    %2 = vector.broadcast %cst : f32 to vector<8x128xf32>
    %cst_3 = arith.constant 0.000000e+00 : f32
    %3 = vector.broadcast %cst_3 : f32 to vector<8x128xf32>
    %c0_i32 = arith.constant 0 : i32
    %4 = arith.index_cast %c0_i32 : i32 to index
    %c0_4 = arith.constant 0 : index
    %c0_5 = arith.constant 0 : index
    %5 = vector.load %arg0[%4, %c0_4, %c0_5] : memref<8x8x128xbf16, #tpu.memory_space<vmem>>, vector<1x8x128xbf16>
    %6 = vector.shape_cast %5 : vector<1x8x128xbf16> to vector<8x128xbf16>
    %7 = arith.truncf %2 : vector<8x128xf32> to vector<8x128xbf16>
    %8 = tpu.concatenate %6, %7 in 1 : vector<8x128xbf16>, vector<8x128xbf16> -> vector<8x256xbf16>
    %cst_6 = arith.constant dense<0.000000e+00> : vector<8x512xf32>
    %9 = tpu.matmul %8, %0, %cst_6 {dimension_numbers = #tpu.dot_dimension_numbers<[1], [0], [0], [1], [0, 0, 1, 1], [], []>} : vector<8x256xbf16>, vector<256x512xbf16>, vector<8x512xf32> -> vector<8x512xf32>
    %10 = vector.broadcast %1 : vector<1x512xf32> to vector<8x512xf32>
    %11 = arith.addf %9, %10 : vector<8x512xf32>
    %12 = vector.extract_strided_slice %11 {offsets = [0, 0], sizes = [8, 128], strides = [1, 1]} : vector<8x512xf32> to vector<8x128xf32>
    %13 = arith.negf %12 : vector<8x128xf32>
    %14 = math.exp %13 : vector<8x128xf32>
    %cst_7 = arith.constant 1.000000e+00 : f32
    %15 = vector.broadcast %cst_7 : f32 to vector<8x128xf32>
    %16 = arith.addf %15, %14 : vector<8x128xf32>
    %17 = arith.divf %15, %16 : vector<8x128xf32>
    %18 = vector.extract_strided_slice %11 {offsets = [0, 128], sizes = [8, 128], strides = [1, 1]} : vector<8x512xf32> to vector<8x128xf32>
    %19 = arith.negf %18 : vector<8x128xf32>
    %20 = math.exp %19 : vector<8x128xf32>
    %cst_8 = arith.constant 1.000000e+00 : f32
    %21 = vector.broadcast %cst_8 : f32 to vector<8x128xf32>
    %22 = arith.addf %21, %20 : vector<8x128xf32>
    %23 = arith.divf %21, %22 : vector<8x128xf32>
    %24 = vector.extract_strided_slice %11 {offsets = [0, 256], sizes = [8, 128], strides = [1, 1]} : vector<8x512xf32> to vector<8x128xf32>
    %25 = math.tanh %24 : vector<8x128xf32>
    %26 = vector.extract_strided_slice %11 {offsets = [0, 384], sizes = [8, 128], strides = [1, 1]} : vector<8x512xf32> to vector<8x128xf32>
    %27 = arith.negf %26 : vector<8x128xf32>
    %28 = math.exp %27 : vector<8x128xf32>
    %cst_9 = arith.constant 1.000000e+00 : f32
    %29 = vector.broadcast %cst_9 : f32 to vector<8x128xf32>
    %30 = arith.addf %29, %28 : vector<8x128xf32>
    %31 = arith.divf %29, %30 : vector<8x128xf32>
    %32 = arith.mulf %23, %3 : vector<8x128xf32>
    %33 = arith.mulf %17, %25 : vector<8x128xf32>
    %34 = arith.addf %32, %33 : vector<8x128xf32>
    %35 = math.tanh %34 : vector<8x128xf32>
    %36 = arith.mulf %31, %35 : vector<8x128xf32>
    %c1_i32 = arith.constant 1 : i32
    %37 = arith.index_cast %c1_i32 : i32 to index
    %c0_10 = arith.constant 0 : index
    %c0_11 = arith.constant 0 : index
    %38 = vector.load %arg0[%37, %c0_10, %c0_11] : memref<8x8x128xbf16, #tpu.memory_space<vmem>>, vector<1x8x128xbf16>
    %39 = vector.shape_cast %38 : vector<1x8x128xbf16> to vector<8x128xbf16>
    %40 = arith.truncf %36 : vector<8x128xf32> to vector<8x128xbf16>
    %41 = tpu.concatenate %39, %40 in 1 : vector<8x128xbf16>, vector<8x128xbf16> -> vector<8x256xbf16>
    %cst_12 = arith.constant dense<0.000000e+00> : vector<8x512xf32>
    %42 = tpu.matmul %41, %0, %cst_12 {dimension_numbers = #tpu.dot_dimension_numbers<[1], [0], [0], [1], [0, 0, 1, 1], [], []>} : vector<8x256xbf16>, vector<256x512xbf16>, vector<8x512xf32> -> vector<8x512xf32>
    %43 = vector.broadcast %1 : vector<1x512xf32> to vector<8x512xf32>
    %44 = arith.addf %42, %43 : vector<8x512xf32>
    %45 = vector.extract_strided_slice %44 {offsets = [0, 0], sizes = [8, 128], strides = [1, 1]} : vector<8x512xf32> to vector<8x128xf32>
    %46 = arith.negf %45 : vector<8x128xf32>
    %47 = math.exp %46 : vector<8x128xf32>
    %cst_13 = arith.constant 1.000000e+00 : f32
    %48 = vector.broadcast %cst_13 : f32 to vector<8x128xf32>
    %49 = arith.addf %48, %47 : vector<8x128xf32>
    %50 = arith.divf %48, %49 : vector<8x128xf32>
    %51 = vector.extract_strided_slice %44 {offsets = [0, 128], sizes = [8, 128], strides = [1, 1]} : vector<8x512xf32> to vector<8x128xf32>
    %52 = arith.negf %51 : vector<8x128xf32>
    %53 = math.exp %52 : vector<8x128xf32>
    %cst_14 = arith.constant 1.000000e+00 : f32
    %54 = vector.broadcast %cst_14 : f32 to vector<8x128xf32>
    %55 = arith.addf %54, %53 : vector<8x128xf32>
    %56 = arith.divf %54, %55 : vector<8x128xf32>
    %57 = vector.extract_strided_slice %44 {offsets = [0, 256], sizes = [8, 128], strides = [1, 1]} : vector<8x512xf32> to vector<8x128xf32>
    %58 = math.tanh %57 : vector<8x128xf32>
    %59 = vector.extract_strided_slice %44 {offsets = [0, 384], sizes = [8, 128], strides = [1, 1]} : vector<8x512xf32> to vector<8x128xf32>
    %60 = arith.negf %59 : vector<8x128xf32>
    %61 = math.exp %60 : vector<8x128xf32>
    %cst_15 = arith.constant 1.000000e+00 : f32
    %62 = vector.broadcast %cst_15 : f32 to vector<8x128xf32>
    %63 = arith.addf %62, %61 : vector<8x128xf32>
    %64 = arith.divf %62, %63 : vector<8x128xf32>
    %65 = arith.mulf %56, %34 : vector<8x128xf32>
    %66 = arith.mulf %50, %58 : vector<8x128xf32>
    %67 = arith.addf %65, %66 : vector<8x128xf32>
    %68 = math.tanh %67 : vector<8x128xf32>
    %69 = arith.mulf %64, %68 : vector<8x128xf32>
    %c2_i32 = arith.constant 2 : i32
    %70 = arith.index_cast %c2_i32 : i32 to index
    %c0_16 = arith.constant 0 : index
    %c0_17 = arith.constant 0 : index
    %71 = vector.load %arg0[%70, %c0_16, %c0_17] : memref<8x8x128xbf16, #tpu.memory_space<vmem>>, vector<1x8x128xbf16>
    %72 = vector.shape_cast %71 : vector<1x8x128xbf16> to vector<8x128xbf16>
    %73 = arith.truncf %69 : vector<8x128xf32> to vector<8x128xbf16>
    %74 = tpu.concatenate %72, %73 in 1 : vector<8x128xbf16>, vector<8x128xbf16> -> vector<8x256xbf16>
    %cst_18 = arith.constant dense<0.000000e+00> : vector<8x512xf32>
    %75 = tpu.matmul %74, %0, %cst_18 {dimension_numbers = #tpu.dot_dimension_numbers<[1], [0], [0], [1], [0, 0, 1, 1], [], []>} : vector<8x256xbf16>, vector<256x512xbf16>, vector<8x512xf32> -> vector<8x512xf32>
    %76 = vector.broadcast %1 : vector<1x512xf32> to vector<8x512xf32>
    %77 = arith.addf %75, %76 : vector<8x512xf32>
    %78 = vector.extract_strided_slice %77 {offsets = [0, 0], sizes = [8, 128], strides = [1, 1]} : vector<8x512xf32> to vector<8x128xf32>
    %79 = arith.negf %78 : vector<8x128xf32>
    %80 = math.exp %79 : vector<8x128xf32>
    %cst_19 = arith.constant 1.000000e+00 : f32
    %81 = vector.broadcast %cst_19 : f32 to vector<8x128xf32>
    %82 = arith.addf %81, %80 : vector<8x128xf32>
    %83 = arith.divf %81, %82 : vector<8x128xf32>
    %84 = vector.extract_strided_slice %77 {offsets = [0, 128], sizes = [8, 128], strides = [1, 1]} : vector<8x512xf32> to vector<8x128xf32>
    %85 = arith.negf %84 : vector<8x128xf32>
    %86 = math.exp %85 : vector<8x128xf32>
    %cst_20 = arith.constant 1.000000e+00 : f32
    %87 = vector.broadcast %cst_20 : f32 to vector<8x128xf32>
    %88 = arith.addf %87, %86 : vector<8x128xf32>
    %89 = arith.divf %87, %88 : vector<8x128xf32>
    %90 = vector.extract_strided_slice %77 {offsets = [0, 256], sizes = [8, 128], strides = [1, 1]} : vector<8x512xf32> to vector<8x128xf32>
    %91 = math.tanh %90 : vector<8x128xf32>
    %92 = vector.extract_strided_slice %77 {offsets = [0, 384], sizes = [8, 128], strides = [1, 1]} : vector<8x512xf32> to vector<8x128xf32>
    %93 = arith.negf %92 : vector<8x128xf32>
    %94 = math.exp %93 : vector<8x128xf32>
    %cst_21 = arith.constant 1.000000e+00 : f32
    %95 = vector.broadcast %cst_21 : f32 to vector<8x128xf32>
    %96 = arith.addf %95, %94 : vector<8x128xf32>
    %97 = arith.divf %95, %96 : vector<8x128xf32>
    %98 = arith.mulf %89, %67 : vector<8x128xf32>
    %99 = arith.mulf %83, %91 : vector<8x128xf32>
    %100 = arith.addf %98, %99 : vector<8x128xf32>
    %101 = math.tanh %100 : vector<8x128xf32>
    %102 = arith.mulf %97, %101 : vector<8x128xf32>
    %c3_i32 = arith.constant 3 : i32
    %103 = arith.index_cast %c3_i32 : i32 to index
    %c0_22 = arith.constant 0 : index
    %c0_23 = arith.constant 0 : index
    %104 = vector.load %arg0[%103, %c0_22, %c0_23] : memref<8x8x128xbf16, #tpu.memory_space<vmem>>, vector<1x8x128xbf16>
    %105 = vector.shape_cast %104 : vector<1x8x128xbf16> to vector<8x128xbf16>
    %106 = arith.truncf %102 : vector<8x128xf32> to vector<8x128xbf16>
    %107 = tpu.concatenate %105, %106 in 1 : vector<8x128xbf16>, vector<8x128xbf16> -> vector<8x256xbf16>
    %cst_24 = arith.constant dense<0.000000e+00> : vector<8x512xf32>
    %108 = tpu.matmul %107, %0, %cst_24 {dimension_numbers = #tpu.dot_dimension_numbers<[1], [0], [0], [1], [0, 0, 1, 1], [], []>} : vector<8x256xbf16>, vector<256x512xbf16>, vector<8x512xf32> -> vector<8x512xf32>
    %109 = vector.broadcast %1 : vector<1x512xf32> to vector<8x512xf32>
    %110 = arith.addf %108, %109 : vector<8x512xf32>
    %111 = vector.extract_strided_slice %110 {offsets = [0, 0], sizes = [8, 128], strides = [1, 1]} : vector<8x512xf32> to vector<8x128xf32>
    %112 = arith.negf %111 : vector<8x128xf32>
    %113 = math.exp %112 : vector<8x128xf32>
    %cst_25 = arith.constant 1.000000e+00 : f32
    %114 = vector.broadcast %cst_25 : f32 to vector<8x128xf32>
    %115 = arith.addf %114, %113 : vector<8x128xf32>
    %116 = arith.divf %114, %115 : vector<8x128xf32>
    %117 = vector.extract_strided_slice %110 {offsets = [0, 128], sizes = [8, 128], strides = [1, 1]} : vector<8x512xf32> to vector<8x128xf32>
    %118 = arith.negf %117 : vector<8x128xf32>
    %119 = math.exp %118 : vector<8x128xf32>
    %cst_26 = arith.constant 1.000000e+00 : f32
    %120 = vector.broadcast %cst_26 : f32 to vector<8x128xf32>
    %121 = arith.addf %120, %119 : vector<8x128xf32>
    %122 = arith.divf %120, %121 : vector<8x128xf32>
    %123 = vector.extract_strided_slice %110 {offsets = [0, 256], sizes = [8, 128], strides = [1, 1]} : vector<8x512xf32> to vector<8x128xf32>
    %124 = math.tanh %123 : vector<8x128xf32>
    %125 = vector.extract_strided_slice %110 {offsets = [0, 384], sizes = [8, 128], strides = [1, 1]} : vector<8x512xf32> to vector<8x128xf32>
    %126 = arith.negf %125 : vector<8x128xf32>
    %127 = math.exp %126 : vector<8x128xf32>
    %cst_27 = arith.constant 1.000000e+00 : f32
    %128 = vector.broadcast %cst_27 : f32 to vector<8x128xf32>
    %129 = arith.addf %128, %127 : vector<8x128xf32>
    %130 = arith.divf %128, %129 : vector<8x128xf32>
    %131 = arith.mulf %122, %100 : vector<8x128xf32>
    %132 = arith.mulf %116, %124 : vector<8x128xf32>
    %133 = arith.addf %131, %132 : vector<8x128xf32>
    %134 = math.tanh %133 : vector<8x128xf32>
    %135 = arith.mulf %130, %134 : vector<8x128xf32>
    %c4_i32 = arith.constant 4 : i32
    %136 = arith.index_cast %c4_i32 : i32 to index
    %c0_28 = arith.constant 0 : index
    %c0_29 = arith.constant 0 : index
    %137 = vector.load %arg0[%136, %c0_28, %c0_29] : memref<8x8x128xbf16, #tpu.memory_space<vmem>>, vector<1x8x128xbf16>
    %138 = vector.shape_cast %137 : vector<1x8x128xbf16> to vector<8x128xbf16>
    %139 = arith.truncf %135 : vector<8x128xf32> to vector<8x128xbf16>
    %140 = tpu.concatenate %138, %139 in 1 : vector<8x128xbf16>, vector<8x128xbf16> -> vector<8x256xbf16>
    %cst_30 = arith.constant dense<0.000000e+00> : vector<8x512xf32>
    %141 = tpu.matmul %140, %0, %cst_30 {dimension_numbers = #tpu.dot_dimension_numbers<[1], [0], [0], [1], [0, 0, 1, 1], [], []>} : vector<8x256xbf16>, vector<256x512xbf16>, vector<8x512xf32> -> vector<8x512xf32>
    %142 = vector.broadcast %1 : vector<1x512xf32> to vector<8x512xf32>
    %143 = arith.addf %141, %142 : vector<8x512xf32>
    %144 = vector.extract_strided_slice %143 {offsets = [0, 0], sizes = [8, 128], strides = [1, 1]} : vector<8x512xf32> to vector<8x128xf32>
    %145 = arith.negf %144 : vector<8x128xf32>
    %146 = math.exp %145 : vector<8x128xf32>
    %cst_31 = arith.constant 1.000000e+00 : f32
    %147 = vector.broadcast %cst_31 : f32 to vector<8x128xf32>
    %148 = arith.addf %147, %146 : vector<8x128xf32>
    %149 = arith.divf %147, %148 : vector<8x128xf32>
    %150 = vector.extract_strided_slice %143 {offsets = [0, 128], sizes = [8, 128], strides = [1, 1]} : vector<8x512xf32> to vector<8x128xf32>
    %151 = arith.negf %150 : vector<8x128xf32>
    %152 = math.exp %151 : vector<8x128xf32>
    %cst_32 = arith.constant 1.000000e+00 : f32
    %153 = vector.broadcast %cst_32 : f32 to vector<8x128xf32>
    %154 = arith.addf %153, %152 : vector<8x128xf32>
    %155 = arith.divf %153, %154 : vector<8x128xf32>
    %156 = vector.extract_strided_slice %143 {offsets = [0, 256], sizes = [8, 128], strides = [1, 1]} : vector<8x512xf32> to vector<8x128xf32>
    %157 = math.tanh %156 : vector<8x128xf32>
    %158 = vector.extract_strided_slice %143 {offsets = [0, 384], sizes = [8, 128], strides = [1, 1]} : vector<8x512xf32> to vector<8x128xf32>
    %159 = arith.negf %158 : vector<8x128xf32>
    %160 = math.exp %159 : vector<8x128xf32>
    %cst_33 = arith.constant 1.000000e+00 : f32
    %161 = vector.broadcast %cst_33 : f32 to vector<8x128xf32>
    %162 = arith.addf %161, %160 : vector<8x128xf32>
    %163 = arith.divf %161, %162 : vector<8x128xf32>
    %164 = arith.mulf %155, %133 : vector<8x128xf32>
    %165 = arith.mulf %149, %157 : vector<8x128xf32>
    %166 = arith.addf %164, %165 : vector<8x128xf32>
    %167 = math.tanh %166 : vector<8x128xf32>
    %168 = arith.mulf %163, %167 : vector<8x128xf32>
    %c5_i32 = arith.constant 5 : i32
    %169 = arith.index_cast %c5_i32 : i32 to index
    %c0_34 = arith.constant 0 : index
    %c0_35 = arith.constant 0 : index
    %170 = vector.load %arg0[%169, %c0_34, %c0_35] : memref<8x8x128xbf16, #tpu.memory_space<vmem>>, vector<1x8x128xbf16>
    %171 = vector.shape_cast %170 : vector<1x8x128xbf16> to vector<8x128xbf16>
    %172 = arith.truncf %168 : vector<8x128xf32> to vector<8x128xbf16>
    %173 = tpu.concatenate %171, %172 in 1 : vector<8x128xbf16>, vector<8x128xbf16> -> vector<8x256xbf16>
    %cst_36 = arith.constant dense<0.000000e+00> : vector<8x512xf32>
    %174 = tpu.matmul %173, %0, %cst_36 {dimension_numbers = #tpu.dot_dimension_numbers<[1], [0], [0], [1], [0, 0, 1, 1], [], []>} : vector<8x256xbf16>, vector<256x512xbf16>, vector<8x512xf32> -> vector<8x512xf32>
    %175 = vector.broadcast %1 : vector<1x512xf32> to vector<8x512xf32>
    %176 = arith.addf %174, %175 : vector<8x512xf32>
    %177 = vector.extract_strided_slice %176 {offsets = [0, 0], sizes = [8, 128], strides = [1, 1]} : vector<8x512xf32> to vector<8x128xf32>
    %178 = arith.negf %177 : vector<8x128xf32>
    %179 = math.exp %178 : vector<8x128xf32>
    %cst_37 = arith.constant 1.000000e+00 : f32
    %180 = vector.broadcast %cst_37 : f32 to vector<8x128xf32>
    %181 = arith.addf %180, %179 : vector<8x128xf32>
    %182 = arith.divf %180, %181 : vector<8x128xf32>
    %183 = vector.extract_strided_slice %176 {offsets = [0, 128], sizes = [8, 128], strides = [1, 1]} : vector<8x512xf32> to vector<8x128xf32>
    %184 = arith.negf %183 : vector<8x128xf32>
    %185 = math.exp %184 : vector<8x128xf32>
    %cst_38 = arith.constant 1.000000e+00 : f32
    %186 = vector.broadcast %cst_38 : f32 to vector<8x128xf32>
    %187 = arith.addf %186, %185 : vector<8x128xf32>
    %188 = arith.divf %186, %187 : vector<8x128xf32>
    %189 = vector.extract_strided_slice %176 {offsets = [0, 256], sizes = [8, 128], strides = [1, 1]} : vector<8x512xf32> to vector<8x128xf32>
    %190 = math.tanh %189 : vector<8x128xf32>
    %191 = vector.extract_strided_slice %176 {offsets = [0, 384], sizes = [8, 128], strides = [1, 1]} : vector<8x512xf32> to vector<8x128xf32>
    %192 = arith.negf %191 : vector<8x128xf32>
    %193 = math.exp %192 : vector<8x128xf32>
    %cst_39 = arith.constant 1.000000e+00 : f32
    %194 = vector.broadcast %cst_39 : f32 to vector<8x128xf32>
    %195 = arith.addf %194, %193 : vector<8x128xf32>
    %196 = arith.divf %194, %195 : vector<8x128xf32>
    %197 = arith.mulf %188, %166 : vector<8x128xf32>
    %198 = arith.mulf %182, %190 : vector<8x128xf32>
    %199 = arith.addf %197, %198 : vector<8x128xf32>
    %200 = math.tanh %199 : vector<8x128xf32>
    %201 = arith.mulf %196, %200 : vector<8x128xf32>
    %c6_i32 = arith.constant 6 : i32
    %202 = arith.index_cast %c6_i32 : i32 to index
    %c0_40 = arith.constant 0 : index
    %c0_41 = arith.constant 0 : index
    %203 = vector.load %arg0[%202, %c0_40, %c0_41] : memref<8x8x128xbf16, #tpu.memory_space<vmem>>, vector<1x8x128xbf16>
    %204 = vector.shape_cast %203 : vector<1x8x128xbf16> to vector<8x128xbf16>
    %205 = arith.truncf %201 : vector<8x128xf32> to vector<8x128xbf16>
    %206 = tpu.concatenate %204, %205 in 1 : vector<8x128xbf16>, vector<8x128xbf16> -> vector<8x256xbf16>
    %cst_42 = arith.constant dense<0.000000e+00> : vector<8x512xf32>
    %207 = tpu.matmul %206, %0, %cst_42 {dimension_numbers = #tpu.dot_dimension_numbers<[1], [0], [0], [1], [0, 0, 1, 1], [], []>} : vector<8x256xbf16>, vector<256x512xbf16>, vector<8x512xf32> -> vector<8x512xf32>
    %208 = vector.broadcast %1 : vector<1x512xf32> to vector<8x512xf32>
    %209 = arith.addf %207, %208 : vector<8x512xf32>
    %210 = vector.extract_strided_slice %209 {offsets = [0, 0], sizes = [8, 128], strides = [1, 1]} : vector<8x512xf32> to vector<8x128xf32>
    %211 = arith.negf %210 : vector<8x128xf32>
    %212 = math.exp %211 : vector<8x128xf32>
    %cst_43 = arith.constant 1.000000e+00 : f32
    %213 = vector.broadcast %cst_43 : f32 to vector<8x128xf32>
    %214 = arith.addf %213, %212 : vector<8x128xf32>
    %215 = arith.divf %213, %214 : vector<8x128xf32>
    %216 = vector.extract_strided_slice %209 {offsets = [0, 128], sizes = [8, 128], strides = [1, 1]} : vector<8x512xf32> to vector<8x128xf32>
    %217 = arith.negf %216 : vector<8x128xf32>
    %218 = math.exp %217 : vector<8x128xf32>
    %cst_44 = arith.constant 1.000000e+00 : f32
    %219 = vector.broadcast %cst_44 : f32 to vector<8x128xf32>
    %220 = arith.addf %219, %218 : vector<8x128xf32>
    %221 = arith.divf %219, %220 : vector<8x128xf32>
    %222 = vector.extract_strided_slice %209 {offsets = [0, 256], sizes = [8, 128], strides = [1, 1]} : vector<8x512xf32> to vector<8x128xf32>
    %223 = math.tanh %222 : vector<8x128xf32>
    %224 = vector.extract_strided_slice %209 {offsets = [0, 384], sizes = [8, 128], strides = [1, 1]} : vector<8x512xf32> to vector<8x128xf32>
    %225 = arith.negf %224 : vector<8x128xf32>
    %226 = math.exp %225 : vector<8x128xf32>
    %cst_45 = arith.constant 1.000000e+00 : f32
    %227 = vector.broadcast %cst_45 : f32 to vector<8x128xf32>
    %228 = arith.addf %227, %226 : vector<8x128xf32>
    %229 = arith.divf %227, %228 : vector<8x128xf32>
    %230 = arith.mulf %221, %199 : vector<8x128xf32>
    %231 = arith.mulf %215, %223 : vector<8x128xf32>
    %232 = arith.addf %230, %231 : vector<8x128xf32>
    %233 = math.tanh %232 : vector<8x128xf32>
    %234 = arith.mulf %229, %233 : vector<8x128xf32>
    %c7_i32 = arith.constant 7 : i32
    %235 = arith.index_cast %c7_i32 : i32 to index
    %c0_46 = arith.constant 0 : index
    %c0_47 = arith.constant 0 : index
    %236 = vector.load %arg0[%235, %c0_46, %c0_47] : memref<8x8x128xbf16, #tpu.memory_space<vmem>>, vector<1x8x128xbf16>
    %237 = vector.shape_cast %236 : vector<1x8x128xbf16> to vector<8x128xbf16>
    %238 = arith.truncf %234 : vector<8x128xf32> to vector<8x128xbf16>
    %239 = tpu.concatenate %237, %238 in 1 : vector<8x128xbf16>, vector<8x128xbf16> -> vector<8x256xbf16>
    %cst_48 = arith.constant dense<0.000000e+00> : vector<8x512xf32>
    %240 = tpu.matmul %239, %0, %cst_48 {dimension_numbers = #tpu.dot_dimension_numbers<[1], [0], [0], [1], [0, 0, 1, 1], [], []>} : vector<8x256xbf16>, vector<256x512xbf16>, vector<8x512xf32> -> vector<8x512xf32>
    %241 = vector.broadcast %1 : vector<1x512xf32> to vector<8x512xf32>
    %242 = arith.addf %240, %241 : vector<8x512xf32>
    %243 = vector.extract_strided_slice %242 {offsets = [0, 0], sizes = [8, 128], strides = [1, 1]} : vector<8x512xf32> to vector<8x128xf32>
    %244 = arith.negf %243 : vector<8x128xf32>
    %245 = math.exp %244 : vector<8x128xf32>
    %cst_49 = arith.constant 1.000000e+00 : f32
    %246 = vector.broadcast %cst_49 : f32 to vector<8x128xf32>
    %247 = arith.addf %246, %245 : vector<8x128xf32>
    %248 = arith.divf %246, %247 : vector<8x128xf32>
    %249 = vector.extract_strided_slice %242 {offsets = [0, 128], sizes = [8, 128], strides = [1, 1]} : vector<8x512xf32> to vector<8x128xf32>
    %250 = arith.negf %249 : vector<8x128xf32>
    %251 = math.exp %250 : vector<8x128xf32>
    %cst_50 = arith.constant 1.000000e+00 : f32
    %252 = vector.broadcast %cst_50 : f32 to vector<8x128xf32>
    %253 = arith.addf %252, %251 : vector<8x128xf32>
    %254 = arith.divf %252, %253 : vector<8x128xf32>
    %255 = vector.extract_strided_slice %242 {offsets = [0, 256], sizes = [8, 128], strides = [1, 1]} : vector<8x512xf32> to vector<8x128xf32>
    %256 = math.tanh %255 : vector<8x128xf32>
    %257 = vector.extract_strided_slice %242 {offsets = [0, 384], sizes = [8, 128], strides = [1, 1]} : vector<8x512xf32> to vector<8x128xf32>
    %258 = arith.negf %257 : vector<8x128xf32>
    %259 = math.exp %258 : vector<8x128xf32>
    %cst_51 = arith.constant 1.000000e+00 : f32
    %260 = vector.broadcast %cst_51 : f32 to vector<8x128xf32>
    %261 = arith.addf %260, %259 : vector<8x128xf32>
    %262 = arith.divf %260, %261 : vector<8x128xf32>
    %263 = arith.mulf %254, %232 : vector<8x128xf32>
    %264 = arith.mulf %248, %256 : vector<8x128xf32>
    %265 = arith.addf %263, %264 : vector<8x128xf32>
    %266 = math.tanh %265 : vector<8x128xf32>
    %267 = arith.mulf %262, %266 : vector<8x128xf32>
    %c8_i32 = arith.constant 8 : i32
    %c0_52 = arith.constant 0 : index
    %c0_53 = arith.constant 0 : index
    %268 = vector.load %arg3[%c0_52, %c0_53] : memref<128x128xf32, #tpu.memory_space<vmem>>, vector<128x128xf32>
    %cst_54 = arith.constant dense<0.000000e+00> : vector<8x128xf32>
    %269 = tpu.matmul %267, %268, %cst_54 {dimension_numbers = #tpu.dot_dimension_numbers<[1], [0], [0], [1], [0, 0, 1, 1], [], []>} : vector<8x128xf32>, vector<128x128xf32>, vector<8x128xf32> -> vector<8x128xf32>
    %c0_55 = arith.constant 0 : index
    %c0_56 = arith.constant 0 : index
    %270 = vector.load %arg4[%c0_55, %c0_56] : memref<1x128xf32, #tpu.memory_space<vmem>>, vector<1x128xf32>
    %271 = vector.broadcast %270 : vector<1x128xf32> to vector<8x128xf32>
    %272 = arith.addf %269, %271 : vector<8x128xf32>
    %cst_57 = arith.constant dense<0xFF800000> : vector<8xf32>
    %273 = vector.multi_reduction <maximumf>, %272, %cst_57 [1] : vector<8x128xf32> to vector<8xf32>
    %274 = vector.shape_cast %273 : vector<8xf32> to vector<8x1xf32>
    %275 = vector.broadcast %274 : vector<8x1xf32> to vector<8x128xf32>
    %276 = arith.subf %272, %275 : vector<8x128xf32>
    %277 = math.exp %276 : vector<8x128xf32>
    %cst_58 = arith.constant dense<0.000000e+00> : vector<8xf32>
    %278 = vector.multi_reduction <add>, %277, %cst_58 [1] : vector<8x128xf32> to vector<8xf32>
    %279 = vector.shape_cast %278 : vector<8xf32> to vector<8x1xf32>
    %280 = tpu.reciprocal %279 {approx = true} : vector<8x1xf32> -> vector<8x1xf32>
    %281 = vector.broadcast %280 : vector<8x1xf32> to vector<8x128xf32>
    %282 = arith.mulf %277, %281 : vector<8x128xf32>
    %c0_59 = arith.constant 0 : index
    %c0_60 = arith.constant 0 : index
    %283 = vector.load %arg5[%c0_59, %c0_60] : memref<8x128xf32, #tpu.memory_space<vmem>>, vector<8x128xf32>
    tpu.vector_store %arg5[%c0_59, %c0_60], %282 {strides = array<i32>} : memref<8x128xf32, #tpu.memory_space<vmem>>, vector<8x128xf32>,
    return
  }
}

</mosaic_0001>

<bundles_post_ra>
// kernel: tpu_custom_call.1
= control target key start
LH: loop header
LB: loop body
LE: loop exit
PB: predicated region body
PF: predicated region fallthrough
CT: control target
= control target key end

     0   :  { %10 = vsyncpa [#allocation3], 0  ;;  %s3348_s0 = inlined_call_operand.hbm [shape: bf16[8,8,128], index: 0, kind: input, shape index: {}]   ;;  %s3349_s1 = inlined_call_operand.hbm [shape: bf16[256,512], index: 1, kind: input, shape index: {}]   ;;  %s3350_s2 = inlined_call_operand.hbm [shape: f32[1,512], index: 2, kind: input, shape index: {}]   ;;  %s3351_s3 = inlined_call_operand.hbm [shape: f32[128,128], index: 3, kind: input, shape index: {}]   ;;  %s3352_s4 = inlined_call_operand.vmem [shape: f32[1,128], index: 4, kind: input, shape index: {}]   ;;  %s3353_s5 = inlined_call_operand.hbm [shape: f32[8,128], index: 5, kind: output, shape index: {}]  }
   0x1   :  { %11 = vsyncpa [#allocation6], 0 }
   0x2   :  { %12 = vsyncpa [#allocation9], 0  ;;  %s31_s20 = sshll.u32 %s3349_s1, 4  ;;  %s32_s20 = int_to_ptr.hbm [resolvable:$true] %s31_s20 }
   0x3   :  { %13 = vsyncpa [#allocation4], 0  ;;  %s2521_s21 = smov [#allocation5]   ;;  %s18_s25 = sshll.u32 %s3348_s0, 4  ;;  %s19_s25 = int_to_ptr.hbm [resolvable:$true] %s18_s25 }
   0x4   :  { %s33_s22 = sshll.u32 %s2521_s21, 4  ;;  %s2522_s26 = smov 256   ;;  %s34_s22 = int_to_ptr.vmem [resolvable:$true] %s33_s22 }
   0x5   :  { %s2523_s27 = smov 16   ;;  %s2524_s28 = smov [#allocation2]  }
   0x6   :  { %39 = dma.hbm_to_vmem [thread:$0]  %s32_s20, 8192, %s34_s22, [#allocation6], %s2522_s26, %s2522_s26, %s2523_s27  }
   0x7   :  { %s20_s29 = sshll.u32 %s2524_s28, 4  ;;  %s2525_s30 = smov 64   ;;  %s21_s29 = int_to_ptr.vmem [resolvable:$true] %s20_s29 }
   0x8   :  { %s2526_s6 = smov 4   ;;  %s45_s8 = sshll.u32 %s3350_s2, 4  ;;  %s46_s8 = int_to_ptr.hbm [resolvable:$true] %s45_s8 }
   0x9   :  { %26 = dma.hbm_to_vmem [thread:$0]  %s19_s25, 512, %s21_s29, [#allocation3], %s2525_s30, %s2525_s30, %s2526_s6  }
   0xa   :  { %s2527_s9 = smov [#allocation7]   ;;  %s55_s12 = sshll.u32 %s3351_s3, 4  ;;  %s56_s12 = int_to_ptr.hbm [resolvable:$true] %s55_s12 }
   0xb   :  { %s47_s10 = sshll.u32 %s2527_s9, 4  ;;  %s2528_s13 = smov [#allocation8]   ;;  %s48_s10 = int_to_ptr.vmem [resolvable:$true] %s47_s10 }
   0xc   :  { %50 = dma.hbm_to_vmem [thread:$0]  %s46_s8, 64, %s48_s10, [#allocation6]  }
   0xd   :  { %s57_s14 = sshll.u32 %s2528_s13, 4  ;;  %s2529_s15 = smov 128   ;;  %s58_s14 = int_to_ptr.vmem [resolvable:$true] %s57_s14 }
   0xe   :  { %s2530_s16 = smov 8  }
   0xf   :  { %63 = dma.hbm_to_vmem [thread:$0]  %s56_s12, 2048, %s58_s14, [#allocation9], %s2529_s15, %s2529_s15, %s2530_s16  }
  0x10   :  { %2513 = dma.done.wait [#allocation3], 512  }
  0x11   :  { %2514 = vsyncadd [#allocation3], 4294966784 }
  0x12   :  { %2515 = dma.done.wait [#allocation6], 8256  }
  0x13   :  { %2516 = vsyncadd [#allocation6], 4294959040 }
  0x14   :  { %2517 = dma.done.wait [#allocation9], 2048  }
  0x15   :  { %2518 = vsyncadd [#allocation9], 4294965248  ;;  %v2018_v0 = vld [vmem:[#allocation5 + $0xe0] sm:$0xf]  ;;  %v2214_v1 = vld [vmem:[#allocation5 + $0xec] sm:$0xf0] }
  0x16   :  { %v2212_v2 = vld [vmem:[#allocation5 + $0xe4] sm:$0xf]  ;;  %v2575_v3 = vor.u32 %v2214_v1, %v2018_v0  ;;  %v2020_v4 = vld [vmem:[#allocation5 + $0xf0] sm:$0xf0]  ;;  %v2146_v9 = vld [vmem:[#allocation5 + $0x1e0] sm:$0xf] }
  0x17   :  { %v2244_v5 = vld [vmem:[#allocation5 + $0x1e4] sm:$0xf]  ;;  %v2148_v6 = vld [vmem:[#allocation5 + $0x1f0] sm:$0xf0]  ;;  %v2577_v7 = vor.u32 %v2212_v2, %v2020_v4  ;;  %v2246_v10 = vld [vmem:[#allocation5 + $0x1ec] sm:$0xf0] }
  0x18   :  { %3425 = vst [vmem:[#allocation15_spill] sm:$0xff] %v2575_v3  ;;  %v2579_v8 = vor.u32 %v2244_v5, %v2148_v6  ;;  %v2002_v11 = vld [vmem:[#allocation5 + $0xc0] sm:$0xf]  ;;  %478 = vmatpush.bf16.msra.mxu0 %v2575_v3  ;;  %v2582_v12 = vor.u32 %v2246_v10, %v2146_v9  ;;  %v2210_v13 = vld [vmem:[#allocation5 + $0xcc] sm:$0xf0]  ;;  %s2532_s17 = smov [#allocation10]  }
  0x19   :  { %3426 = vst [vmem:[#allocation16_spill] sm:$0xff] %v2577_v7  ;;  %v2208_v14 = vld [vmem:[#allocation5 + $0xc4] sm:$0xf]  ;;  %v2004_v15 = vld [vmem:[#allocation5 + $0xd0] sm:$0xf0]  ;;  %504 = vmatpush.bf16.msra.mxu2 %v2577_v7  ;;  %v2586_v16 = vor.u32 %v2210_v13, %v2002_v11  ;;  %s1890_s18 = sshll.u32 %s2532_s17, 4  ;;  %s1891_s18 = int_to_ptr.vmem [resolvable:$true] %s1890_s18 }
  0x1a   :  { %517 = vmatpush.bf16.msra.mxu3 %v2579_v8  ;;  %v2588_v17 = vor.u32 %v2208_v14, %v2004_v15  ;;  %v2240_v18 = vld [vmem:[#allocation5 + $0x1c4] sm:$0xf]  ;;  %v2132_v19 = vld [vmem:[#allocation5 + $0x1d0] sm:$0xf0]  ;;  %v2130_v20 = vld [vmem:[#allocation5 + $0x1c0] sm:$0xf]  ;;  %491 = vmatpush.bf16.msra.mxu1 %v2582_v12 }
  0x1b   :  { %3427 = vst [vmem:[#allocation17_spill] sm:$0xff] %v2586_v16  ;;  %v2591_v21 = vor.u32 %v2240_v18, %v2132_v19  ;;  %v2242_v22 = vld [vmem:[#allocation5 + $0x1cc] sm:$0xf0]  ;;  %v1986_v23 = vld [vmem:[#allocation5 + $0xa0] sm:$0xf]  ;;  %s1892_s21 = sshll.u32 %s3353_s5, 4  ;;  %s1893_s21 = int_to_ptr.hbm [resolvable:$true] %s1892_s21 }
  0x1c   :  { %3428 = vst [vmem:[#allocation18_spill] sm:$0xff] %v2588_v17  ;;  %v2206_v24 = vld [vmem:[#allocation5 + $0xac] sm:$0xf0]  ;;  %v2593_v25 = vor.u32 %v2242_v22, %v2130_v20  ;;  %v2204_v26 = vld [vmem:[#allocation5 + $0xa4] sm:$0xf]  ;;  %479 = vmatpush.bf16.msra.mxu0 %v2586_v16 }
  0x1d   :  { %v1988_v27 = vld [vmem:[#allocation5 + $0xb0] sm:$0xf0]  ;;  %v2236_v28 = vld [vmem:[#allocation5 + $0x1a4] sm:$0xf]  ;;  %v2596_v29 = vor.u32 %v2206_v24, %v1986_v23  ;;  %v2114_v31 = vld [vmem:[#allocation5 + $0x1a0] sm:$0xf]  ;;  %505 = vmatpush.bf16.msra.mxu2 %v2588_v17 }
  0x1e   :  { %v2116_v30 = vld [vmem:[#allocation5 + $0x1b0] sm:$0xf0]  ;;  %v2238_v32 = vld [vmem:[#allocation5 + $0x1ac] sm:$0xf0]  ;;  %518 = vmatpush.bf16.msra.mxu3 %v2591_v21  ;;  %v2600_v33 = vor.u32 %v2204_v26, %v1988_v27  ;;  %v1970_v35 = vld [vmem:[#allocation5 + $0x80] sm:$0xf]  ;;  %492 = vmatpush.bf16.msra.mxu1 %v2593_v25 }
  0x1f   :  { %v2602_v34 = vor.u32 %v2236_v28, %v2116_v30  ;;  %v2202_v36 = vld [vmem:[#allocation5 + $0x8c] sm:$0xf0]  ;;  %v2200_v37 = vld [vmem:[#allocation5 + $0x84] sm:$0xf]  ;;  %v2605_v38 = vor.u32 %v2238_v32, %v2114_v31  ;;  %v1972_v39 = vld [vmem:[#allocation5 + $0x90] sm:$0xf0] }
  0x20   :  { %v2232_v40 = vld [vmem:[#allocation5 + $0x184] sm:$0xf]  ;;  %v2100_v41 = vld [vmem:[#allocation5 + $0x190] sm:$0xf0]  ;;  %v2098_v42 = vld [vmem:[#allocation5 + $0x180] sm:$0xf]  ;;  %480 = vmatpush.bf16.msra.mxu0 %v2596_v29  ;;  %v2608_v44 = vor.u32 %v2202_v36, %v1970_v35  ;;  %v2612_v45 = vor.u32 %v2200_v37, %v1972_v39 }
  0x21   :  { %v2234_v43 = vld [vmem:[#allocation5 + $0x18c] sm:$0xf0]  ;;  %506 = vmatpush.bf16.msra.mxu2 %v2600_v33  ;;  %v2614_v46 = vor.u32 %v2232_v40, %v2100_v41  ;;  %v1954_v47 = vld [vmem:[#allocation5 + $0x60] sm:$0xf]  ;;  %v2196_v49 = vld [vmem:[#allocation5 + $0x64] sm:$0xf] }
  0x22   :  { %519 = vmatpush.bf16.msra.mxu3 %v2602_v34  ;;  %v2198_v48 = vld [vmem:[#allocation5 + $0x6c] sm:$0xf0]  ;;  %493 = vmatpush.bf16.msra.mxu1 %v2605_v38  ;;  %v2617_v50 = vor.u32 %v2234_v43, %v2098_v42  ;;  %v1956_v51 = vld [vmem:[#allocation5 + $0x70] sm:$0xf0]  ;;  %v2228_v52 = vld [vmem:[#allocation5 + $0x164] sm:$0xf] }
  0x23   :  { %v2084_v53 = vld [vmem:[#allocation5 + $0x170] sm:$0xf0]  ;;  %v2082_v54 = vld [vmem:[#allocation5 + $0x160] sm:$0xf]  ;;  %v2230_v55 = vld [vmem:[#allocation5 + $0x16c] sm:$0xf0]  ;;  %v2620_v56 = vor.u32 %v2198_v48, %v1954_v47  ;;  %v2624_v57 = vor.u32 %v2196_v49, %v1956_v51 }
  0x24   :  { %481 = vmatpush.bf16.msra.mxu0 %v2608_v44  ;;  %v2626_v58 = vor.u32 %v2228_v52, %v2084_v53  ;;  %v1938_v59 = vld [vmem:[#allocation5 + $0x40] sm:$0xf]  ;;  %v2194_v60 = vld [vmem:[#allocation5 + $0x4c] sm:$0xf0]  ;;  %v2192_v61 = vld [vmem:[#allocation5 + $0x44] sm:$0xf]  ;;  %v2629_v62 = vor.u32 %v2230_v55, %v2082_v54 }
  0x25   :  { %507 = vmatpush.bf16.msra.mxu2 %v2612_v45  ;;  %v1940_v63 = vld [vmem:[#allocation5 + $0x50] sm:$0xf0]  ;;  %v2224_v0 = vld [vmem:[#allocation5 + $0x144] sm:$0xf]  ;;  %v2066_v2 = vld [vmem:[#allocation5 + $0x140] sm:$0xf]  ;;  %v2632_v5 = vor.u32 %v2194_v60, %v1938_v59 }
  0x26   :  { %520 = vmatpush.bf16.msra.mxu3 %v2614_v46  ;;  %494 = vmatpush.bf16.msra.mxu1 %v2617_v50  ;;  %v2068_v1 = vld [vmem:[#allocation5 + $0x150] sm:$0xf0]  ;;  %v2226_v4 = vld [vmem:[#allocation5 + $0x14c] sm:$0xf0]  ;;  %v2636_v6 = vor.u32 %v2192_v61, %v1940_v63  ;;  %v1922_v10 = vld [vmem:[#allocation5 + $0x20] sm:$0xf] }
  0x27   :  { %v2638_v9 = vor.u32 %v2224_v0, %v2068_v1  ;;  %v2190_v11 = vld [vmem:[#allocation5 + $0x2c] sm:$0xf0]  ;;  %v2188_v13 = vld [vmem:[#allocation5 + $0x24] sm:$0xf]  ;;  %v2641_v14 = vor.u32 %v2226_v4, %v2066_v2  ;;  %v1924_v15 = vld [vmem:[#allocation5 + $0x30] sm:$0xf0] }
  0x28   :  { %482 = vmatpush.bf16.msra.mxu0 %v2620_v56  ;;  %v2220_v18 = vld [vmem:[#allocation5 + $0x124] sm:$0xf]  ;;  %v2052_v19 = vld [vmem:[#allocation5 + $0x130] sm:$0xf0]  ;;  %v2050_v20 = vld [vmem:[#allocation5 + $0x120] sm:$0xf]  ;;  %v2644_v23 = vor.u32 %v2190_v11, %v1922_v10  ;;  %v2648_v27 = vor.u32 %v2188_v13, %v1924_v15 }
  0x29   :  { %508 = vmatpush.bf16.msra.mxu2 %v2624_v57  ;;  %v2222_v22 = vld [vmem:[#allocation5 + $0x12c] sm:$0xf0]  ;;  %v1906_v24 = vld [vmem:[#allocation5] sm:$0xf]  ;;  %v2650_v28 = vor.u32 %v2220_v18, %v2052_v19  ;;  %v2184_v30 = vld [vmem:[#allocation5 + $0x4] sm:$0xf] }
  0x2a   :  { %521 = vmatpush.bf16.msra.mxu3 %v2626_v58  ;;  %495 = vmatpush.bf16.msra.mxu1 %v2629_v62  ;;  %v2186_v26 = vld [vmem:[#allocation5 + $0xc] sm:$0xf0]  ;;  %v1908_v31 = vld [vmem:[#allocation5 + $0x10] sm:$0xf0]  ;;  %v2216_v32 = vld [vmem:[#allocation5 + $0x104] sm:$0xf]  ;;  %v2653_v35 = vor.u32 %v2222_v22, %v2050_v20 }
  0x2b   :  { %3429 = vst [vmem:[#allocation19_spill] sm:$0xff] %v2650_v28  ;;  %v2036_v36 = vld [vmem:[#allocation5 + $0x110] sm:$0xf0]  ;;  %v2026_v37 = vld [vmem:[#allocation5 + $0xe8] sm:$0xf]  ;;  %v2656_v43 = vor.u32 %v2186_v26, %v1906_v24  ;;  %v2660_v51 = vor.u32 %v2184_v30, %v1908_v31 }
  0x2c   :  { %483 = vmatpush.bf16.msra.mxu0 %v2632_v5  ;;  %3430 = vst [vmem:[#allocation20_spill] sm:$0xff] %v2653_v35  ;;  %v2215_v39 = vld [vmem:[#allocation5 + $0xf4] sm:$0xf0]  ;;  %v2213_v40 = vld [vmem:[#allocation5 + $0xec] sm:$0xf]  ;;  %v2662_v52 = vor.u32 %v2216_v32, %v2036_v36 }
  0x2d   :  { %509 = vmatpush.bf16.msra.mxu2 %v2636_v6  ;;  %v2028_v41 = vld [vmem:[#allocation5 + $0xf8] sm:$0xf0]  ;;  %v2245_v42 = vld [vmem:[#allocation5 + $0x1ec] sm:$0xf]  ;;  %v2034_v48 = vld [vmem:[#allocation5 + $0x100] sm:$0xf]  ;;  %v2665_v55 = vor.u32 %v2215_v39, %v2026_v37 }
  0x2e   :  { %522 = vmatpush.bf16.msra.mxu3 %v2638_v9  ;;  %496 = vmatpush.bf16.msra.mxu1 %v2641_v14  ;;  %v2156_v47 = vld [vmem:[#allocation5 + $0x1f8] sm:$0xf0]  ;;  %v2218_v49 = vld [vmem:[#allocation5 + $0x10c] sm:$0xf0]  ;;  %3431 = vst [vmem:[#allocation21_spill] sm:$0xff] %v2662_v52  ;;  %v2667_v59 = vor.u32 %v2213_v40, %v2028_v41  ;;  %v3354_v39 = vmov 0  }
  0x2f   :  { %v2154_v53 = vld [vmem:[#allocation5 + $0x1e8] sm:$0xf]  ;;  %v2247_v54 = vld [vmem:[#allocation5 + $0x1f4] sm:$0xf0]  ;;  %v2669_v61 = vor.u32 %v2245_v42, %v2156_v47  ;;  %v2671_v63 = vor.u32 %v2218_v49, %v2034_v48  ;;  %v2209_v1 = vld [vmem:[#allocation5 + $0xcc] sm:$0xf] }
  0x30   :  { %484 = vmatpush.bf16.msra.mxu0 %v2644_v23  ;;  %v2010_v60 = vld [vmem:[#allocation5 + $0xc8] sm:$0xf]  ;;  %v2211_v0 = vld [vmem:[#allocation5 + $0xd4] sm:$0xf0]  ;;  %v2012_v2 = vld [vmem:[#allocation5 + $0xd8] sm:$0xf0]  ;;  %v2674_v4 = vor.u32 %v2247_v54, %v2154_v53 }
  0x31   :  { %510 = vmatpush.bf16.msra.mxu2 %v2648_v27  ;;  %3432 = vst [vmem:[#allocation22_spill] sm:$0xff] %v2669_v61  ;;  %v2241_v10 = vld [vmem:[#allocation5 + $0x1cc] sm:$0xf]  ;;  %v2140_v11 = vld [vmem:[#allocation5 + $0x1d8] sm:$0xf0]  ;;  %v2682_v19 = vor.u32 %v2211_v0, %v2010_v60  ;;  %v2684_v20 = vor.u32 %v2209_v1, %v2012_v2 }
  0x32   :  { %523 = vmatpush.bf16.msra.mxu3 %v2650_v28  ;;  %497 = vmatpush.bf16.msra.mxu1 %v2653_v35  ;;  %3433 = vst [vmem:[#allocation23_spill] sm:$0xff] %v2671_v63  ;;  %v2678_v13 = vld [vmem:[#allocation2] sm:$0xf]  ;;  %v2138_v15 = vld [vmem:[#allocation5 + $0x1c8] sm:$0xf]  ;;  %v2688_v24 = vor.u32 %v2241_v10, %v2140_v11 }
  0x33   :  { %3434 = vst [vmem:[#allocation24_spill] sm:$0xff] %v2674_v4  ;;  %v2243_v18 = vld [vmem:[#allocation5 + $0x1d4] sm:$0xf0]  ;;  %v1994_v22 = vld [vmem:[#allocation5 + $0xa8] sm:$0xf] }
  0x34   :  { %485 = vmatpush.bf16.msra.mxu0 %v2656_v43  ;;  %3435 = vst [vmem:[#allocation25_spill] sm:$0xff] %v2688_v24  ;;  %v2207_v26 = vld [vmem:[#allocation5 + $0xb4] sm:$0xf0]  ;;  %v2205_v30 = vld [vmem:[#allocation5 + $0xac] sm:$0xf]  ;;  %v2692_v32 = vor.u32 %v2243_v18, %v2138_v15 }
  0x35   :  { %511 = vmatpush.bf16.msra.mxu2 %v2660_v51  ;;  %v1996_v31 = vld [vmem:[#allocation5 + $0xb8] sm:$0xf0]  ;;  %v2237_v36 = vld [vmem:[#allocation5 + $0x1ac] sm:$0xf]  ;;  %v2122_v40 = vld [vmem:[#allocation5 + $0x1a8] sm:$0xf]  ;;  %v2698_v42 = vor.u32 %v2207_v26, %v1994_v22 }
  0x36   :  { %524 = vmatpush.bf16.msra.mxu3 %v2662_v52  ;;  %498 = vmatpush.bf16.msra.mxu1 %v2671_v63  ;;  %3436 = vst [vmem:[#allocation26_spill] sm:$0xff] %v2692_v32  ;;  %v2124_v37 = vld [vmem:[#allocation5 + $0x1b8] sm:$0xf0]  ;;  %v2239_v41 = vld [vmem:[#allocation5 + $0x1b4] sm:$0xf0]  ;;  %v2700_v47 = vor.u32 %v2205_v30, %v1996_v31 }
  0x37   :  { %486 = vmatmul.bf16.vlgmr.msra.gmra.mxu0 %v2678_v13  ;;  %3437 = vst [vmem:[#allocation27_spill] sm:$0xff] %v2698_v42  ;;  %v1978_v48 = vld [vmem:[#allocation5 + $0x88] sm:$0xf]  ;;  %v2703_v49 = vor.u32 %v2237_v36, %v2124_v37  ;;  %v2203_v53 = vld [vmem:[#allocation5 + $0x94] sm:$0xf0]  ;;  %v2707_v0 = vor.u32 %v2239_v41, %v2122_v40 }
  0x38   :  { %530 = vmatpush.bf16.msrb.mxu0 %v2665_v55  ;;  %512 = vmatmul.bf16.vlgmr.msra.gmra.mxu2 %v2678_v13  ;;  %v2201_v54 = vld [vmem:[#allocation5 + $0x8c] sm:$0xf]  ;;  %v1980_v60 = vld [vmem:[#allocation5 + $0x98] sm:$0xf0]  ;;  %v2106_v10 = vld [vmem:[#allocation5 + $0x188] sm:$0xf]  ;;  %v2711_v15 = vor.u32 %v2203_v53, %v1978_v48 }
  0x39   :  { %556 = vmatpush.bf16.msrb.mxu2 %v2667_v59  ;;  %525 = vmatmul.bf16.vlgmr.msra.gmra.mxu3 %v3354_v39  ;;  %3438 = vst [vmem:[#allocation28_spill] sm:$0xff] %v2703_v49  ;;  %v2233_v1 = vld [vmem:[#allocation5 + $0x18c] sm:$0xf]  ;;  %v2108_v2 = vld [vmem:[#allocation5 + $0x198] sm:$0xf0]  ;;  %v2713_v18 = vor.u32 %v2201_v54, %v1980_v60 }
  0x3a   :  { %569 = vmatpush.bf16.msrb.mxu3 %v2669_v61  ;;  %543 = vmatpush.bf16.msrb.mxu1 %v2674_v4  ;;  %3439 = vst [vmem:[#allocation29_spill] sm:$0xff] %v2707_v0  ;;  %v2235_v11 = vld [vmem:[#allocation5 + $0x194] sm:$0xf0]  ;;  %v1962_v22 = vld [vmem:[#allocation5 + $0x68] sm:$0xf]  ;;  %v2716_v26 = vor.u32 %v2233_v1, %v2108_v2 }
  0x3b   :  { %499 = vmatmul.bf16.vlgmr.msra.gmra.mxu1 %v3354_v39  ;;  %3440 = vst [vmem:[#allocation30_spill] sm:$0xff] %v2711_v15  ;;  %v2199_v30 = vld [vmem:[#allocation5 + $0x74] sm:$0xf0]  ;;  %v2197_v31 = vld [vmem:[#allocation5 + $0x6c] sm:$0xf]  ;;  %v2719_v37 = vor.u32 %v2235_v11, %v2106_v10 }
  0x3c   :  { %531 = vmatpush.bf16.msrb.mxu0 %v2682_v19  ;;  %3441 = vst [vmem:[#allocation31_spill] sm:$0xff] %v2713_v18  ;;  %v1964_v36 = vld [vmem:[#allocation5 + $0x78] sm:$0xf0]  ;;  %v2229_v40 = vld [vmem:[#allocation5 + $0x16c] sm:$0xf]  ;;  %v2723_v48 = vor.u32 %v2199_v30, %v1962_v22 }
  0x3d   :  { %557 = vmatpush.bf16.msrb.mxu2 %v2684_v20  ;;  %3442 = vst [vmem:[#allocation32_spill] sm:$0xff] %v2716_v26  ;;  %v2092_v41 = vld [vmem:[#allocation5 + $0x178] sm:$0xf0]  ;;  %v2090_v39 = vld [vmem:[#allocation5 + $0x168] sm:$0xf]  ;;  %v2725_v53 = vor.u32 %v2197_v31, %v1964_v36 }
  0x3e   :  { %570 = vmatpush.bf16.msrb.mxu3 %v2688_v24  ;;  %544 = vmatpush.bf16.msrb.mxu1 %v2692_v32  ;;  %3443 = vst [vmem:[#allocation33_spill] sm:$0xff] %v2719_v37  ;;  %v1946_v54 = vld [vmem:[#allocation5 + $0x48] sm:$0xf]  ;;  %v2728_v60 = vor.u32 %v2229_v40, %v2092_v41  ;;  %v2195_v1 = vld [vmem:[#allocation5 + $0x54] sm:$0xf0] }
  0x3f   :  { %3444 = vst [vmem:[#allocation34_spill] sm:$0xff] %v2723_v48  ;;  %v2193_v2 = vld [vmem:[#allocation5 + $0x4c] sm:$0xf]  ;;  %v1948_v10 = vld [vmem:[#allocation5 + $0x58] sm:$0xf0]  ;;  %v2735_v22 = vor.u32 %v2195_v1, %v1946_v54 }
  0x40   :  { %532 = vmatpush.bf16.msrb.mxu0 %v2698_v42  ;;  %v2231_v42 = vld [vmem:[#allocation5 + $0x174] sm:$0xf0]  ;;  %3445 = vst [vmem:[#allocation35_spill] sm:$0xff] %v2725_v53  ;;  %v2737_v30 = vor.u32 %v2193_v2, %v1948_v10  ;;  %v1930_v31 = vld [vmem:[#allocation5 + $0x28] sm:$0xf] }
  0x41   :  { %558 = vmatpush.bf16.msrb.mxu2 %v2700_v47  ;;  %3446 = vst [vmem:[#allocation36_spill] sm:$0xff] %v2728_v60  ;;  %v2731_v11 = vor.u32 %v2231_v42, %v2090_v39  ;;  %v2191_v40 = vld [vmem:[#allocation5 + $0x34] sm:$0xf0]  ;;  %v2189_v39 = vld [vmem:[#allocation5 + $0x2c] sm:$0xf] }
  0x42   :  { %571 = vmatpush.bf16.msrb.mxu3 %v2703_v49  ;;  %545 = vmatpush.bf16.msrb.mxu1 %v2707_v0  ;;  %v2225_v49 = vld [vmem:[#allocation5 + $0x14c] sm:$0xf]  ;;  %v2074_v0 = vld [vmem:[#allocation5 + $0x148] sm:$0xf]  ;;  %3448 = vst [vmem:[#allocation38_spill] sm:$0xff] %v2735_v22  ;;  %v2747_v54 = vor.u32 %v2191_v40, %v1930_v31 }
  0x43   :  { %3447 = vst [vmem:[#allocation37_spill] sm:$0xff] %v2731_v11  ;;  %v1932_v42 = vld [vmem:[#allocation5 + $0x38] sm:$0xf0]  ;;  %v2187_v2 = vld [vmem:[#allocation5 + $0x14] sm:$0xf0] }
  0x44   :  { %533 = vmatpush.bf16.msrb.mxu0 %v2711_v15  ;;  %v2076_v15 = vld [vmem:[#allocation5 + $0x158] sm:$0xf0]  ;;  %3449 = vst [vmem:[#allocation39_spill] sm:$0xff] %v2737_v30  ;;  %v2749_v1 = vor.u32 %v2189_v39, %v1932_v42  ;;  %v3464_v42 = vld [vmem:[#allocation32_spill] sm:$0xff] }
  0x45   :  { %559 = vmatpush.bf16.msrb.mxu2 %v2713_v18  ;;  %v2227_v18 = vld [vmem:[#allocation5 + $0x154] sm:$0xf0]  ;;  %v2740_v36 = vor.u32 %v2225_v49, %v2076_v15  ;;  %v1914_v49 = vld [vmem:[#allocation5 + $0x8] sm:$0xf] }
  0x46   :  { %572 = vmatpush.bf16.msrb.mxu3 %v2716_v26  ;;  %546 = vmatpush.bf16.msrb.mxu1 %v2719_v37  ;;  %v2743_v41 = vor.u32 %v2227_v18, %v2074_v0  ;;  %v2221_v26 = vld [vmem:[#allocation5 + $0x12c] sm:$0xf]  ;;  %v2058_v37 = vld [vmem:[#allocation5 + $0x128] sm:$0xf]  ;;  %v1916_v18 = vld [vmem:[#allocation5 + $0x18] sm:$0xf0]  ;;  %v2759_v31 = vor.u32 %v2187_v2, %v1914_v49 }
  0x47   :  { %3450 = vst [vmem:[#allocation40_spill] sm:$0xff] %v2740_v36  ;;  %v2185_v0 = vld [vmem:[#allocation5 + $0xc] sm:$0xf]  ;;  %v3465_v49 = vld [vmem:[#allocation34_spill] sm:$0xff] }
  0x48   :  { %534 = vmatpush.bf16.msrb.mxu0 %v2723_v48  ;;  %3451 = vst [vmem:[#allocation41_spill] sm:$0xff] %v2743_v41  ;;  %v2060_v48 = vld [vmem:[#allocation5 + $0x138] sm:$0xf0]  ;;  %v2761_v40 = vor.u32 %v2185_v0, %v1916_v18  ;;  %v3463_v39 = vld [vmem:[#allocation35_spill] sm:$0xff]  ;;  %v3468_v18 = vld [vmem:[#allocation36_spill] sm:$0xff] }
  0x49   :  { %560 = vmatpush.bf16.msrb.mxu2 %v2725_v53  ;;  %v2223_v53 = vld [vmem:[#allocation5 + $0x134] sm:$0xf0]  ;;  %v2752_v15 = vor.u32 %v2221_v26, %v2060_v48  ;;  %v3456_v48 = vmov 0  }
  0x4a   :  { %573 = vmatpush.bf16.msrb.mxu3 %v2728_v60  ;;  %547 = vmatpush.bf16.msrb.mxu1 %v2731_v11  ;;  %v2755_v10 = vor.u32 %v2223_v53, %v2058_v37  ;;  %v2217_v60 = vld [vmem:[#allocation5 + $0x10c] sm:$0xf]  ;;  %v2042_v11 = vld [vmem:[#allocation5 + $0x108] sm:$0xf]  ;;  %v3458_v53 = vld [vmem:[#allocation29_spill] sm:$0xff] }
  0x4b   :  { %3452 = vst [vmem:[#allocation42_spill] sm:$0xff] %v2752_v15  ;;  %v3466_v2 = vld [vmem:[#allocation37_spill] sm:$0xff]  ;;  %v3467_v0 = vld [vmem:[#allocation39_spill] sm:$0xff] }
  0x4c   :  { %535 = vmatpush.bf16.msrb.mxu0 %v2735_v22  ;;  %3453 = vst [vmem:[#allocation43_spill] sm:$0xff] %v2755_v10  ;;  %v2044_v22 = vld [vmem:[#allocation5 + $0x118] sm:$0xf0] }
  0x4d   :  { %561 = vmatpush.bf16.msrb.mxu2 %v2737_v30  ;;  %v2219_v30 = vld [vmem:[#allocation5 + $0x114] sm:$0xf0]  ;;  %v2764_v26 = vor.u32 %v2217_v60, %v2044_v22  ;;  %v3459_v60 = vld [vmem:[#allocation31_spill] sm:$0xff]  ;;  %v3461_v22 = vld [vmem:[#allocation30_spill] sm:$0xff] }
  0x4e   :  { %574 = vmatpush.bf16.msrb.mxu3 %v2740_v36  ;;  %548 = vmatpush.bf16.msrb.mxu1 %v2743_v41  ;;  %v2767_v37 = vor.u32 %v2219_v30, %v2042_v11  ;;  %v3460_v11 = vld [vmem:[#allocation28_spill] sm:$0xff]  ;;  %v3462_v30 = vld [vmem:[#allocation33_spill] sm:$0xff] }
  0x4f   :  { %3454 = vst [vmem:[#allocation44_spill] sm:$0xff] %v2764_v26 }
  0x50   :  { %536 = vmatpush.bf16.msrb.mxu0 %v2747_v54  ;;  %3455 = vst [vmem:[#allocation45_spill] sm:$0xff] %v2767_v37 }
  0x51   :  { %562 = vmatpush.bf16.msrb.mxu2 %v2749_v1 }
  0x52   :  { %575 = vmatpush.bf16.msrb.mxu3 %v2752_v15  ;;  %549 = vmatpush.bf16.msrb.mxu1 %v2755_v10 }
  0x54   :  { %537 = vmatpush.bf16.msrb.mxu0 %v2759_v31 }
  0x55   :  { %563 = vmatpush.bf16.msrb.mxu2 %v2761_v40 }
  0x56   :  { %576 = vmatpush.bf16.msrb.mxu3 %v2764_v26  ;;  %550 = vmatpush.bf16.msrb.mxu1 %v2767_v37 }
  0x57   :  { %538 = vmatmul.bf16.vlgmr.msrb.gmra.mxu0 %v2678_v13 }
  0x58   :  { %648 = vmatpush.bf16.msra.mxu0 %v2575_v3  ;;  %564 = vmatmul.bf16.vlgmr.msrb.gmra.mxu2 %v2678_v13  ;;  %v3457_v13 = vld [vmem:[#allocation27_spill] sm:$0xff] }
  0x59   :  { %674 = vmatpush.bf16.msra.mxu2 %v2577_v7  ;;  %577 = vmatmul.bf16.vlgmr.msrb.gmra.mxu3 %v3456_v48 }
  0x5a   :  { %661 = vmatpush.bf16.msra.mxu1 %v2582_v12  ;;  %687 = vmatpush.bf16.msra.mxu3 %v2579_v8 }
  0x5b   :  { %551 = vmatmul.bf16.vlgmr.msrb.gmra.mxu1 %v3456_v48  ;;  %v3469_v48 = vld [vmem:[#allocation38_spill] sm:$0xff] }
  0x5c   :  { %649 = vmatpush.bf16.msra.mxu0 %v2586_v16 }
  0x5d   :  { %675 = vmatpush.bf16.msra.mxu2 %v2588_v17 }
  0x5e   :  { %662 = vmatpush.bf16.msra.mxu1 %v2593_v25  ;;  %688 = vmatpush.bf16.msra.mxu3 %v2591_v21 }
  0x60   :  { %650 = vmatpush.bf16.msra.mxu0 %v2596_v29 }
  0x61   :  { %676 = vmatpush.bf16.msra.mxu2 %v2600_v33 }
  0x62   :  { %663 = vmatpush.bf16.msra.mxu1 %v2605_v38  ;;  %689 = vmatpush.bf16.msra.mxu3 %v2602_v34 }
  0x64   :  { %651 = vmatpush.bf16.msra.mxu0 %v2608_v44 }
  0x65   :  { %677 = vmatpush.bf16.msra.mxu2 %v2612_v45 }
  0x66   :  { %664 = vmatpush.bf16.msra.mxu1 %v2617_v50  ;;  %690 = vmatpush.bf16.msra.mxu3 %v2614_v46 }
  0x68   :  { %652 = vmatpush.bf16.msra.mxu0 %v2620_v56 }
  0x69   :  { %678 = vmatpush.bf16.msra.mxu2 %v2624_v57 }
  0x6a   :  { %665 = vmatpush.bf16.msra.mxu1 %v2629_v62  ;;  %691 = vmatpush.bf16.msra.mxu3 %v2626_v58 }
  0x6c   :  { %653 = vmatpush.bf16.msra.mxu0 %v2632_v5 }
  0x6d   :  { %679 = vmatpush.bf16.msra.mxu2 %v2636_v6 }
  0x6e   :  { %666 = vmatpush.bf16.msra.mxu1 %v2641_v14  ;;  %692 = vmatpush.bf16.msra.mxu3 %v2638_v9 }
  0x70   :  { %654 = vmatpush.bf16.msra.mxu0 %v2644_v23 }
  0x71   :  { %680 = vmatpush.bf16.msra.mxu2 %v2648_v27 }
  0x72   :  { %667 = vmatpush.bf16.msra.mxu1 %v2653_v35  ;;  %693 = vmatpush.bf16.msra.mxu3 %v2650_v28 }
  0x74   :  { %655 = vmatpush.bf16.msra.mxu0 %v2656_v43 }
  0x75   :  { %681 = vmatpush.bf16.msra.mxu2 %v2660_v51 }
  0x76   :  { %668 = vmatpush.bf16.msra.mxu1 %v2671_v63  ;;  %694 = vmatpush.bf16.msra.mxu3 %v2662_v52 }
  0x78   :  { %700 = vmatpush.bf16.msrb.mxu0 %v2665_v55 }
  0x79   :  { %726 = vmatpush.bf16.msrb.mxu2 %v2667_v59 }
  0x7a   :  { %713 = vmatpush.bf16.msrb.mxu1 %v2674_v4  ;;  %739 = vmatpush.bf16.msrb.mxu3 %v2669_v61 }
  0x7c   :  { %701 = vmatpush.bf16.msrb.mxu0 %v2682_v19 }
  0x7d   :  { %727 = vmatpush.bf16.msrb.mxu2 %v2684_v20 }
  0x7e   :  { %714 = vmatpush.bf16.msrb.mxu1 %v2692_v32  ;;  %740 = vmatpush.bf16.msrb.mxu3 %v2688_v24 }
  0x80   :  { %702 = vmatpush.bf16.msrb.mxu0 %v3457_v13 }
  0x81   :  { %728 = vmatpush.bf16.msrb.mxu2 %v2700_v47 }
  0x82   :  { %715 = vmatpush.bf16.msrb.mxu1 %v3458_v53  ;;  %741 = vmatpush.bf16.msrb.mxu3 %v3460_v11 }
  0x84   :  { %703 = vmatpush.bf16.msrb.mxu0 %v3461_v22 }
  0x85   :  { %729 = vmatpush.bf16.msrb.mxu2 %v3459_v60 }
  0x86   :  { %716 = vmatpush.bf16.msrb.mxu1 %v3462_v30  ;;  %742 = vmatpush.bf16.msrb.mxu3 %v3464_v42 }
  0x88   :  { %704 = vmatpush.bf16.msrb.mxu0 %v3465_v49 }
  0x89   :  { %730 = vmatpush.bf16.msrb.mxu2 %v3463_v39 }
  0x8a   :  { %717 = vmatpush.bf16.msrb.mxu1 %v3466_v2  ;;  %743 = vmatpush.bf16.msrb.mxu3 %v3468_v18  ;;  %v147_v18 = vld [vmem:[#allocation7] sm:$0xf] }
  0x8b   :  { %v2844_v42 = vperm.slane %v147_v18, 1 }
  0x8c   :  { %705 = vmatpush.bf16.msrb.mxu0 %v3469_v48 }
  0x8d   :  { %731 = vmatpush.bf16.msrb.mxu2 %v3467_v0  ;;  %3471 = vst [vmem:[#allocation31_spill] sm:$0xff] %v2844_v42 }
  0x8e   :  { %718 = vmatpush.bf16.msrb.mxu1 %v2743_v41  ;;  %744 = vmatpush.bf16.msrb.mxu3 %v2740_v36  ;;  %v2841_v41 = vperm.slane %v147_v18, 0 }
  0x90   :  { %706 = vmatpush.bf16.msrb.mxu0 %v2747_v54  ;;  %3470 = vst [vmem:[#allocation27_spill] sm:$0xff] %v2841_v41 }
  0x91   :  { %732 = vmatpush.bf16.msrb.mxu2 %v2749_v1 }
  0x92   :  { %719 = vmatpush.bf16.msrb.mxu1 %v2755_v10  ;;  %745 = vmatpush.bf16.msrb.mxu3 %v2752_v15 }
  0x94   :  { %707 = vmatpush.bf16.msrb.mxu0 %v2759_v31 }
  0x95   :  { %733 = vmatpush.bf16.msrb.mxu2 %v2761_v40 }
  0x96   :  { %720 = vmatpush.bf16.msrb.mxu1 %v2767_v37  ;;  %746 = vmatpush.bf16.msrb.mxu3 %v2764_v26 }
  0xb4   :  { %v487_v2 = vpop.f32.mrf.mxu0 }
  0xb5   :  { %v488_v36 = vadd.f32 %v487_v2, %v2841_v41 }
  0xb8   :  { %v500_v30 = vpop.f32.mrf.mxu1 }
  0xb9   :  { %v501_v10 = vadd.f32 %v500_v30, %v488_v36 }
  0xbb   :  { %v513_v11 = vpop.f32.mrf.mxu2  ;;  %v2160_v53 = vmul.f32 -1.442695, %v501_v10  ;;  %v646_v10 = vld [vmem:[#allocation2 + $0x4] sm:$0xf] }
  0xbc   :  { %v514_v15 = vadd.f32 %v513_v11, %v2844_v42  ;;  %v526_v24 = vpop.f32.mrf.mxu3  ;;  %v489_v37 = vpop.f32.mrf.mxu0  ;;  %682 = vmatmul.bf16.vlgmr.msra.gmra.mxu2 %v646_v10  ;;  %656 = vmatmul.bf16.vlgmr.msra.gmra.mxu0 %v646_v10 }
  0xbd   :  { %2261 = vpow2.f32 %v2160_v53  ;;  %844 = vmatpush.bf16.msra.mxu2 %v2577_v7  ;;  %818 = vmatpush.bf16.msra.mxu0 %v2575_v3 }
  0xbe   :  { %v527_v32 = vadd.f32 %v526_v24, %v514_v15 }
  0xc0   :  { %v2161_v61 = vmul.f32 -1.442695, %v527_v32  ;;  %v502_v26 = vpop.f32.mrf.mxu1 }
  0xc1   :  { %845 = vmatpush.bf16.msra.mxu2 %v2588_v17  ;;  %819 = vmatpush.bf16.msra.mxu0 %v2586_v16 }
  0xc2   :  { %2263 = vpow2.f32 %v2161_v61 }
  0xc3   :  { %v515_v4 = vpop.f32.mrf.mxu2  ;;  %v2262_v52 = vpop.eup %2261 }
  0xc4   :  { %v528_v63 = vpop.f32.mrf.mxu3  ;;  %v585_v28 = vadd.f32 1.0, %v2262_v52  ;;  %v2854_v52 = vperm.slane %v147_v18, 3 }
  0xc5   :  { %v2852_v63 = vperm.slane %v147_v18, 2  ;;  %846 = vmatpush.bf16.msra.mxu2 %v2600_v33  ;;  %820 = vmatpush.bf16.msra.mxu0 %v2596_v29 }
  0xc6   :  { %2265 = vrcp.f32 %v585_v28  ;;  %3472 = vst [vmem:[#allocation30_spill] sm:$0xff] %v2854_v52  ;;  %vm591_vm0 = vweird.f32 %v585_v28 }
  0xc8   :  { %v2264_v2 = vpop.eup %2263 }
  0xc9   :  { %v604_v41 = vadd.f32 1.0, %v2264_v2  ;;  %847 = vmatpush.bf16.msra.mxu2 %v2612_v45  ;;  %821 = vmatpush.bf16.msra.mxu0 %v2608_v44 }
  0xcb   :  { %2267 = vrcp.f32 %v604_v41  ;;  %vm610_vm2 = vweird.f32 %v604_v41 }
  0xcc   :  { %v2847_v36 = vpop.eup %2265  ;;  %734 = vmatmul.bf16.vlgmr.msrb.gmra.mxu2 %v646_v10  ;;  %708 = vmatmul.bf16.vlgmr.msrb.gmra.mxu0 %v646_v10 }
  0xcd   :  { %v587_v61 = vmul.f32 %v2847_v36, %v585_v28  ;;  %vm592_vm1 = vweird.f32 %v2847_v36  ;;  %848 = vmatpush.bf16.msra.mxu2 %v2624_v57  ;;  %822 = vmatpush.bf16.msra.mxu0 %v2620_v56 }
  0xce   :  { %vm2867_vm4 = vmor %vm591_vm0, %vm592_vm1 }
  0xcf   :  { %v588_v15 = vsub.f32 1.0, %v587_v61  ;;  %v595_v61 = vand.u32 2147483647, %v585_v28 }
  0xd1   :  { %v2268_v24 = vpop.eup %2267  ;;  %v589_v18 = vmul.f32 %v2847_v36, %v588_v15  ;;  %v616_v15 = vand.u32 2147483648, %v604_v41  ;;  %vm596_vm6 = vcmp.eq.f32.partialorder %v595_v61, 8.507059e+37  ;;  %849 = vmatpush.bf16.msra.mxu2 %v2636_v6  ;;  %823 = vmatpush.bf16.msra.mxu0 %v2632_v5 }
  0xd2   :  { %v606_v32 = vmul.f32 %v2268_v24, %v604_v41  ;;  %vm611_vm3 = vweird.f32 %v2268_v24 }
  0xd3   :  { %vm2871_vm5 = vmor %vm610_vm2, %vm611_vm3 }
  0xd4   :  { %v539_v30 = vpop.f32.mrf.mxu0  ;;  %v607_v2 = vsub.f32 1.0, %v606_v32 }
  0xd5   :  { %v540_v37 = vadd.f32 %v539_v30, %v2852_v63  ;;  %v597_v30 = vand.u32 2147483648, %v585_v28  ;;  %850 = vmatpush.bf16.msra.mxu2 %v2648_v27  ;;  %824 = vmatpush.bf16.msra.mxu0 %v2644_v23 }
  0xd6   :  { %v608_v16 = vmul.f32 %v2268_v24, %v607_v2 }
  0xd8   :  { %v552_v4 = vpop.f32.mrf.mxu1 }
  0xd9   :  { %v553_v17 = vadd.f32 %v552_v4, %v540_v37  ;;  %v609_v4 = vadd.f32 %v2268_v24, %v608_v16  ;;  %851 = vmatpush.bf16.msra.mxu2 %v2660_v51  ;;  %825 = vmatpush.bf16.msra.mxu0 %v2656_v43 }
  0xdb   :  { %v565_v26 = vpop.f32.mrf.mxu2  ;;  %v613_v16 = vsel %vm2871_vm5, %v2268_v24, %v609_v4 }
  0xdc   :  { %v566_v53 = vadd.f32 %v565_v26, %v2854_v52  ;;  %v578_v11 = vpop.f32.mrf.mxu3  ;;  %v541_v3 = vpop.f32.mrf.mxu0  ;;  %v614_v26 = vand.u32 2147483647, %v604_v41 }
  0xdd   :  { %v590_v3 = vadd.f32 %v2847_v36, %v589_v18  ;;  %896 = vmatpush.bf16.msrb.mxu2 %v2667_v59  ;;  %870 = vmatpush.bf16.msrb.mxu0 %v2665_v55 }
  0xde   :  { %v579_v7 = vadd.f32 %v578_v11, %v566_v53  ;;  %v617_v53 = vor.u32 1.1754944e-38, %v616_v15  ;;  %vm615_vm7 = vcmp.eq.f32.partialorder %v614_v26, 8.507059e+37 }
  0xdf   :  { %v594_v28 = vsel %vm2867_vm4, %v2847_v36, %v590_v3 }
  0xe0   :  { %v554_v42 = vpop.f32.mrf.mxu1  ;;  %v2162_v35 = vmul.f32 -1.442695, %v579_v7  ;;  %v618_v2 = vsel %vm615_vm7, %v617_v53, %v613_v16  ;;  %v3477_v53 = vld [vmem:[#allocation20_spill] sm:$0xff]  ;;  %v3478_v16 = vld [vmem:[#allocation19_spill] sm:$0xff] }
  0xe1   :  { %v640_v36 = vmul.f32 0.0, %v618_v2  ;;  %897 = vmatpush.bf16.msrb.mxu2 %v2684_v20  ;;  %871 = vmatpush.bf16.msrb.mxu0 %v2682_v19  ;;  %v3482_v2 = vld [vmem:[#allocation22_spill] sm:$0xff] }
  0xe2   :  { %2269 = vpow2.f32 %v2162_v35  ;;  %v598_v35 = vor.u32 1.1754944e-38, %v597_v30 }
  0xe3   :  { %v567_v32 = vpop.f32.mrf.mxu2  ;;  %2271 = vtanh.f32 %v553_v17 }
  0xe4   :  { %v580_v7 = vpop.f32.mrf.mxu3  ;;  %v599_v11 = vsel %vm596_vm6, %v598_v35, %v594_v28 }
  0xe5   :  { %898 = vmatpush.bf16.msrb.mxu2 %v2700_v47  ;;  %872 = vmatpush.bf16.msrb.mxu0 %v3457_v13 }
  0xe8   :  { %v2270_v17 = vpop.eup %2269 }
  0xe9   :  { %v624_v41 = vadd.f32 1.0, %v2270_v17  ;;  %v2272_v10 = vpop.eup %2271  ;;  %899 = vmatpush.bf16.msrb.mxu2 %v3459_v60  ;;  %873 = vmatpush.bf16.msrb.mxu0 %v3461_v22 }
  0xea   :  { %v641_v18 = vmul.f32 %v2272_v10, %v599_v11  ;;  %v3480_v10 = vld [vmem:[#allocation21_spill] sm:$0xff]  ;;  %v3481_v11 = vld [vmem:[#allocation24_spill] sm:$0xff] }
  0xeb   :  { %2273 = vrcp.f32 %v624_v41  ;;  %v636_v32 = vand.u32 2147483648, %v624_v41  ;;  %v634_v42 = vand.u32 2147483647, %v624_v41  ;;  %vm630_vm9 = vweird.f32 %v624_v41 }
  0xec   :  { %v2886_v3 = vadd.f32 %v641_v18, %v640_v36  ;;  %v3483_v18 = vld [vmem:[#allocation26_spill] sm:$0xff]  ;;  %v3484_v36 = vld [vmem:[#allocation25_spill] sm:$0xff] }
  0xed   :  { %v637_v4 = vor.u32 1.1754944e-38, %v636_v32  ;;  %vm635_vm11 = vcmp.eq.f32.partialorder %v634_v42, 8.507059e+37  ;;  %900 = vmatpush.bf16.msrb.mxu2 %v3463_v39  ;;  %874 = vmatpush.bf16.msrb.mxu0 %v3465_v49  ;;  %v3488_v32 = vld [vmem:[#allocation32_spill] sm:$0xff] }
  0xee   :  { %2275 = vtanh.f32 %v2886_v3  ;;  %v3490_v42 = vld [vmem:[#allocation36_spill] sm:$0xff] }
  0xf1   :  { %v2274_v30 = vpop.eup %2273  ;;  %901 = vmatpush.bf16.msrb.mxu2 %v3467_v0  ;;  %875 = vmatpush.bf16.msrb.mxu0 %v3469_v48 }
  0xf2   :  { %v626_v24 = vmul.f32 %v2274_v30, %v624_v41  ;;  %vm631_vm8 = vweird.f32 %v2274_v30  ;;  %v3479_v41 = vld [vmem:[#allocation23_spill] sm:$0xff] }
  0xf3   :  { %vm632_vm10 = vmor %vm630_vm9, %vm631_vm8 }
  0xf4   :  { %v627_v61 = vsub.f32 1.0, %v626_v24  ;;  %v2276_v35 = vpop.eup %2275  ;;  %v3486_v24 = vld [vmem:[#allocation28_spill] sm:$0xff] }
  0xf5   :  { %902 = vmatpush.bf16.msrb.mxu2 %v2749_v1  ;;  %876 = vmatpush.bf16.msrb.mxu0 %v2747_v54 }
  0xf6   :  { %v628_v15 = vmul.f32 %v2274_v30, %v627_v61  ;;  %v3487_v61 = vld [vmem:[#allocation33_spill] sm:$0xff] }
  0xf8   :  { %v629_v7 = vadd.f32 %v2274_v30, %v628_v15  ;;  %v3489_v15 = vld [vmem:[#allocation37_spill] sm:$0xff] }
  0xf9   :  { %903 = vmatpush.bf16.msrb.mxu2 %v2761_v40  ;;  %877 = vmatpush.bf16.msrb.mxu0 %v2759_v31 }
  0xfa   :  { %v633_v26 = vsel %vm632_vm10, %v2274_v30, %v629_v7  ;;  %v3485_v30 = vld [vmem:[#allocation29_spill] sm:$0xff] }
  0xfb   :  { %v638_v37 = vsel %vm635_vm11, %v637_v4, %v633_v26  ;;  %v3491_v7 = vld [vmem:[#allocation41_spill] sm:$0xff]  ;;  %v3492_v4 = vld [vmem:[#allocation40_spill] sm:$0xff]  ;;  %v3493_v26 = vld [vmem:[#allocation43_spill] sm:$0xff] }
  0xfc   :  { %v644_v28 = vmul.f32 %v2276_v35, %v638_v37  ;;  %v3494_v35 = vld [vmem:[#allocation42_spill] sm:$0xff]  ;;  %v3495_v37 = vld [vmem:[#allocation45_spill] sm:$0xff] }
  0xfe   :  { %v647_v17 = vpack.c.bf16 %v644_v28, %v644_v28  ;;  %v3496_v28 = vld [vmem:[#allocation44_spill] sm:$0xff] }
 0x100   :  { %669 = vmatmul.bf16.vlgmr.msra.gmra.mxu1 %v647_v17  ;;  %695 = vmatmul.bf16.vlgmr.msra.gmra.mxu3 %v647_v17 }
 0x101   :  { %831 = vmatpush.bf16.msra.mxu1 %v2582_v12  ;;  %857 = vmatpush.bf16.msra.mxu3 %v2579_v8 }
 0x105   :  { %832 = vmatpush.bf16.msra.mxu1 %v2593_v25  ;;  %858 = vmatpush.bf16.msra.mxu3 %v2591_v21 }
 0x109   :  { %833 = vmatpush.bf16.msra.mxu1 %v2605_v38  ;;  %859 = vmatpush.bf16.msra.mxu3 %v2602_v34 }
 0x10d   :  { %834 = vmatpush.bf16.msra.mxu1 %v2617_v50  ;;  %860 = vmatpush.bf16.msra.mxu3 %v2614_v46 }
 0x110   :  { %721 = vmatmul.bf16.vlgmr.msrb.gmra.mxu1 %v647_v17  ;;  %747 = vmatmul.bf16.vlgmr.msrb.gmra.mxu3 %v647_v17 }
 0x111   :  { %835 = vmatpush.bf16.msra.mxu1 %v2629_v62  ;;  %861 = vmatpush.bf16.msra.mxu3 %v2626_v58 }
 0x115   :  { %836 = vmatpush.bf16.msra.mxu1 %v2641_v14  ;;  %862 = vmatpush.bf16.msra.mxu3 %v2638_v9 }
 0x119   :  { %837 = vmatpush.bf16.msra.mxu1 %v3477_v53  ;;  %863 = vmatpush.bf16.msra.mxu3 %v3478_v16 }
 0x11d   :  { %838 = vmatpush.bf16.msra.mxu1 %v3479_v41  ;;  %864 = vmatpush.bf16.msra.mxu3 %v3480_v10 }
 0x121   :  { %883 = vmatpush.bf16.msrb.mxu1 %v3481_v11  ;;  %909 = vmatpush.bf16.msrb.mxu3 %v3482_v2  ;;  %v3498_v11 = vld [vmem:[#allocation31_spill] sm:$0xff] }
 0x125   :  { %884 = vmatpush.bf16.msrb.mxu1 %v3483_v18  ;;  %910 = vmatpush.bf16.msrb.mxu3 %v3484_v36  ;;  %v3497_v18 = vld [vmem:[#allocation27_spill] sm:$0xff] }
 0x129   :  { %885 = vmatpush.bf16.msrb.mxu1 %v3485_v30  ;;  %911 = vmatpush.bf16.msrb.mxu3 %v3486_v24 }
 0x12d   :  { %886 = vmatpush.bf16.msrb.mxu1 %v3487_v61  ;;  %912 = vmatpush.bf16.msrb.mxu3 %v3488_v32 }
 0x131   :  { %887 = vmatpush.bf16.msrb.mxu1 %v3489_v15  ;;  %913 = vmatpush.bf16.msrb.mxu3 %v3490_v42 }
 0x135   :  { %888 = vmatpush.bf16.msrb.mxu1 %v3491_v7  ;;  %914 = vmatpush.bf16.msrb.mxu3 %v3492_v4 }
 0x139   :  { %889 = vmatpush.bf16.msrb.mxu1 %v3493_v26  ;;  %915 = vmatpush.bf16.msrb.mxu3 %v3494_v35  ;;  %v657_v17 = vpop.f32.mrf.mxu0 }
 0x13a   :  { %v658_v7 = vadd.f32 %v657_v17, %v3497_v18 }
 0x13d   :  { %890 = vmatpush.bf16.msrb.mxu1 %v3495_v37  ;;  %916 = vmatpush.bf16.msrb.mxu3 %v3496_v28 }
 0x13f   :  { %v683_v61 = vpop.f32.mrf.mxu2 }
 0x140   :  { %v684_v26 = vadd.f32 %v683_v61, %v3498_v11 }
 0x141   :  { %v659_v24 = vpop.f32.mrf.mxu0 }
 0x147   :  { %v685_v32 = vpop.f32.mrf.mxu2 }
 0x148   :  { %v816_v32 = vld [vmem:[#allocation2 + $0x8] sm:$0xf] }
 0x149   :  { %v709_v15 = vpop.f32.mrf.mxu0  ;;  %852 = vmatmul.bf16.vlgmr.msra.gmra.mxu2 %v816_v32  ;;  %826 = vmatmul.bf16.vlgmr.msra.gmra.mxu0 %v816_v32 }
 0x14a   :  { %v710_v17 = vadd.f32 %v709_v15, %v2852_v63 }
 0x14f   :  { %v735_v30 = vpop.f32.mrf.mxu2 }
 0x151   :  { %v711_v42 = vpop.f32.mrf.mxu0 }
 0x152   :  { %v3500_v42 = vld [vmem:[#allocation15_spill] sm:$0xff] }
 0x153   :  { %988 = vmatpush.bf16.msra.mxu0 %v3500_v42 }
 0x157   :  { %v737_v36 = vpop.f32.mrf.mxu2 }
 0x158   :  { %v3499_v36 = vld [vmem:[#allocation16_spill] sm:$0xff] }
 0x159   :  { %1014 = vmatpush.bf16.msra.mxu2 %v3499_v36  ;;  %878 = vmatmul.bf16.vlgmr.msrb.gmra.mxu0 %v816_v32 }
 0x15a   :  { %904 = vmatmul.bf16.vlgmr.msrb.gmra.mxu2 %v816_v32 }
 0x17d   :  { %v670_v2 = vpop.f32.mrf.mxu1 }
 0x17e   :  { %v671_v4 = vadd.f32 %v670_v2, %v658_v7 }
 0x180   :  { %v2163_v10 = vmul.f32 -1.442695, %v671_v4  ;;  %v3501_v4 = vld [vmem:[#allocation18_spill] sm:$0xff] }
 0x181   :  { %1015 = vmatpush.bf16.msra.mxu2 %v3501_v4 }
 0x182   :  { %2277 = vpow2.f32 %v2163_v10  ;;  %v736_v10 = vadd.f32 %v735_v30, %v2854_v52 }
 0x183   :  { %v696_v35 = vpop.f32.mrf.mxu3 }
 0x184   :  { %v697_v37 = vadd.f32 %v696_v35, %v684_v26 }
 0x185   :  { %v672_v41 = vpop.f32.mrf.mxu1  ;;  %1016 = vmatpush.bf16.msra.mxu2 %v2600_v33 }
 0x186   :  { %v2164_v28 = vmul.f32 -1.442695, %v697_v37  ;;  %v3502_v41 = vld [vmem:[#allocation17_spill] sm:$0xff] }
 0x187   :  { %989 = vmatpush.bf16.msra.mxu0 %v3502_v41 }
 0x188   :  { %v2278_v16 = vpop.eup %2277  ;;  %2279 = vpow2.f32 %v2164_v28 }
 0x189   :  { %v755_v24 = vadd.f32 1.0, %v2278_v16  ;;  %1017 = vmatpush.bf16.msra.mxu2 %v2612_v45 }
 0x18b   :  { %2281 = vrcp.f32 %v755_v24  ;;  %v698_v53 = vpop.f32.mrf.mxu3  ;;  %990 = vmatpush.bf16.msra.mxu0 %v2596_v29  ;;  %v767_v15 = vand.u32 2147483648, %v755_v24  ;;  %vm761_vm14 = vweird.f32 %v755_v24 }
 0x18d   :  { %v722_v2 = vpop.f32.mrf.mxu1  ;;  %1018 = vmatpush.bf16.msra.mxu2 %v2624_v57 }
 0x18e   :  { %v2280_v61 = vpop.eup %2279  ;;  %v723_v4 = vadd.f32 %v722_v2, %v710_v17 }
 0x18f   :  { %v774_v7 = vadd.f32 1.0, %v2280_v61  ;;  %991 = vmatpush.bf16.msra.mxu0 %v2608_v44 }
 0x191   :  { %v2282_v26 = vpop.eup %2281  ;;  %2283 = vrcp.f32 %v774_v7  ;;  %vm780_vm15 = vweird.f32 %v774_v7  ;;  %1019 = vmatpush.bf16.msra.mxu2 %v2636_v6 }
 0x192   :  { %v757_v16 = vmul.f32 %v2282_v26, %v755_v24  ;;  %vm762_vm12 = vweird.f32 %v2282_v26 }
 0x193   :  { %v748_v35 = vpop.f32.mrf.mxu3  ;;  %992 = vmatpush.bf16.msra.mxu0 %v2620_v56  ;;  %vm2953_vm0 = vmor %vm761_vm14, %vm762_vm12 }
 0x194   :  { %v758_v53 = vsub.f32 1.0, %v757_v16  ;;  %v749_v37 = vadd.f32 %v748_v35, %v736_v10  ;;  %v786_v16 = vand.u32 2147483648, %v774_v7 }
 0x195   :  { %v724_v28 = vpop.f32.mrf.mxu1  ;;  %1020 = vmatpush.bf16.msra.mxu2 %v2648_v27 }
 0x196   :  { %v2165_v61 = vmul.f32 -1.442695, %v749_v37  ;;  %v759_v30 = vmul.f32 %v2282_v26, %v758_v53  ;;  %v784_v37 = vand.u32 2147483647, %v774_v7  ;;  %v765_v53 = vand.u32 2147483647, %v755_v24 }
 0x197   :  { %v2284_v42 = vpop.eup %2283  ;;  %v787_v32 = vor.u32 1.1754944e-38, %v786_v16  ;;  %993 = vmatpush.bf16.msra.mxu0 %v2632_v5 }
 0x198   :  { %v776_v52 = vmul.f32 %v2284_v42, %v774_v7  ;;  %2285 = vpow2.f32 %v2165_v61  ;;  %v760_v10 = vadd.f32 %v2282_v26, %v759_v30  ;;  %vm781_vm13 = vweird.f32 %v2284_v42 }
 0x199   :  { %2287 = vtanh.f32 %v723_v4  ;;  %vm782_vm1 = vmor %vm780_vm15, %vm781_vm13  ;;  %v768_v30 = vor.u32 1.1754944e-38, %v767_v15  ;;  %vm785_vm2 = vcmp.eq.f32.partialorder %v784_v37, 8.507059e+37  ;;  %vm766_vm3 = vcmp.eq.f32.partialorder %v765_v53, 8.507059e+37  ;;  %1021 = vmatpush.bf16.msra.mxu2 %v2660_v51 }
 0x19a   :  { %v777_v41 = vsub.f32 1.0, %v776_v52 }
 0x19b   :  { %v750_v35 = vpop.f32.mrf.mxu3  ;;  %994 = vmatpush.bf16.msra.mxu0 %v2644_v23 }
 0x19c   :  { %v778_v28 = vmul.f32 %v2284_v42, %v777_v41  ;;  %v764_v41 = vsel %vm2953_vm0, %v2282_v26, %v760_v10 }
 0x19d   :  { %v769_v7 = vsel %vm766_vm3, %v768_v30, %v764_v41  ;;  %1066 = vmatpush.bf16.msrb.mxu2 %v2667_v59 }
 0x19e   :  { %v2286_v61 = vpop.eup %2285  ;;  %v779_v2 = vadd.f32 %v2284_v42, %v778_v28 }
 0x19f   :  { %v794_v17 = vadd.f32 1.0, %v2286_v61  ;;  %v2288_v4 = vpop.eup %2287  ;;  %995 = vmatpush.bf16.msra.mxu0 %v2656_v43 }
 0x1a0   :  { %v783_v35 = vsel %vm782_vm1, %v2284_v42, %v779_v2  ;;  %v811_v26 = vmul.f32 %v2288_v4, %v769_v7  ;;  %v3507_v7 = vld [vmem:[#allocation23_spill] sm:$0xff]  ;;  %v3509_v4 = vld [vmem:[#allocation24_spill] sm:$0xff] }
 0x1a1   :  { %v788_v24 = vsel %vm785_vm2, %v787_v32, %v783_v35  ;;  %2289 = vrcp.f32 %v794_v17  ;;  %v804_v53 = vand.u32 2147483647, %v794_v17  ;;  %1067 = vmatpush.bf16.msrb.mxu2 %v2684_v20  ;;  %vm800_vm5 = vweird.f32 %v794_v17 }
 0x1a2   :  { %v810_v28 = vmul.f32 %v788_v24, %v2886_v3  ;;  %v806_v3 = vand.u32 2147483648, %v794_v17  ;;  %v3506_v24 = vld [vmem:[#allocation19_spill] sm:$0xff] }
 0x1a3   :  { %1040 = vmatpush.bf16.msrb.mxu0 %v2665_v55  ;;  %vm805_vm7 = vcmp.eq.f32.partialorder %v804_v53, 8.507059e+37  ;;  %v3516_v53 = vld [vmem:[#allocation32_spill] sm:$0xff] }
 0x1a4   :  { %v2964_v10 = vadd.f32 %v811_v26, %v810_v28  ;;  %v807_v52 = vor.u32 1.1754944e-38, %v806_v3  ;;  %v3508_v28 = vld [vmem:[#allocation21_spill] sm:$0xff]  ;;  %v3510_v26 = vld [vmem:[#allocation22_spill] sm:$0xff]  ;;  %v3514_v3 = vld [vmem:[#allocation28_spill] sm:$0xff] }
 0x1a5   :  { %1068 = vmatpush.bf16.msrb.mxu2 %v2700_v47 }
 0x1a6   :  { %2291 = vtanh.f32 %v2964_v10 }
 0x1a7   :  { %v2290_v16 = vpop.eup %2289  ;;  %1041 = vmatpush.bf16.msrb.mxu0 %v2682_v19 }
 0x1a8   :  { %v796_v42 = vmul.f32 %v2290_v16, %v794_v17  ;;  %vm801_vm4 = vweird.f32 %v2290_v16  ;;  %v3505_v17 = vld [vmem:[#allocation20_spill] sm:$0xff] }
 0x1a9   :  { %vm802_vm6 = vmor %vm800_vm5, %vm801_vm4  ;;  %1069 = vmatpush.bf16.msrb.mxu2 %v3459_v60 }
 0x1aa   :  { %v797_v15 = vsub.f32 1.0, %v796_v42  ;;  %v3512_v42 = vld [vmem:[#allocation25_spill] sm:$0xff] }
 0x1ab   :  { %1042 = vmatpush.bf16.msrb.mxu0 %v3457_v13 }
 0x1ac   :  { %v798_v37 = vmul.f32 %v2290_v16, %v797_v15  ;;  %v2292_v32 = vpop.eup %2291  ;;  %v3513_v15 = vld [vmem:[#allocation29_spill] sm:$0xff] }
 0x1ad   :  { %1070 = vmatpush.bf16.msrb.mxu2 %v3463_v39 }
 0x1ae   :  { %v799_v61 = vadd.f32 %v2290_v16, %v798_v37  ;;  %v3515_v37 = vld [vmem:[#allocation33_spill] sm:$0xff] }
 0x1af   :  { %1043 = vmatpush.bf16.msrb.mxu0 %v3461_v22 }
 0x1b0   :  { %v803_v2 = vsel %vm802_vm6, %v2290_v16, %v799_v61  ;;  %v3511_v16 = vld [vmem:[#allocation26_spill] sm:$0xff]  ;;  %v3517_v61 = vld [vmem:[#allocation37_spill] sm:$0xff] }
 0x1b1   :  { %v808_v41 = vsel %vm805_vm7, %v807_v52, %v803_v2  ;;  %1071 = vmatpush.bf16.msrb.mxu2 %v3467_v0  ;;  %v3518_v52 = vld [vmem:[#allocation36_spill] sm:$0xff]  ;;  %v3519_v2 = vld [vmem:[#allocation41_spill] sm:$0xff] }
 0x1b2   :  { %v814_v30 = vmul.f32 %v2292_v32, %v808_v41  ;;  %v3520_v32 = vld [vmem:[#allocation40_spill] sm:$0xff]  ;;  %v3521_v41 = vld [vmem:[#allocation43_spill] sm:$0xff] }
 0x1b3   :  { %1044 = vmatpush.bf16.msrb.mxu0 %v3465_v49 }
 0x1b4   :  { %v817_v35 = vpack.c.bf16 %v814_v30, %v814_v30  ;;  %v3522_v30 = vld [vmem:[#allocation42_spill] sm:$0xff] }
 0x1b5   :  { %1072 = vmatpush.bf16.msrb.mxu2 %v2749_v1 }
 0x1b6   :  { %839 = vmatmul.bf16.vlgmr.msra.gmra.mxu1 %v817_v35  ;;  %865 = vmatmul.bf16.vlgmr.msra.gmra.mxu3 %v817_v35 }
 0x1b7   :  { %1001 = vmatpush.bf16.msra.mxu1 %v2582_v12  ;;  %1027 = vmatpush.bf16.msra.mxu3 %v2579_v8 }
 0x1b8   :  { %1045 = vmatpush.bf16.msrb.mxu0 %v3469_v48 }
 0x1b9   :  { %1073 = vmatpush.bf16.msrb.mxu2 %v2761_v40 }
 0x1bb   :  { %1002 = vmatpush.bf16.msra.mxu1 %v2593_v25  ;;  %1028 = vmatpush.bf16.msra.mxu3 %v2591_v21 }
 0x1bc   :  { %1046 = vmatpush.bf16.msrb.mxu0 %v2747_v54 }
 0x1bf   :  { %1003 = vmatpush.bf16.msra.mxu1 %v2605_v38  ;;  %1029 = vmatpush.bf16.msra.mxu3 %v2602_v34 }
 0x1c0   :  { %1047 = vmatpush.bf16.msrb.mxu0 %v2759_v31 }
 0x1c3   :  { %1004 = vmatpush.bf16.msra.mxu1 %v2617_v50  ;;  %1030 = vmatpush.bf16.msra.mxu3 %v2614_v46 }
 0x1c6   :  { %891 = vmatmul.bf16.vlgmr.msrb.gmra.mxu1 %v817_v35  ;;  %917 = vmatmul.bf16.vlgmr.msrb.gmra.mxu3 %v817_v35  ;;  %v3523_v35 = vld [vmem:[#allocation45_spill] sm:$0xff] }
 0x1c7   :  { %1005 = vmatpush.bf16.msra.mxu1 %v2629_v62  ;;  %1031 = vmatpush.bf16.msra.mxu3 %v2626_v58 }
 0x1cb   :  { %1006 = vmatpush.bf16.msra.mxu1 %v2641_v14  ;;  %1032 = vmatpush.bf16.msra.mxu3 %v2638_v9 }
 0x1cf   :  { %1007 = vmatpush.bf16.msra.mxu1 %v3505_v17  ;;  %1033 = vmatpush.bf16.msra.mxu3 %v3506_v24 }
 0x1d3   :  { %1008 = vmatpush.bf16.msra.mxu1 %v3507_v7  ;;  %1034 = vmatpush.bf16.msra.mxu3 %v3508_v28 }
 0x1d7   :  { %1053 = vmatpush.bf16.msrb.mxu1 %v3509_v4  ;;  %1079 = vmatpush.bf16.msrb.mxu3 %v3510_v26 }
 0x1db   :  { %1054 = vmatpush.bf16.msrb.mxu1 %v3511_v16  ;;  %1080 = vmatpush.bf16.msrb.mxu3 %v3512_v42 }
 0x1df   :  { %1055 = vmatpush.bf16.msrb.mxu1 %v3513_v15  ;;  %1081 = vmatpush.bf16.msrb.mxu3 %v3514_v3  ;;  %v3524_v15 = vld [vmem:[#allocation44_spill] sm:$0xff]  ;;  %v827_v3 = vpop.f32.mrf.mxu0 }
 0x1e3   :  { %1056 = vmatpush.bf16.msrb.mxu1 %v3515_v37  ;;  %1082 = vmatpush.bf16.msrb.mxu3 %v3516_v53  ;;  %v853_v37 = vpop.f32.mrf.mxu2 }
 0x1e7   :  { %1057 = vmatpush.bf16.msrb.mxu1 %v3517_v61  ;;  %1083 = vmatpush.bf16.msrb.mxu3 %v3518_v52  ;;  %v829_v42 = vpop.f32.mrf.mxu0 }
 0x1eb   :  { %1058 = vmatpush.bf16.msrb.mxu1 %v3519_v2  ;;  %1084 = vmatpush.bf16.msrb.mxu3 %v3520_v32  ;;  %v855_v53 = vpop.f32.mrf.mxu2  ;;  %v828_v2 = vadd.f32 %v827_v3, %v3497_v18 }
 0x1ec   :  { %v986_v53 = vld [vmem:[#allocation2 + $0xc] sm:$0xf] }
 0x1ed   :  { %1022 = vmatmul.bf16.vlgmr.msra.gmra.mxu2 %v986_v53  ;;  %996 = vmatmul.bf16.vlgmr.msra.gmra.mxu0 %v986_v53 }
 0x1ee   :  { %1184 = vmatpush.bf16.msra.mxu2 %v3499_v36 }
 0x1ef   :  { %1059 = vmatpush.bf16.msrb.mxu1 %v3521_v41  ;;  %1085 = vmatpush.bf16.msrb.mxu3 %v3522_v30  ;;  %v879_v61 = vpop.f32.mrf.mxu0  ;;  %v854_v41 = vadd.f32 %v853_v37, %v3498_v11 }
 0x1f3   :  { %1060 = vmatpush.bf16.msrb.mxu1 %v3523_v35  ;;  %1086 = vmatpush.bf16.msrb.mxu3 %v3524_v15  ;;  %v905_v16 = vpop.f32.mrf.mxu2 }
 0x1f7   :  { %v881_v52 = vpop.f32.mrf.mxu0 }
 0x1fb   :  { %v907_v26 = vpop.f32.mrf.mxu2 }
 0x1fc   :  { %v3525_v26 = vld [vmem:[#allocation15_spill] sm:$0xff] }
 0x1fd   :  { %1158 = vmatpush.bf16.msra.mxu0 %v3525_v26  ;;  %1074 = vmatmul.bf16.vlgmr.msrb.gmra.mxu2 %v986_v53 }
 0x1fe   :  { %1048 = vmatmul.bf16.vlgmr.msrb.gmra.mxu0 %v986_v53 }
 0x233   :  { %v840_v4 = vpop.f32.mrf.mxu1 }
 0x234   :  { %v841_v32 = vadd.f32 %v840_v4, %v828_v2  ;;  %v3527_v2 = vld [vmem:[#allocation18_spill] sm:$0xff] }
 0x235   :  { %1185 = vmatpush.bf16.msra.mxu2 %v3527_v2 }
 0x236   :  { %v2166_v28 = vmul.f32 -1.442695, %v841_v32 }
 0x238   :  { %2293 = vpow2.f32 %v2166_v28  ;;  %v3526_v28 = vld [vmem:[#allocation30_spill] sm:$0xff] }
 0x239   :  { %v866_v30 = vpop.f32.mrf.mxu3  ;;  %v906_v52 = vadd.f32 %v905_v16, %v3526_v28  ;;  %1186 = vmatpush.bf16.msra.mxu2 %v2600_v33 }
 0x23a   :  { %v867_v35 = vadd.f32 %v866_v30, %v854_v41 }
 0x23b   :  { %v842_v7 = vpop.f32.mrf.mxu1 }
 0x23c   :  { %v2167_v15 = vmul.f32 -1.442695, %v867_v35  ;;  %v3528_v7 = vld [vmem:[#allocation17_spill] sm:$0xff]  ;;  %v880_v35 = vadd.f32 %v879_v61, %v2852_v63 }
 0x23d   :  { %1159 = vmatpush.bf16.msra.mxu0 %v3528_v7  ;;  %1187 = vmatpush.bf16.msra.mxu2 %v2612_v45 }
 0x23e   :  { %v2294_v24 = vpop.eup %2293  ;;  %2295 = vpow2.f32 %v2167_v15 }
 0x23f   :  { %v925_v42 = vadd.f32 1.0, %v2294_v24 }
 0x241   :  { %2297 = vrcp.f32 %v925_v42  ;;  %v868_v17 = vpop.f32.mrf.mxu3  ;;  %1160 = vmatpush.bf16.msra.mxu0 %v2596_v29  ;;  %v937_v61 = vand.u32 2147483648, %v925_v42  ;;  %1188 = vmatpush.bf16.msra.mxu2 %v2624_v57  ;;  %vm931_vm10 = vweird.f32 %v925_v42 }
 0x243   :  { %v892_v4 = vpop.f32.mrf.mxu1 }
 0x244   :  { %v2296_v3 = vpop.eup %2295  ;;  %v893_v2 = vadd.f32 %v892_v4, %v880_v35 }
 0x245   :  { %v944_v37 = vadd.f32 1.0, %v2296_v3  ;;  %1161 = vmatpush.bf16.msra.mxu0 %v2608_v44  ;;  %1189 = vmatpush.bf16.msra.mxu2 %v2636_v6 }
 0x247   :  { %v2298_v15 = vpop.eup %2297  ;;  %2299 = vrcp.f32 %v944_v37  ;;  %vm950_vm11 = vweird.f32 %v944_v37 }
 0x248   :  { %v927_v24 = vmul.f32 %v2298_v15, %v925_v42  ;;  %vm932_vm8 = vweird.f32 %v2298_v15 }
 0x249   :  { %v918_v32 = vpop.f32.mrf.mxu3  ;;  %1162 = vmatpush.bf16.msra.mxu0 %v2620_v56  ;;  %vm3031_vm12 = vmor %vm931_vm10, %vm932_vm8  ;;  %1190 = vmatpush.bf16.msra.mxu2 %v2648_v27 }
 0x24a   :  { %v928_v17 = vsub.f32 1.0, %v927_v24  ;;  %v919_v41 = vadd.f32 %v918_v32, %v906_v52  ;;  %v956_v24 = vand.u32 2147483648, %v944_v37 }
 0x24b   :  { %v894_v30 = vpop.f32.mrf.mxu1 }
 0x24c   :  { %v2168_v3 = vmul.f32 -1.442695, %v919_v41  ;;  %v929_v16 = vmul.f32 %v2298_v15, %v928_v17  ;;  %v954_v41 = vand.u32 2147483647, %v944_v37  ;;  %v935_v17 = vand.u32 2147483647, %v925_v42 }
 0x24d   :  { %v2300_v26 = vpop.eup %2299  ;;  %v957_v53 = vor.u32 1.1754944e-38, %v956_v24  ;;  %1163 = vmatpush.bf16.msra.mxu0 %v2632_v5  ;;  %1191 = vmatpush.bf16.msra.mxu2 %v2660_v51 }
 0x24e   :  { %v946_v28 = vmul.f32 %v2300_v26, %v944_v37  ;;  %2301 = vpow2.f32 %v2168_v3  ;;  %v930_v52 = vadd.f32 %v2298_v15, %v929_v16  ;;  %vm951_vm9 = vweird.f32 %v2300_v26 }
 0x24f   :  { %2303 = vtanh.f32 %v893_v2  ;;  %vm952_vm13 = vmor %vm950_vm11, %vm951_vm9  ;;  %v938_v16 = vor.u32 1.1754944e-38, %v937_v61  ;;  %vm955_vm14 = vcmp.eq.f32.partialorder %v954_v41, 8.507059e+37  ;;  %vm936_vm15 = vcmp.eq.f32.partialorder %v935_v17, 8.507059e+37 }
 0x250   :  { %v947_v7 = vsub.f32 1.0, %v946_v28 }
 0x251   :  { %v920_v32 = vpop.f32.mrf.mxu3  ;;  %1164 = vmatpush.bf16.msra.mxu0 %v2644_v23  ;;  %1236 = vmatpush.bf16.msrb.mxu2 %v2667_v59 }
 0x252   :  { %v948_v30 = vmul.f32 %v2300_v26, %v947_v7  ;;  %v934_v7 = vsel %vm3031_vm12, %v2298_v15, %v930_v52 }
 0x253   :  { %v939_v37 = vsel %vm936_vm15, %v938_v16, %v934_v7 }
 0x254   :  { %v2302_v3 = vpop.eup %2301  ;;  %v949_v28 = vadd.f32 %v2300_v26, %v948_v30 }
 0x255   :  { %v964_v35 = vadd.f32 1.0, %v2302_v3  ;;  %v2304_v2 = vpop.eup %2303  ;;  %1165 = vmatpush.bf16.msra.mxu0 %v2656_v43  ;;  %1237 = vmatpush.bf16.msrb.mxu2 %v2684_v20 }
 0x256   :  { %v953_v32 = vsel %vm952_vm13, %v2300_v26, %v949_v28  ;;  %v981_v15 = vmul.f32 %v2304_v2, %v939_v37  ;;  %v3533_v37 = vld [vmem:[#allocation23_spill] sm:$0xff]  ;;  %v3535_v2 = vld [vmem:[#allocation24_spill] sm:$0xff] }
 0x257   :  { %v958_v42 = vsel %vm955_vm14, %v957_v53, %v953_v32  ;;  %2305 = vrcp.f32 %v964_v35  ;;  %v974_v17 = vand.u32 2147483647, %v964_v35  ;;  %vm970_vm1 = vweird.f32 %v964_v35 }
 0x258   :  { %v980_v30 = vmul.f32 %v958_v42, %v2964_v10  ;;  %v976_v10 = vand.u32 2147483648, %v964_v35  ;;  %v3532_v42 = vld [vmem:[#allocation19_spill] sm:$0xff] }
 0x259   :  { %1210 = vmatpush.bf16.msrb.mxu0 %v2665_v55  ;;  %vm975_vm3 = vcmp.eq.f32.partialorder %v974_v17, 8.507059e+37  ;;  %1238 = vmatpush.bf16.msrb.mxu2 %v2700_v47  ;;  %v3542_v17 = vld [vmem:[#allocation32_spill] sm:$0xff] }
 0x25a   :  { %v3042_v52 = vadd.f32 %v981_v15, %v980_v30  ;;  %v977_v4 = vor.u32 1.1754944e-38, %v976_v10  ;;  %v3534_v30 = vld [vmem:[#allocation21_spill] sm:$0xff]  ;;  %v3536_v15 = vld [vmem:[#allocation22_spill] sm:$0xff]  ;;  %v3540_v10 = vld [vmem:[#allocation28_spill] sm:$0xff] }
 0x25c   :  { %2307 = vtanh.f32 %v3042_v52 }
 0x25d   :  { %v2306_v24 = vpop.eup %2305  ;;  %1211 = vmatpush.bf16.msrb.mxu0 %v2682_v19  ;;  %1239 = vmatpush.bf16.msrb.mxu2 %v3459_v60 }
 0x25e   :  { %v966_v26 = vmul.f32 %v2306_v24, %v964_v35  ;;  %vm971_vm0 = vweird.f32 %v2306_v24  ;;  %v3531_v35 = vld [vmem:[#allocation20_spill] sm:$0xff] }
 0x25f   :  { %vm972_vm2 = vmor %vm970_vm1, %vm971_vm0 }
 0x260   :  { %v967_v61 = vsub.f32 1.0, %v966_v26  ;;  %v3538_v26 = vld [vmem:[#allocation25_spill] sm:$0xff] }
 0x261   :  { %1212 = vmatpush.bf16.msrb.mxu0 %v3457_v13  ;;  %1240 = vmatpush.bf16.msrb.mxu2 %v3463_v39 }
 0x262   :  { %v968_v41 = vmul.f32 %v2306_v24, %v967_v61  ;;  %v2308_v53 = vpop.eup %2307  ;;  %v3539_v61 = vld [vmem:[#allocation29_spill] sm:$0xff] }
 0x264   :  { %v969_v3 = vadd.f32 %v2306_v24, %v968_v41  ;;  %v3541_v41 = vld [vmem:[#allocation33_spill] sm:$0xff] }
 0x265   :  { %1213 = vmatpush.bf16.msrb.mxu0 %v3461_v22  ;;  %1241 = vmatpush.bf16.msrb.mxu2 %v3467_v0 }
 0x266   :  { %v973_v28 = vsel %vm972_vm2, %v2306_v24, %v969_v3  ;;  %v3537_v24 = vld [vmem:[#allocation26_spill] sm:$0xff]  ;;  %v3543_v3 = vld [vmem:[#allocation37_spill] sm:$0xff] }
 0x267   :  { %v978_v7 = vsel %vm975_vm3, %v977_v4, %v973_v28  ;;  %v3544_v4 = vld [vmem:[#allocation36_spill] sm:$0xff]  ;;  %v3545_v28 = vld [vmem:[#allocation41_spill] sm:$0xff] }
 0x268   :  { %v984_v16 = vmul.f32 %v2308_v53, %v978_v7  ;;  %v3546_v53 = vld [vmem:[#allocation40_spill] sm:$0xff]  ;;  %v3547_v7 = vld [vmem:[#allocation43_spill] sm:$0xff] }
 0x269   :  { %1214 = vmatpush.bf16.msrb.mxu0 %v3465_v49  ;;  %1242 = vmatpush.bf16.msrb.mxu2 %v2749_v1 }
 0x26a   :  { %v987_v32 = vpack.c.bf16 %v984_v16, %v984_v16  ;;  %v3548_v16 = vld [vmem:[#allocation42_spill] sm:$0xff] }
 0x26c   :  { %1009 = vmatmul.bf16.vlgmr.msra.gmra.mxu1 %v987_v32  ;;  %1035 = vmatmul.bf16.vlgmr.msra.gmra.mxu3 %v987_v32 }
 0x26d   :  { %1171 = vmatpush.bf16.msra.mxu1 %v2582_v12  ;;  %1197 = vmatpush.bf16.msra.mxu3 %v2579_v8 }
 0x26e   :  { %1215 = vmatpush.bf16.msrb.mxu0 %v3469_v48  ;;  %1243 = vmatpush.bf16.msrb.mxu2 %v2761_v40 }
 0x271   :  { %1172 = vmatpush.bf16.msra.mxu1 %v2593_v25  ;;  %1198 = vmatpush.bf16.msra.mxu3 %v2591_v21 }
 0x272   :  { %1216 = vmatpush.bf16.msrb.mxu0 %v2747_v54 }
 0x275   :  { %1173 = vmatpush.bf16.msra.mxu1 %v2605_v38  ;;  %1199 = vmatpush.bf16.msra.mxu3 %v2602_v34 }
 0x276   :  { %1217 = vmatpush.bf16.msrb.mxu0 %v2759_v31 }
 0x279   :  { %1174 = vmatpush.bf16.msra.mxu1 %v2617_v50  ;;  %1200 = vmatpush.bf16.msra.mxu3 %v2614_v46 }
 0x27c   :  { %1061 = vmatmul.bf16.vlgmr.msrb.gmra.mxu1 %v987_v32  ;;  %1087 = vmatmul.bf16.vlgmr.msrb.gmra.mxu3 %v987_v32  ;;  %v3549_v32 = vld [vmem:[#allocation45_spill] sm:$0xff] }
 0x27d   :  { %1175 = vmatpush.bf16.msra.mxu1 %v2629_v62  ;;  %1201 = vmatpush.bf16.msra.mxu3 %v2626_v58 }
 0x281   :  { %1176 = vmatpush.bf16.msra.mxu1 %v2641_v14  ;;  %1202 = vmatpush.bf16.msra.mxu3 %v2638_v9 }
 0x285   :  { %1177 = vmatpush.bf16.msra.mxu1 %v3531_v35  ;;  %1203 = vmatpush.bf16.msra.mxu3 %v3532_v42 }
 0x289   :  { %1178 = vmatpush.bf16.msra.mxu1 %v3533_v37  ;;  %1204 = vmatpush.bf16.msra.mxu3 %v3534_v30 }
 0x28d   :  { %1223 = vmatpush.bf16.msrb.mxu1 %v3535_v2  ;;  %1249 = vmatpush.bf16.msrb.mxu3 %v3536_v15 }
 0x291   :  { %1224 = vmatpush.bf16.msrb.mxu1 %v3537_v24  ;;  %1250 = vmatpush.bf16.msrb.mxu3 %v3538_v26 }
 0x295   :  { %1225 = vmatpush.bf16.msrb.mxu1 %v3539_v61  ;;  %1251 = vmatpush.bf16.msrb.mxu3 %v3540_v10  ;;  %v3550_v61 = vld [vmem:[#allocation44_spill] sm:$0xff]  ;;  %v997_v10 = vpop.f32.mrf.mxu0 }
 0x299   :  { %1226 = vmatpush.bf16.msrb.mxu1 %v3541_v41  ;;  %1252 = vmatpush.bf16.msrb.mxu3 %v3542_v17  ;;  %v1023_v41 = vpop.f32.mrf.mxu2 }
 0x29d   :  { %1227 = vmatpush.bf16.msrb.mxu1 %v3543_v3  ;;  %1253 = vmatpush.bf16.msrb.mxu3 %v3544_v4  ;;  %v999_v26 = vpop.f32.mrf.mxu0 }
 0x2a1   :  { %1228 = vmatpush.bf16.msrb.mxu1 %v3545_v28  ;;  %1254 = vmatpush.bf16.msrb.mxu3 %v3546_v53  ;;  %v1025_v17 = vpop.f32.mrf.mxu2  ;;  %v998_v28 = vadd.f32 %v997_v10, %v3497_v18 }
 0x2a2   :  { %v1156_v17 = vld [vmem:[#allocation2 + $0x10] sm:$0xf] }
 0x2a3   :  { %1192 = vmatmul.bf16.vlgmr.msra.gmra.mxu2 %v1156_v17  ;;  %1166 = vmatmul.bf16.vlgmr.msra.gmra.mxu0 %v1156_v17 }
 0x2a4   :  { %1354 = vmatpush.bf16.msra.mxu2 %v3499_v36 }
 0x2a5   :  { %1229 = vmatpush.bf16.msrb.mxu1 %v3547_v7  ;;  %1255 = vmatpush.bf16.msrb.mxu3 %v3548_v16  ;;  %v1049_v3 = vpop.f32.mrf.mxu0  ;;  %v1024_v7 = vadd.f32 %v1023_v41, %v3498_v11 }
 0x2a9   :  { %1230 = vmatpush.bf16.msrb.mxu1 %v3549_v32  ;;  %1256 = vmatpush.bf16.msrb.mxu3 %v3550_v61  ;;  %v1075_v24 = vpop.f32.mrf.mxu2 }
 0x2ad   :  { %v1051_v4 = vpop.f32.mrf.mxu0 }
 0x2b1   :  { %v1077_v15 = vpop.f32.mrf.mxu2 }
 0x2b2   :  { %v3551_v15 = vld [vmem:[#allocation15_spill] sm:$0xff] }
 0x2b3   :  { %1328 = vmatpush.bf16.msra.mxu0 %v3551_v15  ;;  %1244 = vmatmul.bf16.vlgmr.msrb.gmra.mxu2 %v1156_v17 }
 0x2b4   :  { %1218 = vmatmul.bf16.vlgmr.msrb.gmra.mxu0 %v1156_v17 }
 0x2e9   :  { %v1010_v2 = vpop.f32.mrf.mxu1 }
 0x2ea   :  { %v1011_v53 = vadd.f32 %v1010_v2, %v998_v28  ;;  %v3553_v28 = vld [vmem:[#allocation18_spill] sm:$0xff] }
 0x2eb   :  { %1355 = vmatpush.bf16.msra.mxu2 %v3553_v28 }
 0x2ec   :  { %v2169_v30 = vmul.f32 -1.442695, %v1011_v53 }
 0x2ee   :  { %2309 = vpow2.f32 %v2169_v30  ;;  %v3552_v30 = vld [vmem:[#allocation30_spill] sm:$0xff] }
 0x2ef   :  { %v1036_v16 = vpop.f32.mrf.mxu3  ;;  %v1076_v4 = vadd.f32 %v1075_v24, %v3552_v30  ;;  %1356 = vmatpush.bf16.msra.mxu2 %v2600_v33 }
 0x2f0   :  { %v1037_v32 = vadd.f32 %v1036_v16, %v1024_v7 }
 0x2f1   :  { %v1012_v37 = vpop.f32.mrf.mxu1 }
 0x2f2   :  { %v2170_v61 = vmul.f32 -1.442695, %v1037_v32  ;;  %v3554_v37 = vld [vmem:[#allocation17_spill] sm:$0xff]  ;;  %v1050_v32 = vadd.f32 %v1049_v3, %v2852_v63 }
 0x2f3   :  { %1329 = vmatpush.bf16.msra.mxu0 %v3554_v37  ;;  %1357 = vmatpush.bf16.msra.mxu2 %v2612_v45 }
 0x2f4   :  { %v2310_v42 = vpop.eup %2309  ;;  %2311 = vpow2.f32 %v2170_v61 }
 0x2f5   :  { %v1095_v26 = vadd.f32 1.0, %v2310_v42 }
 0x2f7   :  { %2313 = vrcp.f32 %v1095_v26  ;;  %v1038_v35 = vpop.f32.mrf.mxu3  ;;  %1330 = vmatpush.bf16.msra.mxu0 %v2596_v29  ;;  %v1107_v3 = vand.u32 2147483648, %v1095_v26  ;;  %1358 = vmatpush.bf16.msra.mxu2 %v2624_v57  ;;  %vm1101_vm6 = vweird.f32 %v1095_v26 }
 0x2f9   :  { %v1062_v2 = vpop.f32.mrf.mxu1 }
 0x2fa   :  { %v2312_v10 = vpop.eup %2311  ;;  %v1063_v28 = vadd.f32 %v1062_v2, %v1050_v32 }
 0x2fb   :  { %v1114_v41 = vadd.f32 1.0, %v2312_v10  ;;  %1331 = vmatpush.bf16.msra.mxu0 %v2608_v44  ;;  %1359 = vmatpush.bf16.msra.mxu2 %v2636_v6 }
 0x2fd   :  { %v2314_v61 = vpop.eup %2313  ;;  %2315 = vrcp.f32 %v1114_v41  ;;  %vm1120_vm7 = vweird.f32 %v1114_v41 }
 0x2fe   :  { %v1097_v42 = vmul.f32 %v2314_v61, %v1095_v26  ;;  %vm1102_vm4 = vweird.f32 %v2314_v61 }
 0x2ff   :  { %v1088_v53 = vpop.f32.mrf.mxu3  ;;  %1332 = vmatpush.bf16.msra.mxu0 %v2620_v56  ;;  %vm3109_vm8 = vmor %vm1101_vm6, %vm1102_vm4  ;;  %1360 = vmatpush.bf16.msra.mxu2 %v2648_v27 }
 0x300   :  { %v1098_v35 = vsub.f32 1.0, %v1097_v42  ;;  %v1089_v7 = vadd.f32 %v1088_v53, %v1076_v4  ;;  %v1126_v42 = vand.u32 2147483648, %v1114_v41 }
 0x301   :  { %v1064_v16 = vpop.f32.mrf.mxu1 }
 0x302   :  { %v2171_v10 = vmul.f32 -1.442695, %v1089_v7  ;;  %v1099_v24 = vmul.f32 %v2314_v61, %v1098_v35  ;;  %v1124_v7 = vand.u32 2147483647, %v1114_v41  ;;  %v1105_v35 = vand.u32 2147483647, %v1095_v26 }
 0x303   :  { %v2316_v15 = vpop.eup %2315  ;;  %v1127_v17 = vor.u32 1.1754944e-38, %v1126_v42  ;;  %1333 = vmatpush.bf16.msra.mxu0 %v2632_v5  ;;  %1361 = vmatpush.bf16.msra.mxu2 %v2660_v51 }
 0x304   :  { %v1116_v30 = vmul.f32 %v2316_v15, %v1114_v41  ;;  %2317 = vpow2.f32 %v2171_v10  ;;  %v1100_v4 = vadd.f32 %v2314_v61, %v1099_v24  ;;  %vm1121_vm5 = vweird.f32 %v2316_v15 }
 0x305   :  { %2319 = vtanh.f32 %v1063_v28  ;;  %vm1122_vm9 = vmor %vm1120_vm7, %vm1121_vm5  ;;  %v1108_v24 = vor.u32 1.1754944e-38, %v1107_v3  ;;  %vm1125_vm10 = vcmp.eq.f32.partialorder %v1124_v7, 8.507059e+37  ;;  %vm1106_vm11 = vcmp.eq.f32.partialorder %v1105_v35, 8.507059e+37 }
 0x306   :  { %v1117_v37 = vsub.f32 1.0, %v1116_v30 }
 0x307   :  { %v1090_v53 = vpop.f32.mrf.mxu3  ;;  %1334 = vmatpush.bf16.msra.mxu0 %v2644_v23  ;;  %1406 = vmatpush.bf16.msrb.mxu2 %v2667_v59 }
 0x308   :  { %v1118_v16 = vmul.f32 %v2316_v15, %v1117_v37  ;;  %v1104_v37 = vsel %vm3109_vm8, %v2314_v61, %v1100_v4 }
 0x309   :  { %v1109_v41 = vsel %vm1106_vm11, %v1108_v24, %v1104_v37 }
 0x30a   :  { %v2318_v10 = vpop.eup %2317  ;;  %v1119_v30 = vadd.f32 %v2316_v15, %v1118_v16 }
 0x30b   :  { %v1134_v32 = vadd.f32 1.0, %v2318_v10  ;;  %v2320_v28 = vpop.eup %2319  ;;  %1335 = vmatpush.bf16.msra.mxu0 %v2656_v43  ;;  %1407 = vmatpush.bf16.msrb.mxu2 %v2684_v20 }
 0x30c   :  { %v1123_v53 = vsel %vm1122_vm9, %v2316_v15, %v1119_v30  ;;  %v1151_v61 = vmul.f32 %v2320_v28, %v1109_v41  ;;  %v3559_v41 = vld [vmem:[#allocation23_spill] sm:$0xff]  ;;  %v3561_v28 = vld [vmem:[#allocation24_spill] sm:$0xff] }
 0x30d   :  { %v1128_v26 = vsel %vm1125_vm10, %v1127_v17, %v1123_v53  ;;  %2321 = vrcp.f32 %v1134_v32  ;;  %v1144_v35 = vand.u32 2147483647, %v1134_v32  ;;  %vm1140_vm13 = vweird.f32 %v1134_v32 }
 0x30e   :  { %v1150_v16 = vmul.f32 %v1128_v26, %v3042_v52  ;;  %v1146_v52 = vand.u32 2147483648, %v1134_v32  ;;  %v3558_v26 = vld [vmem:[#allocation19_spill] sm:$0xff] }
 0x30f   :  { %1380 = vmatpush.bf16.msrb.mxu0 %v2665_v55  ;;  %vm1145_vm15 = vcmp.eq.f32.partialorder %v1144_v35, 8.507059e+37  ;;  %1408 = vmatpush.bf16.msrb.mxu2 %v2700_v47  ;;  %v3568_v35 = vld [vmem:[#allocation32_spill] sm:$0xff] }
 0x310   :  { %v3120_v4 = vadd.f32 %v1151_v61, %v1150_v16  ;;  %v1147_v2 = vor.u32 1.1754944e-38, %v1146_v52  ;;  %v3560_v16 = vld [vmem:[#allocation21_spill] sm:$0xff]  ;;  %v3562_v61 = vld [vmem:[#allocation22_spill] sm:$0xff]  ;;  %v3566_v52 = vld [vmem:[#allocation28_spill] sm:$0xff] }
 0x312   :  { %2323 = vtanh.f32 %v3120_v4 }
 0x313   :  { %v2322_v42 = vpop.eup %2321  ;;  %1381 = vmatpush.bf16.msrb.mxu0 %v2682_v19  ;;  %1409 = vmatpush.bf16.msrb.mxu2 %v3459_v60 }
 0x314   :  { %v1136_v15 = vmul.f32 %v2322_v42, %v1134_v32  ;;  %vm1141_vm12 = vweird.f32 %v2322_v42  ;;  %v3557_v32 = vld [vmem:[#allocation20_spill] sm:$0xff] }
 0x315   :  { %vm1142_vm14 = vmor %vm1140_vm13, %vm1141_vm12 }
 0x316   :  { %v1137_v3 = vsub.f32 1.0, %v1136_v15  ;;  %v3564_v15 = vld [vmem:[#allocation25_spill] sm:$0xff] }
 0x317   :  { %1382 = vmatpush.bf16.msrb.mxu0 %v3457_v13  ;;  %1410 = vmatpush.bf16.msrb.mxu2 %v3463_v39 }
 0x318   :  { %v1138_v7 = vmul.f32 %v2322_v42, %v1137_v3  ;;  %v2324_v17 = vpop.eup %2323  ;;  %v3565_v3 = vld [vmem:[#allocation29_spill] sm:$0xff] }
 0x31a   :  { %v1139_v10 = vadd.f32 %v2322_v42, %v1138_v7  ;;  %v3567_v7 = vld [vmem:[#allocation33_spill] sm:$0xff] }
 0x31b   :  { %1383 = vmatpush.bf16.msrb.mxu0 %v3461_v22  ;;  %1411 = vmatpush.bf16.msrb.mxu2 %v3467_v0 }
 0x31c   :  { %v1143_v30 = vsel %vm1142_vm14, %v2322_v42, %v1139_v10  ;;  %v3563_v42 = vld [vmem:[#allocation26_spill] sm:$0xff]  ;;  %v3569_v10 = vld [vmem:[#allocation37_spill] sm:$0xff] }
 0x31d   :  { %v1148_v37 = vsel %vm1145_vm15, %v1147_v2, %v1143_v30  ;;  %v3570_v2 = vld [vmem:[#allocation36_spill] sm:$0xff]  ;;  %v3571_v30 = vld [vmem:[#allocation41_spill] sm:$0xff] }
 0x31e   :  { %v1154_v24 = vmul.f32 %v2324_v17, %v1148_v37  ;;  %v3572_v17 = vld [vmem:[#allocation40_spill] sm:$0xff]  ;;  %v3573_v37 = vld [vmem:[#allocation43_spill] sm:$0xff] }
 0x31f   :  { %1384 = vmatpush.bf16.msrb.mxu0 %v3465_v49  ;;  %1412 = vmatpush.bf16.msrb.mxu2 %v2749_v1 }
 0x320   :  { %v1157_v53 = vpack.c.bf16 %v1154_v24, %v1154_v24  ;;  %v3574_v24 = vld [vmem:[#allocation42_spill] sm:$0xff] }
 0x322   :  { %1179 = vmatmul.bf16.vlgmr.msra.gmra.mxu1 %v1157_v53  ;;  %1205 = vmatmul.bf16.vlgmr.msra.gmra.mxu3 %v1157_v53 }
 0x323   :  { %1341 = vmatpush.bf16.msra.mxu1 %v2582_v12  ;;  %1367 = vmatpush.bf16.msra.mxu3 %v2579_v8 }
 0x324   :  { %1385 = vmatpush.bf16.msrb.mxu0 %v3469_v48  ;;  %1413 = vmatpush.bf16.msrb.mxu2 %v2761_v40 }
 0x327   :  { %1342 = vmatpush.bf16.msra.mxu1 %v2593_v25  ;;  %1368 = vmatpush.bf16.msra.mxu3 %v2591_v21 }
 0x328   :  { %1386 = vmatpush.bf16.msrb.mxu0 %v2747_v54 }
 0x32b   :  { %1343 = vmatpush.bf16.msra.mxu1 %v2605_v38  ;;  %1369 = vmatpush.bf16.msra.mxu3 %v2602_v34 }
 0x32c   :  { %1387 = vmatpush.bf16.msrb.mxu0 %v2759_v31 }
 0x32f   :  { %1344 = vmatpush.bf16.msra.mxu1 %v2617_v50  ;;  %1370 = vmatpush.bf16.msra.mxu3 %v2614_v46 }
 0x332   :  { %1231 = vmatmul.bf16.vlgmr.msrb.gmra.mxu1 %v1157_v53  ;;  %1257 = vmatmul.bf16.vlgmr.msrb.gmra.mxu3 %v1157_v53  ;;  %v3575_v53 = vld [vmem:[#allocation45_spill] sm:$0xff] }
 0x333   :  { %1345 = vmatpush.bf16.msra.mxu1 %v2629_v62  ;;  %1371 = vmatpush.bf16.msra.mxu3 %v2626_v58 }
 0x337   :  { %1346 = vmatpush.bf16.msra.mxu1 %v2641_v14  ;;  %1372 = vmatpush.bf16.msra.mxu3 %v2638_v9 }
 0x33b   :  { %1347 = vmatpush.bf16.msra.mxu1 %v3557_v32  ;;  %1373 = vmatpush.bf16.msra.mxu3 %v3558_v26 }
 0x33f   :  { %1348 = vmatpush.bf16.msra.mxu1 %v3559_v41  ;;  %1374 = vmatpush.bf16.msra.mxu3 %v3560_v16 }
 0x343   :  { %1393 = vmatpush.bf16.msrb.mxu1 %v3561_v28  ;;  %1419 = vmatpush.bf16.msrb.mxu3 %v3562_v61 }
 0x347   :  { %1394 = vmatpush.bf16.msrb.mxu1 %v3563_v42  ;;  %1420 = vmatpush.bf16.msrb.mxu3 %v3564_v15 }
 0x34b   :  { %1395 = vmatpush.bf16.msrb.mxu1 %v3565_v3  ;;  %1421 = vmatpush.bf16.msrb.mxu3 %v3566_v52  ;;  %v3576_v3 = vld [vmem:[#allocation44_spill] sm:$0xff]  ;;  %v1167_v52 = vpop.f32.mrf.mxu0 }
 0x34f   :  { %1396 = vmatpush.bf16.msrb.mxu1 %v3567_v7  ;;  %1422 = vmatpush.bf16.msrb.mxu3 %v3568_v35  ;;  %v1193_v7 = vpop.f32.mrf.mxu2 }
 0x353   :  { %1397 = vmatpush.bf16.msrb.mxu1 %v3569_v10  ;;  %1423 = vmatpush.bf16.msrb.mxu3 %v3570_v2  ;;  %v1169_v15 = vpop.f32.mrf.mxu0 }
 0x357   :  { %1398 = vmatpush.bf16.msrb.mxu1 %v3571_v30  ;;  %1424 = vmatpush.bf16.msrb.mxu3 %v3572_v17  ;;  %v1195_v35 = vpop.f32.mrf.mxu2  ;;  %v1168_v30 = vadd.f32 %v1167_v52, %v3497_v18 }
 0x358   :  { %v1326_v35 = vld [vmem:[#allocation2 + $0x14] sm:$0xf] }
 0x359   :  { %1362 = vmatmul.bf16.vlgmr.msra.gmra.mxu2 %v1326_v35  ;;  %1336 = vmatmul.bf16.vlgmr.msra.gmra.mxu0 %v1326_v35 }
 0x35a   :  { %1524 = vmatpush.bf16.msra.mxu2 %v3499_v36 }
 0x35b   :  { %1399 = vmatpush.bf16.msrb.mxu1 %v3573_v37  ;;  %1425 = vmatpush.bf16.msrb.mxu3 %v3574_v24  ;;  %v1219_v10 = vpop.f32.mrf.mxu0  ;;  %v1194_v37 = vadd.f32 %v1193_v7, %v3498_v11 }
 0x35f   :  { %1400 = vmatpush.bf16.msrb.mxu1 %v3575_v53  ;;  %1426 = vmatpush.bf16.msrb.mxu3 %v3576_v3  ;;  %v1245_v42 = vpop.f32.mrf.mxu2 }
 0x363   :  { %v1221_v2 = vpop.f32.mrf.mxu0 }
 0x367   :  { %v1247_v61 = vpop.f32.mrf.mxu2 }
 0x368   :  { %v3577_v61 = vld [vmem:[#allocation15_spill] sm:$0xff] }
 0x369   :  { %1498 = vmatpush.bf16.msra.mxu0 %v3577_v61  ;;  %1414 = vmatmul.bf16.vlgmr.msrb.gmra.mxu2 %v1326_v35 }
 0x36a   :  { %1388 = vmatmul.bf16.vlgmr.msrb.gmra.mxu0 %v1326_v35 }
 0x39f   :  { %v1180_v28 = vpop.f32.mrf.mxu1 }
 0x3a0   :  { %v1181_v17 = vadd.f32 %v1180_v28, %v1168_v30  ;;  %v3579_v30 = vld [vmem:[#allocation18_spill] sm:$0xff] }
 0x3a1   :  { %1525 = vmatpush.bf16.msra.mxu2 %v3579_v30 }
 0x3a2   :  { %v2172_v16 = vmul.f32 -1.442695, %v1181_v17 }
 0x3a4   :  { %2325 = vpow2.f32 %v2172_v16  ;;  %v3578_v16 = vld [vmem:[#allocation30_spill] sm:$0xff] }
 0x3a5   :  { %v1206_v24 = vpop.f32.mrf.mxu3  ;;  %v1246_v2 = vadd.f32 %v1245_v42, %v3578_v16  ;;  %1526 = vmatpush.bf16.msra.mxu2 %v2600_v33 }
 0x3a6   :  { %v1207_v53 = vadd.f32 %v1206_v24, %v1194_v37 }
 0x3a7   :  { %v1182_v41 = vpop.f32.mrf.mxu1 }
 0x3a8   :  { %v2173_v3 = vmul.f32 -1.442695, %v1207_v53  ;;  %v3580_v41 = vld [vmem:[#allocation17_spill] sm:$0xff]  ;;  %v1220_v53 = vadd.f32 %v1219_v10, %v2852_v63 }
 0x3a9   :  { %1499 = vmatpush.bf16.msra.mxu0 %v3580_v41  ;;  %1527 = vmatpush.bf16.msra.mxu2 %v2612_v45 }
 0x3aa   :  { %v2326_v26 = vpop.eup %2325  ;;  %2327 = vpow2.f32 %v2173_v3 }
 0x3ab   :  { %v1265_v15 = vadd.f32 1.0, %v2326_v26 }
 0x3ad   :  { %2329 = vrcp.f32 %v1265_v15  ;;  %v1208_v32 = vpop.f32.mrf.mxu3  ;;  %1500 = vmatpush.bf16.msra.mxu0 %v2596_v29  ;;  %v1277_v10 = vand.u32 2147483648, %v1265_v15  ;;  %1528 = vmatpush.bf16.msra.mxu2 %v2624_v57  ;;  %vm1271_vm2 = vweird.f32 %v1265_v15 }
 0x3af   :  { %v1232_v28 = vpop.f32.mrf.mxu1 }
 0x3b0   :  { %v2328_v52 = vpop.eup %2327  ;;  %v1233_v30 = vadd.f32 %v1232_v28, %v1220_v53 }
 0x3b1   :  { %v1284_v7 = vadd.f32 1.0, %v2328_v52  ;;  %1501 = vmatpush.bf16.msra.mxu0 %v2608_v44  ;;  %1529 = vmatpush.bf16.msra.mxu2 %v2636_v6 }
 0x3b3   :  { %v2330_v3 = vpop.eup %2329  ;;  %2331 = vrcp.f32 %v1284_v7  ;;  %vm1290_vm3 = vweird.f32 %v1284_v7 }
 0x3b4   :  { %v1267_v26 = vmul.f32 %v2330_v3, %v1265_v15  ;;  %vm1272_vm0 = vweird.f32 %v2330_v3 }
 0x3b5   :  { %v1258_v17 = vpop.f32.mrf.mxu3  ;;  %1502 = vmatpush.bf16.msra.mxu0 %v2620_v56  ;;  %vm3187_vm4 = vmor %vm1271_vm2, %vm1272_vm0  ;;  %1530 = vmatpush.bf16.msra.mxu2 %v2648_v27 }
 0x3b6   :  { %v1268_v32 = vsub.f32 1.0, %v1267_v26  ;;  %v1259_v37 = vadd.f32 %v1258_v17, %v1246_v2  ;;  %v1296_v26 = vand.u32 2147483648, %v1284_v7 }
 0x3b7   :  { %v1234_v24 = vpop.f32.mrf.mxu1 }
 0x3b8   :  { %v2174_v52 = vmul.f32 -1.442695, %v1259_v37  ;;  %v1269_v42 = vmul.f32 %v2330_v3, %v1268_v32  ;;  %v1294_v37 = vand.u32 2147483647, %v1284_v7  ;;  %v1275_v32 = vand.u32 2147483647, %v1265_v15 }
 0x3b9   :  { %v2332_v61 = vpop.eup %2331  ;;  %v1297_v35 = vor.u32 1.1754944e-38, %v1296_v26  ;;  %1503 = vmatpush.bf16.msra.mxu0 %v2632_v5  ;;  %1531 = vmatpush.bf16.msra.mxu2 %v2660_v51 }
 0x3ba   :  { %v1286_v16 = vmul.f32 %v2332_v61, %v1284_v7  ;;  %2333 = vpow2.f32 %v2174_v52  ;;  %v1270_v2 = vadd.f32 %v2330_v3, %v1269_v42  ;;  %vm1291_vm1 = vweird.f32 %v2332_v61 }
 0x3bb   :  { %2335 = vtanh.f32 %v1233_v30  ;;  %vm1292_vm5 = vmor %vm1290_vm3, %vm1291_vm1  ;;  %v1278_v42 = vor.u32 1.1754944e-38, %v1277_v10  ;;  %vm1295_vm6 = vcmp.eq.f32.partialorder %v1294_v37, 8.507059e+37  ;;  %vm1276_vm7 = vcmp.eq.f32.partialorder %v1275_v32, 8.507059e+37 }
 0x3bc   :  { %v1287_v41 = vsub.f32 1.0, %v1286_v16 }
 0x3bd   :  { %v1260_v17 = vpop.f32.mrf.mxu3  ;;  %1504 = vmatpush.bf16.msra.mxu0 %v2644_v23  ;;  %1576 = vmatpush.bf16.msrb.mxu2 %v2667_v59 }
 0x3be   :  { %v1288_v24 = vmul.f32 %v2332_v61, %v1287_v41  ;;  %v1274_v41 = vsel %vm3187_vm4, %v2330_v3, %v1270_v2 }
 0x3bf   :  { %v1279_v7 = vsel %vm1276_vm7, %v1278_v42, %v1274_v41 }
 0x3c0   :  { %v2334_v52 = vpop.eup %2333  ;;  %v1289_v16 = vadd.f32 %v2332_v61, %v1288_v24 }
 0x3c1   :  { %v1304_v53 = vadd.f32 1.0, %v2334_v52  ;;  %v2336_v30 = vpop.eup %2335  ;;  %1505 = vmatpush.bf16.msra.mxu0 %v2656_v43  ;;  %1577 = vmatpush.bf16.msrb.mxu2 %v2684_v20 }
 0x3c2   :  { %v1293_v17 = vsel %vm1292_vm5, %v2332_v61, %v1289_v16  ;;  %v1321_v3 = vmul.f32 %v2336_v30, %v1279_v7  ;;  %v3585_v7 = vld [vmem:[#allocation23_spill] sm:$0xff]  ;;  %v3587_v30 = vld [vmem:[#allocation24_spill] sm:$0xff] }
 0x3c3   :  { %v1298_v15 = vsel %vm1295_vm6, %v1297_v35, %v1293_v17  ;;  %2337 = vrcp.f32 %v1304_v53  ;;  %v1314_v32 = vand.u32 2147483647, %v1304_v53  ;;  %vm1310_vm9 = vweird.f32 %v1304_v53 }
 0x3c4   :  { %v1320_v24 = vmul.f32 %v1298_v15, %v3120_v4  ;;  %v1316_v4 = vand.u32 2147483648, %v1304_v53  ;;  %v3584_v15 = vld [vmem:[#allocation19_spill] sm:$0xff] }
 0x3c5   :  { %1550 = vmatpush.bf16.msrb.mxu0 %v2665_v55  ;;  %vm1315_vm11 = vcmp.eq.f32.partialorder %v1314_v32, 8.507059e+37  ;;  %1578 = vmatpush.bf16.msrb.mxu2 %v2700_v47  ;;  %v3594_v32 = vld [vmem:[#allocation32_spill] sm:$0xff] }
 0x3c6   :  { %v3198_v2 = vadd.f32 %v1321_v3, %v1320_v24  ;;  %v1317_v28 = vor.u32 1.1754944e-38, %v1316_v4  ;;  %v3586_v24 = vld [vmem:[#allocation21_spill] sm:$0xff]  ;;  %v3588_v3 = vld [vmem:[#allocation22_spill] sm:$0xff]  ;;  %v3592_v4 = vld [vmem:[#allocation28_spill] sm:$0xff] }
 0x3c8   :  { %2339 = vtanh.f32 %v3198_v2 }
 0x3c9   :  { %v2338_v26 = vpop.eup %2337  ;;  %1551 = vmatpush.bf16.msrb.mxu0 %v2682_v19  ;;  %1579 = vmatpush.bf16.msrb.mxu2 %v3459_v60 }
 0x3ca   :  { %v1306_v61 = vmul.f32 %v2338_v26, %v1304_v53  ;;  %vm1311_vm8 = vweird.f32 %v2338_v26  ;;  %v3583_v53 = vld [vmem:[#allocation20_spill] sm:$0xff] }
 0x3cb   :  { %vm1312_vm10 = vmor %vm1310_vm9, %vm1311_vm8 }
 0x3cc   :  { %v1307_v10 = vsub.f32 1.0, %v1306_v61  ;;  %v3590_v61 = vld [vmem:[#allocation25_spill] sm:$0xff] }
 0x3cd   :  { %1552 = vmatpush.bf16.msrb.mxu0 %v3457_v13  ;;  %1580 = vmatpush.bf16.msrb.mxu2 %v3463_v39 }
 0x3ce   :  { %v1308_v37 = vmul.f32 %v2338_v26, %v1307_v10  ;;  %v2340_v35 = vpop.eup %2339  ;;  %v3591_v10 = vld [vmem:[#allocation29_spill] sm:$0xff] }
 0x3d0   :  { %v1309_v52 = vadd.f32 %v2338_v26, %v1308_v37  ;;  %v3593_v37 = vld [vmem:[#allocation33_spill] sm:$0xff] }
 0x3d1   :  { %1553 = vmatpush.bf16.msrb.mxu0 %v3461_v22  ;;  %1581 = vmatpush.bf16.msrb.mxu2 %v3467_v0 }
 0x3d2   :  { %v1313_v16 = vsel %vm1312_vm10, %v2338_v26, %v1309_v52  ;;  %v3589_v26 = vld [vmem:[#allocation26_spill] sm:$0xff]  ;;  %v3595_v52 = vld [vmem:[#allocation37_spill] sm:$0xff] }
 0x3d3   :  { %v1318_v41 = vsel %vm1315_vm11, %v1317_v28, %v1313_v16  ;;  %v3596_v28 = vld [vmem:[#allocation36_spill] sm:$0xff]  ;;  %v3597_v16 = vld [vmem:[#allocation41_spill] sm:$0xff] }
 0x3d4   :  { %v1324_v42 = vmul.f32 %v2340_v35, %v1318_v41  ;;  %v3598_v35 = vld [vmem:[#allocation40_spill] sm:$0xff]  ;;  %v3599_v41 = vld [vmem:[#allocation43_spill] sm:$0xff] }
 0x3d5   :  { %1554 = vmatpush.bf16.msrb.mxu0 %v3465_v49  ;;  %1582 = vmatpush.bf16.msrb.mxu2 %v2749_v1 }
 0x3d6   :  { %v1327_v17 = vpack.c.bf16 %v1324_v42, %v1324_v42  ;;  %v3600_v42 = vld [vmem:[#allocation42_spill] sm:$0xff] }
 0x3d8   :  { %1349 = vmatmul.bf16.vlgmr.msra.gmra.mxu1 %v1327_v17  ;;  %1375 = vmatmul.bf16.vlgmr.msra.gmra.mxu3 %v1327_v17 }
 0x3d9   :  { %1511 = vmatpush.bf16.msra.mxu1 %v2582_v12  ;;  %1537 = vmatpush.bf16.msra.mxu3 %v2579_v8 }
 0x3da   :  { %1555 = vmatpush.bf16.msrb.mxu0 %v3469_v48  ;;  %1583 = vmatpush.bf16.msrb.mxu2 %v2761_v40 }
 0x3dd   :  { %1512 = vmatpush.bf16.msra.mxu1 %v2593_v25  ;;  %1538 = vmatpush.bf16.msra.mxu3 %v2591_v21 }
 0x3de   :  { %1556 = vmatpush.bf16.msrb.mxu0 %v2747_v54 }
 0x3e1   :  { %1513 = vmatpush.bf16.msra.mxu1 %v2605_v38  ;;  %1539 = vmatpush.bf16.msra.mxu3 %v2602_v34 }
 0x3e2   :  { %1557 = vmatpush.bf16.msrb.mxu0 %v2759_v31 }
 0x3e5   :  { %1514 = vmatpush.bf16.msra.mxu1 %v2617_v50  ;;  %1540 = vmatpush.bf16.msra.mxu3 %v2614_v46 }
 0x3e8   :  { %1401 = vmatmul.bf16.vlgmr.msrb.gmra.mxu1 %v1327_v17  ;;  %1427 = vmatmul.bf16.vlgmr.msrb.gmra.mxu3 %v1327_v17  ;;  %v3601_v17 = vld [vmem:[#allocation45_spill] sm:$0xff] }
 0x3e9   :  { %1515 = vmatpush.bf16.msra.mxu1 %v2629_v62  ;;  %1541 = vmatpush.bf16.msra.mxu3 %v2626_v58 }
 0x3ed   :  { %1516 = vmatpush.bf16.msra.mxu1 %v2641_v14  ;;  %1542 = vmatpush.bf16.msra.mxu3 %v2638_v9 }
 0x3f1   :  { %1517 = vmatpush.bf16.msra.mxu1 %v3583_v53  ;;  %1543 = vmatpush.bf16.msra.mxu3 %v3584_v15  ;;  %v1496_v53 = vld [vmem:[#allocation2 + $0x18] sm:$0xf] }
 0x3f2   :  { %1532 = vmatmul.bf16.vlgmr.msra.gmra.mxu2 %v1496_v53  ;;  %1506 = vmatmul.bf16.vlgmr.msra.gmra.mxu0 %v1496_v53 }
 0x3f3   :  { %1694 = vmatpush.bf16.msra.mxu2 %v3499_v36 }
 0x3f5   :  { %1518 = vmatpush.bf16.msra.mxu1 %v3585_v7  ;;  %1544 = vmatpush.bf16.msra.mxu3 %v3586_v24 }
 0x3f9   :  { %1563 = vmatpush.bf16.msrb.mxu1 %v3587_v30  ;;  %1589 = vmatpush.bf16.msrb.mxu3 %v3588_v3 }
 0x3fd   :  { %1564 = vmatpush.bf16.msrb.mxu1 %v3589_v26  ;;  %1590 = vmatpush.bf16.msrb.mxu3 %v3590_v61 }
 0x401   :  { %1565 = vmatpush.bf16.msrb.mxu1 %v3591_v10  ;;  %1591 = vmatpush.bf16.msrb.mxu3 %v3592_v4  ;;  %v3602_v10 = vld [vmem:[#allocation44_spill] sm:$0xff]  ;;  %v1337_v4 = vpop.f32.mrf.mxu0 }
 0x402   :  { %1584 = vmatmul.bf16.vlgmr.msrb.gmra.mxu2 %v1496_v53  ;;  %1558 = vmatmul.bf16.vlgmr.msrb.gmra.mxu0 %v1496_v53 }
 0x405   :  { %1566 = vmatpush.bf16.msrb.mxu1 %v3593_v37  ;;  %1592 = vmatpush.bf16.msrb.mxu3 %v3594_v32  ;;  %v1363_v37 = vpop.f32.mrf.mxu2 }
 0x409   :  { %1567 = vmatpush.bf16.msrb.mxu1 %v3595_v52  ;;  %1593 = vmatpush.bf16.msrb.mxu3 %v3596_v28  ;;  %v1339_v61 = vpop.f32.mrf.mxu0 }
 0x40d   :  { %1568 = vmatpush.bf16.msrb.mxu1 %v3597_v16  ;;  %1594 = vmatpush.bf16.msrb.mxu3 %v3598_v35  ;;  %v1365_v32 = vpop.f32.mrf.mxu2  ;;  %v1338_v16 = vadd.f32 %v1337_v4, %v3497_v18 }
 0x411   :  { %1569 = vmatpush.bf16.msrb.mxu1 %v3599_v41  ;;  %1595 = vmatpush.bf16.msrb.mxu3 %v3600_v42  ;;  %v1389_v52 = vpop.f32.mrf.mxu0  ;;  %v1364_v41 = vadd.f32 %v1363_v37, %v3498_v11 }
 0x415   :  { %1570 = vmatpush.bf16.msrb.mxu1 %v3601_v17  ;;  %1596 = vmatpush.bf16.msrb.mxu3 %v3602_v10  ;;  %v1415_v26 = vpop.f32.mrf.mxu2 }
 0x419   :  { %v1391_v28 = vpop.f32.mrf.mxu0 }
 0x41d   :  { %v1417_v3 = vpop.f32.mrf.mxu2 }
 0x455   :  { %v1350_v30 = vpop.f32.mrf.mxu1 }
 0x456   :  { %v1351_v35 = vadd.f32 %v1350_v30, %v1338_v16  ;;  %v3603_v30 = vld [vmem:[#allocation15_spill] sm:$0xff] }
 0x457   :  { %1668 = vmatpush.bf16.msra.mxu0 %v3603_v30 }
 0x458   :  { %v2175_v24 = vmul.f32 -1.442695, %v1351_v35  ;;  %v3605_v35 = vld [vmem:[#allocation18_spill] sm:$0xff] }
 0x459   :  { %1695 = vmatpush.bf16.msra.mxu2 %v3605_v35 }
 0x45a   :  { %2341 = vpow2.f32 %v2175_v24  ;;  %v3604_v24 = vld [vmem:[#allocation30_spill] sm:$0xff] }
 0x45b   :  { %v1376_v42 = vpop.f32.mrf.mxu3  ;;  %v1416_v28 = vadd.f32 %v1415_v26, %v3604_v24 }
 0x45c   :  { %v1377_v17 = vadd.f32 %v1376_v42, %v1364_v41 }
 0x45d   :  { %v1352_v7 = vpop.f32.mrf.mxu1  ;;  %1696 = vmatpush.bf16.msra.mxu2 %v2600_v33 }
 0x45e   :  { %v2176_v10 = vmul.f32 -1.442695, %v1377_v17 }
 0x460   :  { %v2342_v15 = vpop.eup %2341  ;;  %2343 = vpow2.f32 %v2176_v10 }
 0x461   :  { %v1435_v61 = vadd.f32 1.0, %v2342_v15  ;;  %v3606_v15 = vld [vmem:[#allocation17_spill] sm:$0xff]  ;;  %1697 = vmatpush.bf16.msra.mxu2 %v2612_v45 }
 0x462   :  { %1669 = vmatpush.bf16.msra.mxu0 %v3606_v15 }
 0x463   :  { %2345 = vrcp.f32 %v1435_v61  ;;  %v1378_v32 = vpop.f32.mrf.mxu3  ;;  %v1447_v15 = vand.u32 2147483648, %v1435_v61  ;;  %vm1441_vm14 = vweird.f32 %v1435_v61 }
 0x464   :  { %v1390_v32 = vadd.f32 %v1389_v52, %v2852_v63 }
 0x465   :  { %v1402_v3 = vpop.f32.mrf.mxu1  ;;  %1698 = vmatpush.bf16.msra.mxu2 %v2624_v57 }
 0x466   :  { %v2344_v4 = vpop.eup %2343  ;;  %1670 = vmatpush.bf16.msra.mxu0 %v2596_v29  ;;  %v1403_v24 = vadd.f32 %v1402_v3, %v1390_v32  ;;  %v1445_v29 = vand.u32 2147483647, %v1435_v61 }
 0x467   :  { %v1454_v37 = vadd.f32 1.0, %v2344_v4 }
 0x468   :  { %vm1446_vm3 = vcmp.eq.f32.partialorder %v1445_v29, 8.507059e+37 }
 0x469   :  { %v2346_v16 = vpop.eup %2345  ;;  %2347 = vrcp.f32 %v1454_v37  ;;  %v1464_v33 = vand.u32 2147483647, %v1454_v37  ;;  %vm1460_vm15 = vweird.f32 %v1454_v37  ;;  %1699 = vmatpush.bf16.msra.mxu2 %v2636_v6 }
 0x46a   :  { %v1437_v7 = vmul.f32 %v2346_v16, %v1435_v61  ;;  %1671 = vmatpush.bf16.msra.mxu0 %v2608_v44  ;;  %vm1442_vm12 = vweird.f32 %v2346_v16 }
 0x46b   :  { %v1428_v10 = vpop.f32.mrf.mxu3  ;;  %vm3263_vm0 = vmor %vm1441_vm14, %vm1442_vm12  ;;  %vm1465_vm2 = vcmp.eq.f32.partialorder %v1464_v33, 8.507059e+37 }
 0x46c   :  { %v1438_v41 = vsub.f32 1.0, %v1437_v7  ;;  %v1429_v42 = vadd.f32 %v1428_v10, %v1416_v28  ;;  %v1466_v7 = vand.u32 2147483648, %v1454_v37 }
 0x46d   :  { %v1404_v17 = vpop.f32.mrf.mxu1  ;;  %1700 = vmatpush.bf16.msra.mxu2 %v2648_v27 }
 0x46e   :  { %v2177_v11 = vmul.f32 -1.442695, %v1429_v42  ;;  %v1439_v26 = vmul.f32 %v2346_v16, %v1438_v41  ;;  %1672 = vmatpush.bf16.msra.mxu0 %v2620_v56  ;;  %v1467_v44 = vor.u32 1.1754944e-38, %v1466_v7  ;;  %v1448_v41 = vor.u32 1.1754944e-38, %v1447_v15 }
 0x46f   :  { %v2348_v36 = vpop.eup %2347 }
 0x470   :  { %v1456_v4 = vmul.f32 %v2348_v36, %v1454_v37  ;;  %2349 = vpow2.f32 %v2177_v11  ;;  %v1440_v28 = vadd.f32 %v2346_v16, %v1439_v26  ;;  %vm1461_vm13 = vweird.f32 %v2348_v36 }
 0x471   :  { %2351 = vtanh.f32 %v1403_v24  ;;  %vm1462_vm1 = vmor %vm1460_vm15, %vm1461_vm13  ;;  %1701 = vmatpush.bf16.msra.mxu2 %v2660_v51 }
 0x472   :  { %v1457_v30 = vsub.f32 1.0, %v1456_v4  ;;  %v1444_v3 = vsel %vm3263_vm0, %v2346_v16, %v1440_v28  ;;  %1673 = vmatpush.bf16.msra.mxu0 %v2632_v5 }
 0x473   :  { %v1430_v35 = vpop.f32.mrf.mxu3  ;;  %v1449_v42 = vsel %vm1446_vm3, %v1448_v41, %v1444_v3  ;;  %v1666_v41 = vld [vmem:[#allocation2 + $0x1c] sm:$0xf] }
 0x474   :  { %v1458_v52 = vmul.f32 %v2348_v36, %v1457_v30  ;;  %1702 = vmatmul.bf16.vlgmr.msra.gmra.mxu2 %v1666_v41 }
 0x475   :  { %1746 = vmatpush.bf16.msrb.mxu2 %v2667_v59  ;;  %v3621_v59 = vld [vmem:[#allocation37_spill] sm:$0xff] }
 0x476   :  { %v2350_v10 = vpop.eup %2349  ;;  %v1459_v45 = vadd.f32 %v2348_v36, %v1458_v52  ;;  %1674 = vmatpush.bf16.msra.mxu0 %v2644_v23  ;;  %v3629_v52 = vld [vmem:[#allocation31_spill] sm:$0xff] }
 0x477   :  { %v1474_v61 = vadd.f32 1.0, %v2350_v10  ;;  %v2352_v56 = vpop.eup %2351 }
 0x478   :  { %v1463_v53 = vsel %vm1462_vm1, %v2348_v36, %v1459_v45  ;;  %v1491_v24 = vmul.f32 %v2352_v56, %v1449_v42 }
 0x479   :  { %v1468_v37 = vsel %vm1465_vm2, %v1467_v44, %v1463_v53  ;;  %2353 = vrcp.f32 %v1474_v61  ;;  %v1486_v5 = vand.u32 2147483648, %v1474_v61  ;;  %v1484_v27 = vand.u32 2147483647, %v1474_v61  ;;  %1747 = vmatpush.bf16.msrb.mxu2 %v2684_v20  ;;  %v3623_v20 = vld [vmem:[#allocation41_spill] sm:$0xff] }
 0x47a   :  { %v1490_v57 = vmul.f32 %v1468_v37, %v3198_v2  ;;  %1675 = vmatpush.bf16.msra.mxu0 %v2656_v43  ;;  %vm1480_vm5 = vweird.f32 %v1474_v61 }
 0x47b   :  { %v1487_v2 = vor.u32 1.1754944e-38, %v1486_v5  ;;  %vm1485_vm7 = vcmp.eq.f32.partialorder %v1484_v27, 8.507059e+37 }
 0x47c   :  { %v3276_v17 = vadd.f32 %v1491_v24, %v1490_v57  ;;  %v3630_v57 = vld [vmem:[#allocation30_spill] sm:$0xff] }
 0x47d   :  { %1748 = vmatpush.bf16.msrb.mxu2 %v2700_v47  ;;  %v3624_v47 = vld [vmem:[#allocation40_spill] sm:$0xff]  ;;  %1676 = vmatmul.bf16.vlgmr.msra.gmra.mxu0 %v1666_v41 }
 0x47e   :  { %2355 = vtanh.f32 %v3276_v17  ;;  %1720 = vmatpush.bf16.msrb.mxu0 %v2665_v55 }
 0x47f   :  { %v2354_v16 = vpop.eup %2353 }
 0x480   :  { %v1476_v32 = vmul.f32 %v2354_v16, %v1474_v61  ;;  %vm1481_vm4 = vweird.f32 %v2354_v16 }
 0x481   :  { %vm1482_vm6 = vmor %vm1480_vm5, %vm1481_vm4  ;;  %1749 = vmatpush.bf16.msrb.mxu2 %v3459_v60  ;;  %v1533_v60 = vpop.f32.mrf.mxu2 }
 0x482   :  { %v1477_v36 = vsub.f32 1.0, %v1476_v32  ;;  %1721 = vmatpush.bf16.msrb.mxu0 %v2682_v19  ;;  %v3622_v19 = vld [vmem:[#allocation36_spill] sm:$0xff]  ;;  %v1534_v15 = vadd.f32 %v1533_v60, %v3629_v52 }
 0x484   :  { %v1478_v6 = vmul.f32 %v2354_v16, %v1477_v36  ;;  %v2356_v43 = vpop.eup %2355 }
 0x485   :  { %1750 = vmatpush.bf16.msrb.mxu2 %v3463_v39 }
 0x486   :  { %v1479_v23 = vadd.f32 %v2354_v16, %v1478_v6  ;;  %1722 = vmatpush.bf16.msrb.mxu0 %v3457_v13  ;;  %v1507_v13 = vpop.f32.mrf.mxu0 }
 0x487   :  { %v1508_v7 = vadd.f32 %v1507_v13, %v3497_v18 }
 0x488   :  { %v1483_v51 = vsel %vm1482_vm6, %v2354_v16, %v1479_v23 }
 0x489   :  { %v1488_v26 = vsel %vm1485_vm7, %v1487_v2, %v1483_v51  ;;  %1751 = vmatpush.bf16.msrb.mxu2 %v3467_v0  ;;  %v1535_v39 = vpop.f32.mrf.mxu2 }
 0x48a   :  { %v1494_v4 = vmul.f32 %v2356_v43, %v1488_v26  ;;  %1723 = vmatpush.bf16.msrb.mxu0 %v3461_v22 }
 0x48c   :  { %v1497_v55 = vpack.c.bf16 %v1494_v4, %v1494_v4 }
 0x48d   :  { %1752 = vmatpush.bf16.msrb.mxu2 %v2749_v1  ;;  %v3626_v1 = vld [vmem:[#allocation42_spill] sm:$0xff] }
 0x48e   :  { %1519 = vmatmul.bf16.vlgmr.msra.gmra.mxu1 %v1497_v55  ;;  %1545 = vmatmul.bf16.vlgmr.msra.gmra.mxu3 %v1497_v55  ;;  %v1509_v22 = vpop.f32.mrf.mxu0 }
 0x48f   :  { %1681 = vmatpush.bf16.msra.mxu1 %v2582_v12  ;;  %1707 = vmatpush.bf16.msra.mxu3 %v2579_v8  ;;  %v3609_v8 = vld [vmem:[#allocation20_spill] sm:$0xff]  ;;  %v3610_v12 = vld [vmem:[#allocation19_spill] sm:$0xff] }
 0x490   :  { %1724 = vmatpush.bf16.msrb.mxu0 %v3465_v49 }
 0x491   :  { %1753 = vmatpush.bf16.msrb.mxu2 %v2761_v40  ;;  %v3628_v40 = vld [vmem:[#allocation44_spill] sm:$0xff]  ;;  %v1585_v49 = vpop.f32.mrf.mxu2 }
 0x492   :  { %v1586_v56 = vadd.f32 %v1585_v49, %v3630_v57 }
 0x493   :  { %1682 = vmatpush.bf16.msra.mxu1 %v2593_v25  ;;  %1708 = vmatpush.bf16.msra.mxu3 %v2591_v21  ;;  %v3611_v21 = vld [vmem:[#allocation23_spill] sm:$0xff]  ;;  %v3612_v25 = vld [vmem:[#allocation21_spill] sm:$0xff] }
 0x494   :  { %1725 = vmatpush.bf16.msrb.mxu0 %v3469_v48  ;;  %1754 = vmatmul.bf16.vlgmr.msrb.gmra.mxu2 %v1666_v41 }
 0x496   :  { %v1559_v0 = vpop.f32.mrf.mxu0 }
 0x497   :  { %1683 = vmatpush.bf16.msra.mxu1 %v2605_v38  ;;  %1709 = vmatpush.bf16.msra.mxu3 %v2602_v34  ;;  %v3613_v34 = vld [vmem:[#allocation24_spill] sm:$0xff]  ;;  %v3614_v38 = vld [vmem:[#allocation22_spill] sm:$0xff]  ;;  %v1560_v27 = vadd.f32 %v1559_v0, %v2852_v63 }
 0x498   :  { %1726 = vmatpush.bf16.msrb.mxu0 %v2747_v54  ;;  %v3625_v54 = vld [vmem:[#allocation43_spill] sm:$0xff] }
 0x499   :  { %v1587_v48 = vpop.f32.mrf.mxu2 }
 0x49b   :  { %1684 = vmatpush.bf16.msra.mxu1 %v2617_v50  ;;  %1710 = vmatpush.bf16.msra.mxu3 %v2614_v46  ;;  %v3615_v46 = vld [vmem:[#allocation26_spill] sm:$0xff]  ;;  %v3616_v50 = vld [vmem:[#allocation25_spill] sm:$0xff] }
 0x49c   :  { %1727 = vmatpush.bf16.msrb.mxu0 %v2759_v31  ;;  %v3627_v31 = vld [vmem:[#allocation45_spill] sm:$0xff] }
 0x49e   :  { %1571 = vmatmul.bf16.vlgmr.msrb.gmra.mxu1 %v1497_v55  ;;  %1597 = vmatmul.bf16.vlgmr.msrb.gmra.mxu3 %v1497_v55  ;;  %v1561_v30 = vpop.f32.mrf.mxu0 }
 0x49f   :  { %1685 = vmatpush.bf16.msra.mxu1 %v2629_v62  ;;  %1711 = vmatpush.bf16.msra.mxu3 %v2626_v58  ;;  %v3617_v58 = vld [vmem:[#allocation29_spill] sm:$0xff]  ;;  %v3618_v62 = vld [vmem:[#allocation28_spill] sm:$0xff] }
 0x4a0   :  { %1728 = vmatmul.bf16.vlgmr.msrb.gmra.mxu0 %v1666_v41  ;;  %v1849_v41 = vld [vmem:[#allocation8 + $0x70] sm:$0xff] }
 0x4a3   :  { %1686 = vmatpush.bf16.msra.mxu1 %v2641_v14  ;;  %1712 = vmatpush.bf16.msra.mxu3 %v2638_v9  ;;  %v3619_v9 = vld [vmem:[#allocation33_spill] sm:$0xff]  ;;  %v3620_v14 = vld [vmem:[#allocation32_spill] sm:$0xff] }
 0x4a7   :  { %1687 = vmatpush.bf16.msra.mxu1 %v3609_v8  ;;  %1713 = vmatpush.bf16.msra.mxu3 %v3610_v12 }
 0x4ab   :  { %1688 = vmatpush.bf16.msra.mxu1 %v3611_v21  ;;  %1714 = vmatpush.bf16.msra.mxu3 %v3612_v25 }
 0x4af   :  { %1733 = vmatpush.bf16.msrb.mxu1 %v3613_v34  ;;  %1759 = vmatpush.bf16.msrb.mxu3 %v3614_v38 }
 0x4b3   :  { %1734 = vmatpush.bf16.msrb.mxu1 %v3615_v46  ;;  %1760 = vmatpush.bf16.msrb.mxu3 %v3616_v50 }
 0x4b7   :  { %1735 = vmatpush.bf16.msrb.mxu1 %v3617_v58  ;;  %1761 = vmatpush.bf16.msrb.mxu3 %v3618_v62 }
 0x4bb   :  { %1736 = vmatpush.bf16.msrb.mxu1 %v3619_v9  ;;  %1762 = vmatpush.bf16.msrb.mxu3 %v3620_v14 }
 0x4bf   :  { %1737 = vmatpush.bf16.msrb.mxu1 %v3621_v59  ;;  %1763 = vmatpush.bf16.msrb.mxu3 %v3622_v19 }
 0x4c3   :  { %1738 = vmatpush.bf16.msrb.mxu1 %v3623_v20  ;;  %1764 = vmatpush.bf16.msrb.mxu3 %v3624_v47 }
 0x4c7   :  { %1739 = vmatpush.bf16.msrb.mxu1 %v3625_v54  ;;  %1765 = vmatpush.bf16.msrb.mxu3 %v3626_v1 }
 0x4cb   :  { %1740 = vmatpush.bf16.msrb.mxu1 %v3627_v31  ;;  %1766 = vmatpush.bf16.msrb.mxu3 %v3628_v40 }
 0x50b   :  { %v1520_v28 = vpop.f32.mrf.mxu1 }
 0x50c   :  { %v1521_v35 = vadd.f32 %v1520_v28, %v1508_v7 }
 0x50e   :  { %v2178_v33 = vmul.f32 -1.442695, %v1521_v35 }
 0x510   :  { %2357 = vpow2.f32 %v2178_v33  ;;  %v1703_v33 = vpop.f32.mrf.mxu2 }
 0x511   :  { %v1546_v29 = vpop.f32.mrf.mxu3 }
 0x512   :  { %v1547_v10 = vadd.f32 %v1546_v29, %v1534_v15  ;;  %v1677_v15 = vpop.f32.mrf.mxu0 }
 0x513   :  { %v1522_v11 = vpop.f32.mrf.mxu1 }
 0x514   :  { %v2179_v45 = vmul.f32 -1.442695, %v1547_v10 }
 0x516   :  { %v2358_v44 = vpop.eup %2357  ;;  %2359 = vpow2.f32 %v2179_v45 }
 0x517   :  { %v1605_v3 = vadd.f32 1.0, %v2358_v44 }
 0x518   :  { %v1705_v10 = vpop.f32.mrf.mxu2 }
 0x519   :  { %2361 = vrcp.f32 %v1605_v3  ;;  %v1548_v61 = vpop.f32.mrf.mxu3  ;;  %v1617_v25 = vand.u32 2147483648, %v1605_v3  ;;  %vm1611_vm10 = vweird.f32 %v1605_v3  ;;  %v1615_v38 = vand.u32 2147483647, %v1605_v3 }
 0x51a   :  { %v1679_v29 = vpop.f32.mrf.mxu0  ;;  %v1850_v61 = vld [vmem:[#allocation8 + $0x78] sm:$0xff] }
 0x51b   :  { %v1572_v53 = vpop.f32.mrf.mxu1  ;;  %v1618_v14 = vor.u32 1.1754944e-38, %v1617_v25  ;;  %vm1616_vm15 = vcmp.eq.f32.partialorder %v1615_v38, 8.507059e+37  ;;  %1855 = vmatpush.msra.mxu0 %v1850_v61 }
 0x51c   :  { %v2360_v37 = vpop.eup %2359  ;;  %v1573_v4 = vadd.f32 %v1572_v53, %v1560_v27  ;;  %v1848_v53 = vld [vmem:[#allocation8 + $0x68] sm:$0xff] }
 0x51d   :  { %v1624_v42 = vadd.f32 1.0, %v2360_v37  ;;  %1856 = vmatpush.msra.mxu0 %v1849_v41  ;;  %v1678_v37 = vadd.f32 %v1677_v15, %v3497_v18 }
 0x51f   :  { %v2362_v24 = vpop.eup %2361  ;;  %2363 = vrcp.f32 %v1624_v42  ;;  %v1636_v55 = vand.u32 2147483648, %v1624_v42  ;;  %v1634_v34 = vand.u32 2147483647, %v1624_v42  ;;  %vm1630_vm11 = vweird.f32 %v1624_v42  ;;  %1857 = vmatpush.msra.mxu0 %v1848_v53 }
 0x520   :  { %v1607_v16 = vmul.f32 %v2362_v24, %v1605_v3  ;;  %vm1612_vm8 = vweird.f32 %v2362_v24  ;;  %v1755_v11 = vpop.f32.mrf.mxu2 }
 0x521   :  { %v1598_v32 = vpop.f32.mrf.mxu3  ;;  %vm1613_vm12 = vmor %vm1611_vm10, %vm1612_vm8  ;;  %v1637_v58 = vor.u32 1.1754944e-38, %v1636_v55  ;;  %vm1635_vm14 = vcmp.eq.f32.partialorder %v1634_v34, 8.507059e+37  ;;  %v1837_v34 = vld [vmem:[#allocation8 + $0x10] sm:$0xff] }
 0x522   :  { %v1608_v36 = vsub.f32 1.0, %v1607_v16  ;;  %v1599_v5 = vadd.f32 %v1598_v32, %v1586_v56  ;;  %v1729_v45 = vpop.f32.mrf.mxu0  ;;  %v1845_v32 = vld [vmem:[#allocation8 + $0x50] sm:$0xff] }
 0x523   :  { %v1574_v6 = vpop.f32.mrf.mxu1 }
 0x524   :  { %v2180_v23 = vmul.f32 -1.442695, %v1599_v5  ;;  %v1609_v51 = vmul.f32 %v2362_v24, %v1608_v36  ;;  %v1704_v36 = vadd.f32 %v1703_v33, %v3629_v52  ;;  %v1844_v6 = vld [vmem:[#allocation8 + $0x48] sm:$0xff] }
 0x525   :  { %v2364_v2 = vpop.eup %2363 }
 0x526   :  { %v1626_v43 = vmul.f32 %v2364_v2, %v1624_v42  ;;  %2365 = vpow2.f32 %v2180_v23  ;;  %v1610_v8 = vadd.f32 %v2362_v24, %v1609_v51  ;;  %vm1631_vm9 = vweird.f32 %v2364_v2  ;;  %v1847_v42 = vld [vmem:[#allocation8 + $0x60] sm:$0xff]  ;;  %v1842_v51 = vld [vmem:[#allocation8 + $0x38] sm:$0xff] }
 0x527   :  { %2367 = vtanh.f32 %v1573_v4  ;;  %vm1632_vm13 = vmor %vm1630_vm11, %vm1631_vm9  ;;  %1858 = vmatpush.msra.mxu0 %v1847_v42  ;;  %v1843_v23 = vld [vmem:[#allocation8 + $0x40] sm:$0xff] }
 0x528   :  { %v1627_v26 = vsub.f32 1.0, %v1626_v43  ;;  %v1614_v62 = vsel %vm1613_vm12, %v2362_v24, %v1610_v8  ;;  %v1757_v44 = vpop.f32.mrf.mxu2  ;;  %v1846_v24 = vld [vmem:[#allocation8 + $0x58] sm:$0xff]  ;;  %v1840_v8 = vld [vmem:[#allocation8 + $0x28] sm:$0xff] }
 0x529   :  { %v1600_v12 = vpop.f32.mrf.mxu3  ;;  %v1619_v20 = vsel %vm1616_vm15, %v1618_v14, %v1614_v62  ;;  %1859 = vmatpush.msra.mxu0 %v1846_v24 }
 0x52a   :  { %v1628_v21 = vmul.f32 %v2364_v2, %v1627_v26  ;;  %v1731_v3 = vpop.f32.mrf.mxu0  ;;  %v1841_v26 = vld [vmem:[#allocation8 + $0x30] sm:$0xff]  ;;  %v1839_v12 = vld [vmem:[#allocation8 + $0x20] sm:$0xff] }
 0x52b   :  { %1860 = vmatpush.msra.mxu0 %v1845_v32 }
 0x52c   :  { %v2366_v46 = vpop.eup %2365  ;;  %v1629_v50 = vadd.f32 %v2364_v2, %v1628_v21  ;;  %v1838_v21 = vld [vmem:[#allocation8 + $0x18] sm:$0xff] }
 0x52d   :  { %v1644_v9 = vadd.f32 1.0, %v2366_v46  ;;  %v2368_v54 = vpop.eup %2367  ;;  %1861 = vmatpush.msra.mxu0 %v1844_v6 }
 0x52e   :  { %v1633_v59 = vsel %vm1632_vm13, %v2364_v2, %v1629_v50  ;;  %v1661_v1 = vmul.f32 %v2368_v54, %v1619_v20  ;;  %v1836_v50 = vld [vmem:[#allocation8 + $0x8] sm:$0xff]  ;;  %v1730_v54 = vadd.f32 %v1729_v45, %v2852_v63 }
 0x52f   :  { %v1638_v19 = vsel %vm1635_vm14, %v1637_v58, %v1633_v59  ;;  %2369 = vrcp.f32 %v1644_v9  ;;  %v1656_v22 = vand.u32 2147483648, %v1644_v9  ;;  %v1654_v49 = vand.u32 2147483647, %v1644_v9  ;;  %1862 = vmatpush.msra.mxu0 %v1843_v23  ;;  %v2260_v23 = vld [vmem:[%s3352_s4] ss:$0 sm:$0xff] }
 0x530   :  { %v1660_v47 = vmul.f32 %v1638_v19, %v3276_v17  ;;  %vm1650_vm1 = vweird.f32 %v1644_v9  ;;  %v1756_v58 = vadd.f32 %v1755_v11, %v3630_v57 }
 0x531   :  { %v1657_v48 = vor.u32 1.1754944e-38, %v1656_v22  ;;  %vm1655_vm3 = vcmp.eq.f32.partialorder %v1654_v49, 8.507059e+37  ;;  %1863 = vmatpush.msra.mxu0 %v1842_v51 }
 0x532   :  { %v3334_v40 = vadd.f32 %v1661_v1, %v1660_v47 }
 0x533   :  { %1864 = vmatpush.msra.mxu0 %v1841_v26 }
 0x534   :  { %2371 = vtanh.f32 %v3334_v40 }
 0x535   :  { %v2370_v31 = vpop.eup %2369  ;;  %1865 = vmatpush.msra.mxu0 %v1840_v8 }
 0x536   :  { %v1646_v13 = vmul.f32 %v2370_v31, %v1644_v9  ;;  %vm1651_vm0 = vweird.f32 %v2370_v31  ;;  %v1835_v9 = vld [vmem:[#allocation8] sm:$0xff] }
 0x537   :  { %vm1652_vm2 = vmor %vm1650_vm1, %vm1651_vm0  ;;  %1866 = vmatpush.msra.mxu0 %v1839_v12 }
 0x538   :  { %v1647_v60 = vsub.f32 1.0, %v1646_v13 }
 0x539   :  { %1867 = vmatpush.msra.mxu0 %v1838_v21 }
 0x53a   :  { %v1648_v39 = vmul.f32 %v2370_v31, %v1647_v60  ;;  %v2372_v17 = vpop.eup %2371 }
 0x53b   :  { %1868 = vmatpush.msra.mxu0 %v1837_v34 }
 0x53c   :  { %v1649_v0 = vadd.f32 %v2370_v31, %v1648_v39 }
 0x53d   :  { %1869 = vmatpush.msra.mxu0 %v1836_v50 }
 0x53e   :  { %v1653_v30 = vsel %vm1652_vm2, %v2370_v31, %v1649_v0 }
 0x53f   :  { %v1658_v7 = vsel %vm1655_vm3, %v1657_v48, %v1653_v30  ;;  %1870 = vmatpush.msra.mxu0 %v1835_v9 }
 0x540   :  { %v1664_v28 = vmul.f32 %v2372_v17, %v1658_v7 }
 0x542   :  { %v1667_v35 = vpack.c.bf16 %v1664_v28, %v1664_v28 }
 0x544   :  { %1689 = vmatmul.bf16.vlgmr.msra.gmra.mxu1 %v1667_v35  ;;  %1715 = vmatmul.bf16.vlgmr.msra.gmra.mxu3 %v1667_v35 }
 0x554   :  { %1741 = vmatmul.bf16.vlgmr.msrb.gmra.mxu1 %v1667_v35  ;;  %1767 = vmatmul.bf16.vlgmr.msrb.gmra.mxu3 %v1667_v35 }
 0x5c1   :  { %v1690_v56 = vpop.f32.mrf.mxu1 }
 0x5c2   :  { %v1691_v16 = vadd.f32 %v1690_v56, %v1678_v37 }
 0x5c4   :  { %v2181_v5 = vmul.f32 -1.442695, %v1691_v16 }
 0x5c6   :  { %2373 = vpow2.f32 %v2181_v5 }
 0x5c7   :  { %v1716_v27 = vpop.f32.mrf.mxu3 }
 0x5c8   :  { %v1717_v2 = vadd.f32 %v1716_v27, %v1704_v36 }
 0x5c9   :  { %v1692_v18 = vpop.f32.mrf.mxu1 }
 0x5ca   :  { %v2182_v43 = vmul.f32 -1.442695, %v1717_v2 }
 0x5cc   :  { %v2374_v4 = vpop.eup %2373  ;;  %2375 = vpow2.f32 %v2182_v43 }
 0x5cd   :  { %v1775_v55 = vadd.f32 1.0, %v2374_v4 }
 0x5cf   :  { %2377 = vrcp.f32 %v1775_v55  ;;  %v1718_v52 = vpop.f32.mrf.mxu3  ;;  %v1787_v30 = vand.u32 2147483648, %v1775_v55  ;;  %vm1781_vm6 = vweird.f32 %v1775_v55  ;;  %v1785_v7 = vand.u32 2147483647, %v1775_v55 }
 0x5d1   :  { %v1742_v25 = vpop.f32.mrf.mxu1  ;;  %v1788_v29 = vor.u32 1.1754944e-38, %v1787_v30  ;;  %vm1786_vm11 = vcmp.eq.f32.partialorder %v1785_v7, 8.507059e+37 }
 0x5d2   :  { %v2376_v38 = vpop.eup %2375  ;;  %v1743_v57 = vadd.f32 %v1742_v25, %v1730_v54 }
 0x5d3   :  { %v1794_v46 = vadd.f32 1.0, %v2376_v38 }
 0x5d5   :  { %v2378_v62 = vpop.eup %2377  ;;  %2379 = vrcp.f32 %v1794_v46  ;;  %v1806_v39 = vand.u32 2147483648, %v1794_v46  ;;  %v1804_v17 = vand.u32 2147483647, %v1794_v46  ;;  %vm1800_vm7 = vweird.f32 %v1794_v46 }
 0x5d6   :  { %v1777_v14 = vmul.f32 %v2378_v62, %v1775_v55  ;;  %vm1782_vm4 = vweird.f32 %v2378_v62 }
 0x5d7   :  { %v1768_v59 = vpop.f32.mrf.mxu3  ;;  %vm1783_vm8 = vmor %vm1781_vm6, %vm1782_vm4  ;;  %v1807_v35 = vor.u32 1.1754944e-38, %v1806_v39  ;;  %vm1805_vm10 = vcmp.eq.f32.partialorder %v1804_v17, 8.507059e+37 }
 0x5d8   :  { %v1778_v19 = vsub.f32 1.0, %v1777_v14  ;;  %v1769_v20 = vadd.f32 %v1768_v59, %v1756_v58 }
 0x5d9   :  { %v1744_v47 = vpop.f32.mrf.mxu1 }
 0x5da   :  { %v2183_v1 = vmul.f32 -1.442695, %v1769_v20  ;;  %v1779_v13 = vmul.f32 %v2378_v62, %v1778_v19 }
 0x5db   :  { %v2380_v31 = vpop.eup %2379 }
 0x5dc   :  { %v1796_v60 = vmul.f32 %v2380_v31, %v1794_v46  ;;  %2381 = vpow2.f32 %v2183_v1  ;;  %v1780_v49 = vadd.f32 %v2378_v62, %v1779_v13  ;;  %vm1801_vm5 = vweird.f32 %v2380_v31 }
 0x5dd   :  { %2383 = vtanh.f32 %v1743_v57  ;;  %vm1802_vm9 = vmor %vm1800_vm7, %vm1801_vm5 }
 0x5de   :  { %v1797_v22 = vsub.f32 1.0, %v1796_v60  ;;  %v1784_v15 = vsel %vm1783_vm8, %v2378_v62, %v1780_v49 }
 0x5df   :  { %v1770_v0 = vpop.f32.mrf.mxu3  ;;  %v1789_v45 = vsel %vm1786_vm11, %v1788_v29, %v1784_v15 }
 0x5e0   :  { %v1798_v48 = vmul.f32 %v2380_v31, %v1797_v22 }
 0x5e2   :  { %v2382_v28 = vpop.eup %2381  ;;  %v1799_v63 = vadd.f32 %v2380_v31, %v1798_v48 }
 0x5e3   :  { %v1814_v33 = vadd.f32 1.0, %v2382_v28  ;;  %v2384_v3 = vpop.eup %2383 }
 0x5e4   :  { %v1803_v10 = vsel %vm1802_vm9, %v2380_v31, %v1799_v63  ;;  %v1831_v61 = vmul.f32 %v2384_v3, %v1789_v45 }
 0x5e5   :  { %v1808_v11 = vsel %vm1805_vm10, %v1807_v35, %v1803_v10  ;;  %2385 = vrcp.f32 %v1814_v33  ;;  %v1826_v56 = vand.u32 2147483648, %v1814_v33  ;;  %v1824_v16 = vand.u32 2147483647, %v1814_v33 }
 0x5e6   :  { %v1830_v44 = vmul.f32 %v1808_v11, %v3334_v40  ;;  %vm1820_vm13 = vweird.f32 %v1814_v33 }
 0x5e7   :  { %v1827_v36 = vor.u32 1.1754944e-38, %v1826_v56  ;;  %vm1825_vm15 = vcmp.eq.f32.partialorder %v1824_v16, 8.507059e+37 }
 0x5e8   :  { %v1832_v53 = vadd.f32 %v1831_v61, %v1830_v44 }
 0x5ea   :  { %2387 = vtanh.f32 %v1832_v53 }
 0x5eb   :  { %v2386_v41 = vpop.eup %2385 }
 0x5ec   :  { %v1816_v37 = vmul.f32 %v2386_v41, %v1814_v33  ;;  %vm1821_vm12 = vweird.f32 %v2386_v41 }
 0x5ed   :  { %vm1822_vm14 = vmor %vm1820_vm13, %vm1821_vm12 }
 0x5ee   :  { %v1817_v42 = vsub.f32 1.0, %v1816_v37 }
 0x5f0   :  { %v1818_v24 = vmul.f32 %v2386_v41, %v1817_v42  ;;  %v2388_v6 = vpop.eup %2387 }
 0x5f2   :  { %v1819_v32 = vadd.f32 %v2386_v41, %v1818_v24 }
 0x5f4   :  { %v1823_v5 = vsel %vm1822_vm14, %v2386_v41, %v1819_v32 }
 0x5f5   :  { %v1828_v27 = vsel %vm1825_vm15, %v1827_v36, %v1823_v5 }
 0x5f6   :  { %v1834_v40 = vmul.f32 %v2388_v6, %v1828_v27 }
 0x5f8   :  { %1871 = vmatmul.f32.vlgmr.msra.gmra.mxu0 %v1834_v40 }
 0x675   :  { %v1872_v2 = vpop.f32.mrf.mxu0 }
 0x676   :  { %v1873_v18 = vadd.f32 %v2260_v23, %v1872_v2 }
 0x678   :  { %1875 = vmax.xlane.f32.xlu0 %v1873_v18 }
 0x6eb   :  { %v1876_v51 = vpop.xlane.xlu0 %1875 }
 0x6ec   :  { %v1877_v43 = vsub.f32 %v1873_v18, %v1876_v51 }
 0x6ee   :  { %v1878_v26 = vmul.f32 1.442695, %v1877_v43 }
 0x6f0   :  { %2389 = vpow2.f32 %v1878_v26 }
 0x6f6   :  { %v2390_v4 = vpop.eup %2389 }
 0x6f7   :  { %1880 = vadd.xlane.f32.xlu0 %v2390_v4 }
 0x76a   :  { %v1881_v55 = vpop.xlane.xlu0 %1880 }
 0x76b   :  { %2391 = vrcp.f32 %v1881_v55 }
 0x771   :  { %v2392_v8 = vpop.eup %2391 }
 0x772   :  { %v1883_v52 = vmul.f32 %v2392_v8, %v2390_v4 }
 0x774   :  { %1884 = vst [vmem:[#allocation10] sm:$0xff] %v1883_v52 }
 0x775   :  { %1895 = dma.vmem_to_hbm [thread:$0]  %s1891_s18, 128, %s1893_s21, [#allocation4]  }
 0x776   :  { %2519 = dma.done.wait [#allocation4], 128  }
 0x777   :  { %2520 = vsyncadd [#allocation4], 4294967168 }
 0x778   :  { %1900 = vsyncpa [#allocation3], 1 }
 0x779   :  { %1901 = vsyncpa [#allocation6], 1 }
 0x77a   :  { %1902 = vsyncpa [#allocation9], 1 }
 0x77b   :  { %1903 = vsyncpa [#allocation4], 1 }

</bundles_post_ra>
